<compile_context>
chip_gen: v7x
topology: tpu7x:2x2x1
jax: 0.10.0
libtpu: 0.0.40
codegen_flags: <defaults>
</compile_context>

<pallas_src>
import functools

import jax
import jax.numpy as jnp
from jax.experimental import pallas as pl
from jax.experimental.pallas import tpu as pltpu

NC_PAD = 128  # classifier output padded to a lane-dense 128 channels


# ---------------------------------------------------------------------------
# Fused forward kernel: one grid step == one image, all intermediates in VMEM.
# ---------------------------------------------------------------------------
def _effnet_fused_kernel(x_ref, stem_w_ref, stem_b_ref, exp_w_ref, exp_b_ref,
                         dw_w_ref, dw_b_ref, se_w1_ref, se_b1_ref,
                         se_w2_ref, se_b2_ref, proj_w_ref, proj_b_ref,
                         head_w_ref, head_b_ref, fc_w_ref, fc_b_ref,
                         o_ref, *, Ho, Wo):
    HW = Ho * Wo
    x = x_ref[0]                                     # (Ho+1, Wo+1, 4*Cin) f32

    # -- stem: 3x3 stride-2 conv (+folded BN) + SiLU, as 4 shifted matmuls over
    #    the space-to-depth input (no im2col blowup in HBM).
    C0 = stem_w_ref.shape[-1]
    acc = jnp.zeros((HW, C0), jnp.float32)
    for bi in range(2):
        for bj in range(2):
            cols = x[bi:bi + Ho, bj:bj + Wo, :].reshape(HW, -1)
            acc = acc + jnp.dot(cols.astype(jnp.bfloat16),
                                stem_w_ref[bi, bj],
                                preferred_element_type=jnp.float32)
    s = acc + stem_b_ref[...]
    s = s * jax.nn.sigmoid(s)                        # SiLU; (HW, C0) f32 (residual)

    # -- MBConv expand 1x1 (+folded BN) + SiLU
    e = jnp.dot(s.astype(jnp.bfloat16), exp_w_ref[...],
                preferred_element_type=jnp.float32) + exp_b_ref[...]
    e = e * jax.nn.sigmoid(e)                        # (HW, CE) f32
    CE = e.shape[-1]

    # -- depthwise 3x3 (pad=1, BN scale folded into taps) + SiLU.
    #    Halo is built in-kernel with sublane-aligned (8-wide) zero blocks so
    #    the concatenations stay on the easy tiled path; taps read unaligned
    #    slices of the resulting value (proven pattern).
    PAD = 8
    e3 = e.reshape(Ho, Wo, CE)
    zr = jnp.zeros((PAD, Wo, CE), jnp.float32)
    xp = jnp.concatenate([zr, e3, zr], axis=0)       # (Ho+2*PAD, Wo, CE)
    zc = jnp.zeros((Ho + 2 * PAD, PAD, CE), jnp.float32)
    xp = jnp.concatenate([zc, xp, zc], axis=1)       # (Ho+2*PAD, Wo+2*PAD, CE)
    dw_w = dw_w_ref[...]                             # (3, 3, CE) f32
    dacc = jnp.zeros((Ho, Wo, CE), jnp.float32)
    for di in range(3):
        for dj in range(3):
            dacc = dacc + (xp[PAD - 1 + di:PAD - 1 + di + Ho,
                              PAD - 1 + dj:PAD - 1 + dj + Wo, :] * dw_w[di, dj])
    d = dacc + dw_b_ref[...]
    d = d * jax.nn.sigmoid(d)
    d = d.reshape(HW, CE)

    # -- squeeze-and-excitation gate (tiny matmuls, applied in-register)
    sq = jnp.mean(d, axis=0, keepdims=True)          # (1, CE)
    h = jnp.dot(sq, se_w1_ref[...],
                preferred_element_type=jnp.float32) + se_b1_ref[...]
    h = h * jax.nn.sigmoid(h)
    g = jax.nn.sigmoid(jnp.dot(h, se_w2_ref[...],
                               preferred_element_type=jnp.float32)
                       + se_b2_ref[...])             # (1, CE)
    d = d * g

    # -- project 1x1 (+folded BN) + residual add with stem
    pj = jnp.dot(d.astype(jnp.bfloat16), proj_w_ref[...],
                 preferred_element_type=jnp.float32) + proj_b_ref[...] + s

    # -- head 1x1 conv (+folded BN) + SiLU
    f = jnp.dot(pj.astype(jnp.bfloat16), head_w_ref[...],
                preferred_element_type=jnp.float32) + head_b_ref[...]
    f = f * jax.nn.sigmoid(f)                        # (HW, F)

    # -- global average pool + classifier (lane-dense 128-wide output)
    pooled = jnp.mean(f, axis=0, keepdims=True)      # (1, F)
    logits = jnp.dot(pooled.astype(jnp.bfloat16), fc_w_ref[...],
                     preferred_element_type=jnp.float32) + fc_b_ref[...]
    o_ref[0] = logits.astype(o_ref.dtype)            # (1, NC_PAD)


# ---------------------------------------------------------------------------
# pallas_call wrapper
# ---------------------------------------------------------------------------
def _effnet_pallas(xs, p):
    N, Hs, Ws, Cs = xs.shape
    Ho, Wo = Hs - 1, Ws - 1
    HW = Ho * Wo
    C0 = p['stem_w'].shape[-1]
    CE = p['exp_w'].shape[-1]
    CSE = p['se_w1'].shape[-1]
    F = p['head_w'].shape[-1]

    weights = (p['stem_w'], p['stem_b'], p['exp_w'], p['exp_b'],
               p['dw_w'], p['dw_b'], p['se_w1'], p['se_b1'],
               p['se_w2'], p['se_b2'], p['proj_w'], p['proj_b'],
               p['head_w'], p['head_b'], p['fc_w'], p['fc_b'])

    def w_spec(arr):
        nd = arr.ndim
        return pl.BlockSpec(arr.shape, lambda n, _nd=nd: (0,) * _nd)

    flops = N * (2 * HW * (4 * Cs * C0 + C0 * CE + 9 * CE + CE * C0 + C0 * F)
                 + 4 * CE * CSE + 2 * F * NC_PAD)
    transcendentals = N * (HW * (C0 + 2 * CE + F) + CSE + 2 * CE)
    bytes_accessed = (int(xs.size) * xs.dtype.itemsize
                      + N * NC_PAD * 4
                      + sum(int(w.size) * w.dtype.itemsize for w in weights))

    out = pl.pallas_call(
        functools.partial(_effnet_fused_kernel, Ho=Ho, Wo=Wo),
        out_shape=jax.ShapeDtypeStruct((N, 1, NC_PAD), jnp.float32),
        grid=(N,),
        in_specs=[pl.BlockSpec((1, Hs, Ws, Cs), lambda n: (n, 0, 0, 0))]
                + [w_spec(w) for w in weights],
        out_specs=pl.BlockSpec((1, 1, NC_PAD), lambda n: (n, 0, 0)),
        compiler_params=pltpu.CompilerParams(
            dimension_semantics=("parallel",),
            vmem_limit_bytes=32 * 1024 * 1024),
        cost_estimate=pl.CostEstimate(flops=int(flops),
                                      transcendentals=int(transcendentals),
                                      bytes_accessed=int(bytes_accessed)),
    )(xs, *weights)
    return out


def efficientnet_forward(params, x_nchw, n_class=6):
    """multilabel=False path: `x = self.model(x)` -> raw classifier logits."""
    N, Cin, H, W = x_nchw.shape
    assert H % 2 == 0 and W % 2 == 0
    Ho, Wo = H // 2, W // 2
    # NCHW -> NHWC, pad=1 on the tiny 3-channel input, then 2x2 space-to-depth
    # so the stride-2 stem becomes 4 shifted matmuls inside the kernel.
    x = jnp.transpose(x_nchw, (0, 2, 3, 1))
    xp = jnp.pad(x, ((0, 0), (1, 1), (1, 1), (0, 0)))
    xs = xp.reshape(N, Ho + 1, 2, Wo + 1, 2, Cin)
    xs = jnp.transpose(xs, (0, 1, 3, 2, 4, 5)).reshape(N, Ho + 1, Wo + 1, 4 * Cin)
    out = _effnet_pallas(xs.astype(jnp.float32), params)
    return out[:, 0, :n_class]


# ---------------------------------------------------------------------------
# Deterministic parameters (BatchNorm folded, stem remapped to s2d layout)
# ---------------------------------------------------------------------------
def _fold_stem_weight(w3, scale):
    """(3,3,Cin,C0) 3x3/s2 conv weight (with BN scale folded) -> (2,2,4*Cin,C0)
    weight acting on the 2x2 space-to-depth padded input."""
    kh, kw, cin, cout = w3.shape
    wf = w3 * scale[None, None, None, :]
    w2 = jnp.zeros((2, 2, 4 * cin, cout), wf.dtype)
    for di in range(kh):
        for dj in range(kw):
            bi, si = di // 2, di % 2
            bj, sj = dj // 2, dj % 2
            c0 = (si * 2 + sj) * cin
            w2 = w2.at[bi, bj, c0:c0 + cin, :].set(wf[di, dj])
    return w2


def init_params(key, n_class=6):
    C0, CE, CSE, F = 32, 128, 8, 256   # reduced-width EfficientNet-style dims
    ks = jax.random.split(key, 16)

    def norm(k, shape, s=0.05):
        return jax.random.normal(k, shape, jnp.float32) * s

    def bn(k, c):
        k1, k2 = jax.random.split(k)
        scale = 1.0 + 0.1 * jax.random.normal(k1, (c,), jnp.float32)
        shift = 0.01 * jax.random.normal(k2, (c,), jnp.float32)
        return scale, shift

    p = {}
    stem_w3 = norm(ks[0], (3, 3, 3, C0))                       # (kh,kw,cin,cout)
    stem_scale, stem_shift = bn(ks[1], C0)
    p['stem_w'] = _fold_stem_weight(stem_w3, stem_scale).astype(jnp.bfloat16)
    p['stem_b'] = stem_shift.reshape(1, C0)

    exp_w = norm(ks[2], (C0, CE))
    exp_scale, exp_shift = bn(ks[3], CE)
    p['exp_w'] = (exp_w * exp_scale[None, :]).astype(jnp.bfloat16)
    p['exp_b'] = exp_shift.reshape(1, CE)

    dw_w = norm(ks[4], (3, 3, CE), 0.1)
    dw_scale, dw_shift = bn(ks[5], CE)
    p['dw_w'] = dw_w * dw_scale[None, None, :]                 # f32 taps
    p['dw_b'] = dw_shift.reshape(1, 1, CE)

    p['se_w1'] = norm(ks[6], (CE, CSE), 0.1)
    p['se_b1'] = jnp.zeros((1, CSE), jnp.float32)
    p['se_w2'] = norm(ks[7], (CSE, CE), 0.1)
    p['se_b2'] = jnp.zeros((1, CE), jnp.float32)

    proj_w = norm(ks[8], (CE, C0))
    proj_scale, proj_shift = bn(ks[9], C0)
    p['proj_w'] = (proj_w * proj_scale[None, :]).astype(jnp.bfloat16)
    p['proj_b'] = proj_shift.reshape(1, C0)

    head_w = norm(ks[10], (C0, F))
    head_scale, head_shift = bn(ks[11], F)
    p['head_w'] = (head_w * head_scale[None, :]).astype(jnp.bfloat16)
    p['head_b'] = head_shift.reshape(1, F)

    fc_w = norm(ks[12], (F, n_class), 0.05)                    # nn.Linear(F, n_class)
    fc_b = norm(ks[13], (1, n_class), 0.01)
    p['fc_w'] = (jnp.zeros((F, NC_PAD), jnp.float32)
                 .at[:, :n_class].set(fc_w).astype(jnp.bfloat16))
    p['fc_b'] = jnp.zeros((1, NC_PAD), jnp.float32).at[:, :n_class].set(fc_b)
    return p


# TODO(synk): process_multilabel_preds / process_row (host-side Python dict &
# sort based label fusion, only active when multilabel=True) has no Pallas
# equivalent; the default multilabel=False forward path is implemented here.


if __name__ == "__main__":
    key = jax.random.PRNGKey(0)
    pkey, xkey = jax.random.split(key)
    params = init_params(pkey, n_class=6)
    # PyTorch conv input convention: NCHW
    x = jax.random.normal(xkey, (2, 3, 32, 32), jnp.float32)
    fwd = jax.jit(functools.partial(efficientnet_forward, n_class=6))
    logits = fwd(params, x)
    jax.block_until_ready(logits)
    assert logits.shape == (2, 6) and logits.dtype == jnp.float32
    print("KERNEL_OK")
</pallas_src>

<mosaic_0001>
module attributes {stable_mosaic.version = 11 : i64} {
  func.func @_effnet_fused_kernel(%arg0: i32, %arg1: memref<1x17x17x12xf32, #tpu.memory_space<vmem>>, %arg2: memref<2x2x12x32xbf16, #tpu.memory_space<vmem>>, %arg3: memref<1x32xf32, #tpu.memory_space<vmem>>, %arg4: memref<32x128xbf16, #tpu.memory_space<vmem>>, %arg5: memref<1x128xf32, #tpu.memory_space<vmem>>, %arg6: memref<3x3x128xf32, #tpu.memory_space<vmem>>, %arg7: memref<1x1x128xf32, #tpu.memory_space<vmem>>, %arg8: memref<128x8xf32, #tpu.memory_space<vmem>>, %arg9: memref<1x8xf32, #tpu.memory_space<vmem>>, %arg10: memref<8x128xf32, #tpu.memory_space<vmem>>, %arg11: memref<1x128xf32, #tpu.memory_space<vmem>>, %arg12: memref<128x32xbf16, #tpu.memory_space<vmem>>, %arg13: memref<1x32xf32, #tpu.memory_space<vmem>>, %arg14: memref<32x256xbf16, #tpu.memory_space<vmem>>, %arg15: memref<1x256xf32, #tpu.memory_space<vmem>>, %arg16: memref<256x128xbf16, #tpu.memory_space<vmem>>, %arg17: memref<1x128xf32, #tpu.memory_space<vmem>>, %arg18: memref<1x1x128xf32, #tpu.memory_space<vmem>>) attributes {dimension_semantics = [#tpu.dimension_semantics<parallel>], iteration_bounds = array<i64: 2>, scalar_prefetch = 0 : i64, scratch_operands = 0 : i64, tpu.core_type = #tpu.core_type<tc>, window_params = [{transform_indices = @transform_0, window_bounds = array<i64: 1, 17, 17, 12>}, {pipeline_mode = #tpu.pipeline_mode<synchronous>, transform_indices = @transform_1, window_bounds = array<i64: 2, 2, 12, 32>}, {pipeline_mode = #tpu.pipeline_mode<synchronous>, transform_indices = @transform_2, window_bounds = array<i64: 1, 32>}, {pipeline_mode = #tpu.pipeline_mode<synchronous>, transform_indices = @transform_3, window_bounds = array<i64: 32, 128>}, {pipeline_mode = #tpu.pipeline_mode<synchronous>, transform_indices = @transform_4, window_bounds = array<i64: 1, 128>}, {pipeline_mode = #tpu.pipeline_mode<synchronous>, transform_indices = @transform_5, window_bounds = array<i64: 3, 3, 128>}, {pipeline_mode = #tpu.pipeline_mode<synchronous>, transform_indices = @transform_6, window_bounds = array<i64: 1, 1, 128>}, {pipeline_mode = #tpu.pipeline_mode<synchronous>, transform_indices = @transform_7, window_bounds = array<i64: 128, 8>}, {pipeline_mode = #tpu.pipeline_mode<synchronous>, transform_indices = @transform_8, window_bounds = array<i64: 1, 8>}, {pipeline_mode = #tpu.pipeline_mode<synchronous>, transform_indices = @transform_9, window_bounds = array<i64: 8, 128>}, {pipeline_mode = #tpu.pipeline_mode<synchronous>, transform_indices = @transform_10, window_bounds = array<i64: 1, 128>}, {pipeline_mode = #tpu.pipeline_mode<synchronous>, transform_indices = @transform_11, window_bounds = array<i64: 128, 32>}, {pipeline_mode = #tpu.pipeline_mode<synchronous>, transform_indices = @transform_12, window_bounds = array<i64: 1, 32>}, {pipeline_mode = #tpu.pipeline_mode<synchronous>, transform_indices = @transform_13, window_bounds = array<i64: 32, 256>}, {pipeline_mode = #tpu.pipeline_mode<synchronous>, transform_indices = @transform_14, window_bounds = array<i64: 1, 256>}, {pipeline_mode = #tpu.pipeline_mode<synchronous>, transform_indices = @transform_15, window_bounds = array<i64: 256, 128>}, {pipeline_mode = #tpu.pipeline_mode<synchronous>, transform_indices = @transform_16, window_bounds = array<i64: 1, 128>}, {transform_indices = @transform_17, window_bounds = array<i64: 1, 1, 128>}]} {
    %c0 = arith.constant 0 : index
    %c0_0 = arith.constant 0 : index
    %c0_1 = arith.constant 0 : index
    %c0_2 = arith.constant 0 : index
    %0 = vector.load %arg1[%c0, %c0_0, %c0_1, %c0_2] : memref<1x17x17x12xf32, #tpu.memory_space<vmem>>, vector<1x17x17x12xf32>
    %1 = vector.shape_cast %0 : vector<1x17x17x12xf32> to vector<17x17x12xf32>
    %cst = arith.constant 0.000000e+00 : f32
    %2 = vector.broadcast %cst : f32 to vector<256x32xf32>
    %3 = vector.extract_strided_slice %1 {offsets = [0, 0, 0], sizes = [16, 16, 12], strides = [1, 1, 1]} : vector<17x17x12xf32> to vector<16x16x12xf32>
    %4 = vector.shape_cast %3 : vector<16x16x12xf32> to vector<256x12xf32>
    %5 = arith.truncf %4 : vector<256x12xf32> to vector<256x12xbf16>
    %c0_3 = arith.constant 0 : index
    %c0_4 = arith.constant 0 : index
    %c0_5 = arith.constant 0 : index
    %c0_6 = arith.constant 0 : index
    %6 = vector.load %arg2[%c0_3, %c0_4, %c0_5, %c0_6] : memref<2x2x12x32xbf16, #tpu.memory_space<vmem>>, vector<1x1x12x32xbf16>
    %7 = vector.shape_cast %6 : vector<1x1x12x32xbf16> to vector<12x32xbf16>
    %cst_7 = arith.constant dense<0.000000e+00> : vector<256x32xf32>
    %8 = tpu.matmul %5, %7, %cst_7 {dimension_numbers = #tpu.dot_dimension_numbers<[1], [0], [0], [1], [0, 0, 1, 1], [], []>} : vector<256x12xbf16>, vector<12x32xbf16>, vector<256x32xf32> -> vector<256x32xf32>
    %9 = arith.addf %2, %8 : vector<256x32xf32>
    %10 = vector.extract_strided_slice %1 {offsets = [0, 1, 0], sizes = [16, 16, 12], strides = [1, 1, 1]} : vector<17x17x12xf32> to vector<16x16x12xf32>
    %11 = vector.shape_cast %10 : vector<16x16x12xf32> to vector<256x12xf32>
    %12 = arith.truncf %11 : vector<256x12xf32> to vector<256x12xbf16>
    %c0_8 = arith.constant 0 : index
    %c1 = arith.constant 1 : index
    %c0_9 = arith.constant 0 : index
    %c0_10 = arith.constant 0 : index
    %13 = vector.load %arg2[%c0_8, %c1, %c0_9, %c0_10] : memref<2x2x12x32xbf16, #tpu.memory_space<vmem>>, vector<1x1x12x32xbf16>
    %14 = vector.shape_cast %13 : vector<1x1x12x32xbf16> to vector<12x32xbf16>
    %cst_11 = arith.constant dense<0.000000e+00> : vector<256x32xf32>
    %15 = tpu.matmul %12, %14, %cst_11 {dimension_numbers = #tpu.dot_dimension_numbers<[1], [0], [0], [1], [0, 0, 1, 1], [], []>} : vector<256x12xbf16>, vector<12x32xbf16>, vector<256x32xf32> -> vector<256x32xf32>
    %16 = arith.addf %9, %15 : vector<256x32xf32>
    %17 = vector.extract_strided_slice %1 {offsets = [1, 0, 0], sizes = [16, 16, 12], strides = [1, 1, 1]} : vector<17x17x12xf32> to vector<16x16x12xf32>
    %18 = vector.shape_cast %17 : vector<16x16x12xf32> to vector<256x12xf32>
    %19 = arith.truncf %18 : vector<256x12xf32> to vector<256x12xbf16>
    %c1_12 = arith.constant 1 : index
    %c0_13 = arith.constant 0 : index
    %c0_14 = arith.constant 0 : index
    %c0_15 = arith.constant 0 : index
    %20 = vector.load %arg2[%c1_12, %c0_13, %c0_14, %c0_15] : memref<2x2x12x32xbf16, #tpu.memory_space<vmem>>, vector<1x1x12x32xbf16>
    %21 = vector.shape_cast %20 : vector<1x1x12x32xbf16> to vector<12x32xbf16>
    %cst_16 = arith.constant dense<0.000000e+00> : vector<256x32xf32>
    %22 = tpu.matmul %19, %21, %cst_16 {dimension_numbers = #tpu.dot_dimension_numbers<[1], [0], [0], [1], [0, 0, 1, 1], [], []>} : vector<256x12xbf16>, vector<12x32xbf16>, vector<256x32xf32> -> vector<256x32xf32>
    %23 = arith.addf %16, %22 : vector<256x32xf32>
    %24 = vector.extract_strided_slice %1 {offsets = [1, 1, 0], sizes = [16, 16, 12], strides = [1, 1, 1]} : vector<17x17x12xf32> to vector<16x16x12xf32>
    %25 = vector.shape_cast %24 : vector<16x16x12xf32> to vector<256x12xf32>
    %26 = arith.truncf %25 : vector<256x12xf32> to vector<256x12xbf16>
    %c1_17 = arith.constant 1 : index
    %c1_18 = arith.constant 1 : index
    %c0_19 = arith.constant 0 : index
    %c0_20 = arith.constant 0 : index
    %27 = vector.load %arg2[%c1_17, %c1_18, %c0_19, %c0_20] : memref<2x2x12x32xbf16, #tpu.memory_space<vmem>>, vector<1x1x12x32xbf16>
    %28 = vector.shape_cast %27 : vector<1x1x12x32xbf16> to vector<12x32xbf16>
    %cst_21 = arith.constant dense<0.000000e+00> : vector<256x32xf32>
    %29 = tpu.matmul %26, %28, %cst_21 {dimension_numbers = #tpu.dot_dimension_numbers<[1], [0], [0], [1], [0, 0, 1, 1], [], []>} : vector<256x12xbf16>, vector<12x32xbf16>, vector<256x32xf32> -> vector<256x32xf32>
    %30 = arith.addf %23, %29 : vector<256x32xf32>
    %c0_22 = arith.constant 0 : index
    %c0_23 = arith.constant 0 : index
    %31 = vector.load %arg3[%c0_22, %c0_23] : memref<1x32xf32, #tpu.memory_space<vmem>>, vector<1x32xf32>
    %32 = vector.broadcast %31 : vector<1x32xf32> to vector<256x32xf32>
    %33 = arith.addf %30, %32 : vector<256x32xf32>
    %34 = arith.negf %33 : vector<256x32xf32>
    %35 = math.exp %34 : vector<256x32xf32>
    %cst_24 = arith.constant 1.000000e+00 : f32
    %36 = vector.broadcast %cst_24 : f32 to vector<256x32xf32>
    %37 = arith.addf %36, %35 : vector<256x32xf32>
    %38 = arith.divf %36, %37 : vector<256x32xf32>
    %39 = arith.mulf %33, %38 : vector<256x32xf32>
    %40 = arith.truncf %39 : vector<256x32xf32> to vector<256x32xbf16>
    %c0_25 = arith.constant 0 : index
    %c0_26 = arith.constant 0 : index
    %41 = vector.load %arg4[%c0_25, %c0_26] : memref<32x128xbf16, #tpu.memory_space<vmem>>, vector<32x128xbf16>
    %cst_27 = arith.constant dense<0.000000e+00> : vector<256x128xf32>
    %42 = tpu.matmul %40, %41, %cst_27 {dimension_numbers = #tpu.dot_dimension_numbers<[1], [0], [0], [1], [0, 0, 1, 1], [], []>} : vector<256x32xbf16>, vector<32x128xbf16>, vector<256x128xf32> -> vector<256x128xf32>
    %c0_28 = arith.constant 0 : index
    %c0_29 = arith.constant 0 : index
    %43 = vector.load %arg5[%c0_28, %c0_29] : memref<1x128xf32, #tpu.memory_space<vmem>>, vector<1x128xf32>
    %44 = vector.broadcast %43 : vector<1x128xf32> to vector<256x128xf32>
    %45 = arith.addf %42, %44 : vector<256x128xf32>
    %46 = arith.negf %45 : vector<256x128xf32>
    %47 = math.exp %46 : vector<256x128xf32>
    %cst_30 = arith.constant 1.000000e+00 : f32
    %48 = vector.broadcast %cst_30 : f32 to vector<256x128xf32>
    %49 = arith.addf %48, %47 : vector<256x128xf32>
    %50 = arith.divf %48, %49 : vector<256x128xf32>
    %51 = arith.mulf %45, %50 : vector<256x128xf32>
    %52 = vector.shape_cast %51 : vector<256x128xf32> to vector<16x16x128xf32>
    %cst_31 = arith.constant 0.000000e+00 : f32
    %53 = vector.broadcast %cst_31 : f32 to vector<8x16x128xf32>
    %54 = tpu.concatenate %53, %52, %53 in 0 : vector<8x16x128xf32>, vector<16x16x128xf32>, vector<8x16x128xf32> -> vector<32x16x128xf32>
    %cst_32 = arith.constant 0.000000e+00 : f32
    %55 = vector.broadcast %cst_32 : f32 to vector<32x8x128xf32>
    %56 = tpu.concatenate %55, %54, %55 in 1 : vector<32x8x128xf32>, vector<32x16x128xf32>, vector<32x8x128xf32> -> vector<32x32x128xf32>
    %c0_33 = arith.constant 0 : index
    %c0_34 = arith.constant 0 : index
    %c0_35 = arith.constant 0 : index
    %57 = vector.load %arg6[%c0_33, %c0_34, %c0_35] : memref<3x3x128xf32, #tpu.memory_space<vmem>>, vector<3x3x128xf32>
    %cst_36 = arith.constant 0.000000e+00 : f32
    %58 = vector.broadcast %cst_36 : f32 to vector<16x16x128xf32>
    %59 = vector.extract_strided_slice %56 {offsets = [7, 7, 0], sizes = [16, 16, 128], strides = [1, 1, 1]} : vector<32x32x128xf32> to vector<16x16x128xf32>
    %60 = vector.extract_strided_slice %57 {offsets = [0, 0, 0], sizes = [1, 1, 128], strides = [1, 1, 1]} : vector<3x3x128xf32> to vector<1x1x128xf32>
    %61 = vector.shape_cast %60 : vector<1x1x128xf32> to vector<128xf32>
    %62 = vector.shape_cast %61 : vector<128xf32> to vector<1x1x128xf32>
    %63 = vector.broadcast %62 : vector<1x1x128xf32> to vector<16x16x128xf32>
    %64 = arith.mulf %59, %63 : vector<16x16x128xf32>
    %65 = arith.addf %58, %64 : vector<16x16x128xf32>
    %66 = vector.extract_strided_slice %56 {offsets = [7, 8, 0], sizes = [16, 16, 128], strides = [1, 1, 1]} : vector<32x32x128xf32> to vector<16x16x128xf32>
    %67 = vector.extract_strided_slice %57 {offsets = [0, 1, 0], sizes = [1, 1, 128], strides = [1, 1, 1]} : vector<3x3x128xf32> to vector<1x1x128xf32>
    %68 = vector.shape_cast %67 : vector<1x1x128xf32> to vector<128xf32>
    %69 = vector.shape_cast %68 : vector<128xf32> to vector<1x1x128xf32>
    %70 = vector.broadcast %69 : vector<1x1x128xf32> to vector<16x16x128xf32>
    %71 = arith.mulf %66, %70 : vector<16x16x128xf32>
    %72 = arith.addf %65, %71 : vector<16x16x128xf32>
    %73 = vector.extract_strided_slice %56 {offsets = [7, 9, 0], sizes = [16, 16, 128], strides = [1, 1, 1]} : vector<32x32x128xf32> to vector<16x16x128xf32>
    %74 = vector.extract_strided_slice %57 {offsets = [0, 2, 0], sizes = [1, 1, 128], strides = [1, 1, 1]} : vector<3x3x128xf32> to vector<1x1x128xf32>
    %75 = vector.shape_cast %74 : vector<1x1x128xf32> to vector<128xf32>
    %76 = vector.shape_cast %75 : vector<128xf32> to vector<1x1x128xf32>
    %77 = vector.broadcast %76 : vector<1x1x128xf32> to vector<16x16x128xf32>
    %78 = arith.mulf %73, %77 : vector<16x16x128xf32>
    %79 = arith.addf %72, %78 : vector<16x16x128xf32>
    %80 = vector.extract_strided_slice %56 {offsets = [8, 7, 0], sizes = [16, 16, 128], strides = [1, 1, 1]} : vector<32x32x128xf32> to vector<16x16x128xf32>
    %81 = vector.extract_strided_slice %57 {offsets = [1, 0, 0], sizes = [1, 1, 128], strides = [1, 1, 1]} : vector<3x3x128xf32> to vector<1x1x128xf32>
    %82 = vector.shape_cast %81 : vector<1x1x128xf32> to vector<128xf32>
    %83 = vector.shape_cast %82 : vector<128xf32> to vector<1x1x128xf32>
    %84 = vector.broadcast %83 : vector<1x1x128xf32> to vector<16x16x128xf32>
    %85 = arith.mulf %80, %84 : vector<16x16x128xf32>
    %86 = arith.addf %79, %85 : vector<16x16x128xf32>
    %87 = vector.extract_strided_slice %56 {offsets = [8, 8, 0], sizes = [16, 16, 128], strides = [1, 1, 1]} : vector<32x32x128xf32> to vector<16x16x128xf32>
    %88 = vector.extract_strided_slice %57 {offsets = [1, 1, 0], sizes = [1, 1, 128], strides = [1, 1, 1]} : vector<3x3x128xf32> to vector<1x1x128xf32>
    %89 = vector.shape_cast %88 : vector<1x1x128xf32> to vector<128xf32>
    %90 = vector.shape_cast %89 : vector<128xf32> to vector<1x1x128xf32>
    %91 = vector.broadcast %90 : vector<1x1x128xf32> to vector<16x16x128xf32>
    %92 = arith.mulf %87, %91 : vector<16x16x128xf32>
    %93 = arith.addf %86, %92 : vector<16x16x128xf32>
    %94 = vector.extract_strided_slice %56 {offsets = [8, 9, 0], sizes = [16, 16, 128], strides = [1, 1, 1]} : vector<32x32x128xf32> to vector<16x16x128xf32>
    %95 = vector.extract_strided_slice %57 {offsets = [1, 2, 0], sizes = [1, 1, 128], strides = [1, 1, 1]} : vector<3x3x128xf32> to vector<1x1x128xf32>
    %96 = vector.shape_cast %95 : vector<1x1x128xf32> to vector<128xf32>
    %97 = vector.shape_cast %96 : vector<128xf32> to vector<1x1x128xf32>
    %98 = vector.broadcast %97 : vector<1x1x128xf32> to vector<16x16x128xf32>
    %99 = arith.mulf %94, %98 : vector<16x16x128xf32>
    %100 = arith.addf %93, %99 : vector<16x16x128xf32>
    %101 = vector.extract_strided_slice %56 {offsets = [9, 7, 0], sizes = [16, 16, 128], strides = [1, 1, 1]} : vector<32x32x128xf32> to vector<16x16x128xf32>
    %102 = vector.extract_strided_slice %57 {offsets = [2, 0, 0], sizes = [1, 1, 128], strides = [1, 1, 1]} : vector<3x3x128xf32> to vector<1x1x128xf32>
    %103 = vector.shape_cast %102 : vector<1x1x128xf32> to vector<128xf32>
    %104 = vector.shape_cast %103 : vector<128xf32> to vector<1x1x128xf32>
    %105 = vector.broadcast %104 : vector<1x1x128xf32> to vector<16x16x128xf32>
    %106 = arith.mulf %101, %105 : vector<16x16x128xf32>
    %107 = arith.addf %100, %106 : vector<16x16x128xf32>
    %108 = vector.extract_strided_slice %56 {offsets = [9, 8, 0], sizes = [16, 16, 128], strides = [1, 1, 1]} : vector<32x32x128xf32> to vector<16x16x128xf32>
    %109 = vector.extract_strided_slice %57 {offsets = [2, 1, 0], sizes = [1, 1, 128], strides = [1, 1, 1]} : vector<3x3x128xf32> to vector<1x1x128xf32>
    %110 = vector.shape_cast %109 : vector<1x1x128xf32> to vector<128xf32>
    %111 = vector.shape_cast %110 : vector<128xf32> to vector<1x1x128xf32>
    %112 = vector.broadcast %111 : vector<1x1x128xf32> to vector<16x16x128xf32>
    %113 = arith.mulf %108, %112 : vector<16x16x128xf32>
    %114 = arith.addf %107, %113 : vector<16x16x128xf32>
    %115 = vector.extract_strided_slice %56 {offsets = [9, 9, 0], sizes = [16, 16, 128], strides = [1, 1, 1]} : vector<32x32x128xf32> to vector<16x16x128xf32>
    %116 = vector.extract_strided_slice %57 {offsets = [2, 2, 0], sizes = [1, 1, 128], strides = [1, 1, 1]} : vector<3x3x128xf32> to vector<1x1x128xf32>
    %117 = vector.shape_cast %116 : vector<1x1x128xf32> to vector<128xf32>
    %118 = vector.shape_cast %117 : vector<128xf32> to vector<1x1x128xf32>
    %119 = vector.broadcast %118 : vector<1x1x128xf32> to vector<16x16x128xf32>
    %120 = arith.mulf %115, %119 : vector<16x16x128xf32>
    %121 = arith.addf %114, %120 : vector<16x16x128xf32>
    %c0_37 = arith.constant 0 : index
    %c0_38 = arith.constant 0 : index
    %c0_39 = arith.constant 0 : index
    %122 = vector.load %arg7[%c0_37, %c0_38, %c0_39] : memref<1x1x128xf32, #tpu.memory_space<vmem>>, vector<1x1x128xf32>
    %123 = vector.broadcast %122 : vector<1x1x128xf32> to vector<16x16x128xf32>
    %124 = arith.addf %121, %123 : vector<16x16x128xf32>
    %125 = arith.negf %124 : vector<16x16x128xf32>
    %126 = math.exp %125 : vector<16x16x128xf32>
    %cst_40 = arith.constant 1.000000e+00 : f32
    %127 = vector.broadcast %cst_40 : f32 to vector<16x16x128xf32>
    %128 = arith.addf %127, %126 : vector<16x16x128xf32>
    %129 = arith.divf %127, %128 : vector<16x16x128xf32>
    %130 = arith.mulf %124, %129 : vector<16x16x128xf32>
    %131 = vector.shape_cast %130 : vector<16x16x128xf32> to vector<256x128xf32>
    %cst_41 = arith.constant dense<0.000000e+00> : vector<128xf32>
    %132 = vector.multi_reduction <add>, %131, %cst_41 [0] : vector<256x128xf32> to vector<128xf32>
    %133 = vector.shape_cast %132 : vector<128xf32> to vector<1x128xf32>
    %cst_42 = arith.constant 2.560000e+02 : f32
    %134 = vector.broadcast %cst_42 : f32 to vector<1x128xf32>
    %135 = arith.divf %133, %134 : vector<1x128xf32>
    %c0_43 = arith.constant 0 : index
    %c0_44 = arith.constant 0 : index
    %136 = vector.load %arg8[%c0_43, %c0_44] : memref<128x8xf32, #tpu.memory_space<vmem>>, vector<128x8xf32>
    %cst_45 = arith.constant dense<0.000000e+00> : vector<1x8xf32>
    %137 = tpu.matmul %135, %136, %cst_45 {dimension_numbers = #tpu.dot_dimension_numbers<[1], [0], [0], [1], [0, 0, 1, 1], [], []>} : vector<1x128xf32>, vector<128x8xf32>, vector<1x8xf32> -> vector<1x8xf32>
    %c0_46 = arith.constant 0 : index
    %c0_47 = arith.constant 0 : index
    %138 = vector.load %arg9[%c0_46, %c0_47] : memref<1x8xf32, #tpu.memory_space<vmem>>, vector<1x8xf32>
    %139 = arith.addf %137, %138 : vector<1x8xf32>
    %140 = arith.negf %139 : vector<1x8xf32>
    %141 = math.exp %140 : vector<1x8xf32>
    %cst_48 = arith.constant 1.000000e+00 : f32
    %142 = vector.broadcast %cst_48 : f32 to vector<1x8xf32>
    %143 = arith.addf %142, %141 : vector<1x8xf32>
    %144 = arith.divf %142, %143 : vector<1x8xf32>
    %145 = arith.mulf %139, %144 : vector<1x8xf32>
    %c0_49 = arith.constant 0 : index
    %c0_50 = arith.constant 0 : index
    %146 = vector.load %arg10[%c0_49, %c0_50] : memref<8x128xf32, #tpu.memory_space<vmem>>, vector<8x128xf32>
    %cst_51 = arith.constant dense<0.000000e+00> : vector<1x128xf32>
    %147 = tpu.matmul %145, %146, %cst_51 {dimension_numbers = #tpu.dot_dimension_numbers<[1], [0], [0], [1], [0, 0, 1, 1], [], []>} : vector<1x8xf32>, vector<8x128xf32>, vector<1x128xf32> -> vector<1x128xf32>
    %c0_52 = arith.constant 0 : index
    %c0_53 = arith.constant 0 : index
    %148 = vector.load %arg11[%c0_52, %c0_53] : memref<1x128xf32, #tpu.memory_space<vmem>>, vector<1x128xf32>
    %149 = arith.addf %147, %148 : vector<1x128xf32>
    %150 = arith.negf %149 : vector<1x128xf32>
    %151 = math.exp %150 : vector<1x128xf32>
    %cst_54 = arith.constant 1.000000e+00 : f32
    %152 = vector.broadcast %cst_54 : f32 to vector<1x128xf32>
    %153 = arith.addf %152, %151 : vector<1x128xf32>
    %154 = arith.divf %152, %153 : vector<1x128xf32>
    %155 = vector.broadcast %154 : vector<1x128xf32> to vector<256x128xf32>
    %156 = arith.mulf %131, %155 : vector<256x128xf32>
    %157 = arith.truncf %156 : vector<256x128xf32> to vector<256x128xbf16>
    %c0_55 = arith.constant 0 : index
    %c0_56 = arith.constant 0 : index
    %158 = vector.load %arg12[%c0_55, %c0_56] : memref<128x32xbf16, #tpu.memory_space<vmem>>, vector<128x32xbf16>
    %cst_57 = arith.constant dense<0.000000e+00> : vector<256x32xf32>
    %159 = tpu.matmul %157, %158, %cst_57 {dimension_numbers = #tpu.dot_dimension_numbers<[1], [0], [0], [1], [0, 0, 1, 1], [], []>} : vector<256x128xbf16>, vector<128x32xbf16>, vector<256x32xf32> -> vector<256x32xf32>
    %c0_58 = arith.constant 0 : index
    %c0_59 = arith.constant 0 : index
    %160 = vector.load %arg13[%c0_58, %c0_59] : memref<1x32xf32, #tpu.memory_space<vmem>>, vector<1x32xf32>
    %161 = vector.broadcast %160 : vector<1x32xf32> to vector<256x32xf32>
    %162 = arith.addf %159, %161 : vector<256x32xf32>
    %163 = arith.addf %162, %39 : vector<256x32xf32>
    %164 = arith.truncf %163 : vector<256x32xf32> to vector<256x32xbf16>
    %c0_60 = arith.constant 0 : index
    %c0_61 = arith.constant 0 : index
    %165 = vector.load %arg14[%c0_60, %c0_61] : memref<32x256xbf16, #tpu.memory_space<vmem>>, vector<32x256xbf16>
    %cst_62 = arith.constant dense<0.000000e+00> : vector<256x256xf32>
    %166 = tpu.matmul %164, %165, %cst_62 {dimension_numbers = #tpu.dot_dimension_numbers<[1], [0], [0], [1], [0, 0, 1, 1], [], []>} : vector<256x32xbf16>, vector<32x256xbf16>, vector<256x256xf32> -> vector<256x256xf32>
    %c0_63 = arith.constant 0 : index
    %c0_64 = arith.constant 0 : index
    %167 = vector.load %arg15[%c0_63, %c0_64] : memref<1x256xf32, #tpu.memory_space<vmem>>, vector<1x256xf32>
    %168 = vector.broadcast %167 : vector<1x256xf32> to vector<256x256xf32>
    %169 = arith.addf %166, %168 : vector<256x256xf32>
    %170 = arith.negf %169 : vector<256x256xf32>
    %171 = math.exp %170 : vector<256x256xf32>
    %cst_65 = arith.constant 1.000000e+00 : f32
    %172 = vector.broadcast %cst_65 : f32 to vector<256x256xf32>
    %173 = arith.addf %172, %171 : vector<256x256xf32>
    %174 = arith.divf %172, %173 : vector<256x256xf32>
    %175 = arith.mulf %169, %174 : vector<256x256xf32>
    %cst_66 = arith.constant dense<0.000000e+00> : vector<256xf32>
    %176 = vector.multi_reduction <add>, %175, %cst_66 [0] : vector<256x256xf32> to vector<256xf32>
    %177 = vector.shape_cast %176 : vector<256xf32> to vector<1x256xf32>
    %cst_67 = arith.constant 2.560000e+02 : f32
    %178 = vector.broadcast %cst_67 : f32 to vector<1x256xf32>
    %179 = arith.divf %177, %178 : vector<1x256xf32>
    %180 = arith.truncf %179 : vector<1x256xf32> to vector<1x256xbf16>
    %c0_68 = arith.constant 0 : index
    %c0_69 = arith.constant 0 : index
    %181 = vector.load %arg16[%c0_68, %c0_69] : memref<256x128xbf16, #tpu.memory_space<vmem>>, vector<256x128xbf16>
    %cst_70 = arith.constant dense<0.000000e+00> : vector<1x128xf32>
    %182 = tpu.matmul %180, %181, %cst_70 {dimension_numbers = #tpu.dot_dimension_numbers<[1], [0], [0], [1], [0, 0, 1, 1], [], []>} : vector<1x256xbf16>, vector<256x128xbf16>, vector<1x128xf32> -> vector<1x128xf32>
    %c0_71 = arith.constant 0 : index
    %c0_72 = arith.constant 0 : index
    %183 = vector.load %arg17[%c0_71, %c0_72] : memref<1x128xf32, #tpu.memory_space<vmem>>, vector<1x128xf32>
    %184 = arith.addf %182, %183 : vector<1x128xf32>
    %c0_73 = arith.constant 0 : index
    %c0_74 = arith.constant 0 : index
    %c0_75 = arith.constant 0 : index
    %185 = vector.load %arg18[%c0_73, %c0_74, %c0_75] : memref<1x1x128xf32, #tpu.memory_space<vmem>>, vector<1x1x128xf32>
    %186 = vector.shape_cast %185 : vector<1x1x128xf32> to vector<1x128xf32>
    %187 = vector.shape_cast %184 : vector<1x128xf32> to vector<1x1x128xf32>
    tpu.vector_store %arg18[%c0_73, %c0_74, %c0_75], %187 {strides = array<i32>} : memref<1x1x128xf32, #tpu.memory_space<vmem>>, vector<1x1x128xf32>,
    return
  }
  func.func @transform_0(%arg0: i32) -> (i32, i32, i32, i32) {
    %c0_i32 = arith.constant 0 : i32
    %c0_i32_0 = arith.constant 0 : i32
    %c0_i32_1 = arith.constant 0 : i32
    %c0_i32_2 = arith.constant 0 : i32
    return %arg0, %c0_i32, %c0_i32_0, %c0_i32_1 : i32, i32, i32, i32
  }
  func.func @transform_1(%arg0: i32) -> (i32, i32, i32, i32) {
    %c0_i32 = arith.constant 0 : i32
    %c0_i32_0 = arith.constant 0 : i32
    %c0_i32_1 = arith.constant 0 : i32
    %c0_i32_2 = arith.constant 0 : i32
    %c0_i32_3 = arith.constant 0 : i32
    return %c0_i32, %c0_i32_0, %c0_i32_1, %c0_i32_2 : i32, i32, i32, i32
  }
  func.func @transform_2(%arg0: i32) -> (i32, i32) {
    %c0_i32 = arith.constant 0 : i32
    %c0_i32_0 = arith.constant 0 : i32
    %c0_i32_1 = arith.constant 0 : i32
    return %c0_i32, %c0_i32_0 : i32, i32
  }
  func.func @transform_3(%arg0: i32) -> (i32, i32) {
    %c0_i32 = arith.constant 0 : i32
    %c0_i32_0 = arith.constant 0 : i32
    %c0_i32_1 = arith.constant 0 : i32
    return %c0_i32, %c0_i32_0 : i32, i32
  }
  func.func @transform_4(%arg0: i32) -> (i32, i32) {
    %c0_i32 = arith.constant 0 : i32
    %c0_i32_0 = arith.constant 0 : i32
    %c0_i32_1 = arith.constant 0 : i32
    return %c0_i32, %c0_i32_0 : i32, i32
  }
  func.func @transform_5(%arg0: i32) -> (i32, i32, i32) {
    %c0_i32 = arith.constant 0 : i32
    %c0_i32_0 = arith.constant 0 : i32
    %c0_i32_1 = arith.constant 0 : i32
    %c0_i32_2 = arith.constant 0 : i32
    return %c0_i32, %c0_i32_0, %c0_i32_1 : i32, i32, i32
  }
  func.func @transform_6(%arg0: i32) -> (i32, i32, i32) {
    %c0_i32 = arith.constant 0 : i32
    %c0_i32_0 = arith.constant 0 : i32
    %c0_i32_1 = arith.constant 0 : i32
    %c0_i32_2 = arith.constant 0 : i32
    return %c0_i32, %c0_i32_0, %c0_i32_1 : i32, i32, i32
  }
  func.func @transform_7(%arg0: i32) -> (i32, i32) {
    %c0_i32 = arith.constant 0 : i32
    %c0_i32_0 = arith.constant 0 : i32
    %c0_i32_1 = arith.constant 0 : i32
    return %c0_i32, %c0_i32_0 : i32, i32
  }
  func.func @transform_8(%arg0: i32) -> (i32, i32) {
    %c0_i32 = arith.constant 0 : i32
    %c0_i32_0 = arith.constant 0 : i32
    %c0_i32_1 = arith.constant 0 : i32
    return %c0_i32, %c0_i32_0 : i32, i32
  }
  func.func @transform_9(%arg0: i32) -> (i32, i32) {
    %c0_i32 = arith.constant 0 : i32
    %c0_i32_0 = arith.constant 0 : i32
    %c0_i32_1 = arith.constant 0 : i32
    return %c0_i32, %c0_i32_0 : i32, i32
  }
  func.func @transform_10(%arg0: i32) -> (i32, i32) {
    %c0_i32 = arith.constant 0 : i32
    %c0_i32_0 = arith.constant 0 : i32
    %c0_i32_1 = arith.constant 0 : i32
    return %c0_i32, %c0_i32_0 : i32, i32
  }
  func.func @transform_11(%arg0: i32) -> (i32, i32) {
    %c0_i32 = arith.constant 0 : i32
    %c0_i32_0 = arith.constant 0 : i32
    %c0_i32_1 = arith.constant 0 : i32
    return %c0_i32, %c0_i32_0 : i32, i32
  }
  func.func @transform_12(%arg0: i32) -> (i32, i32) {
    %c0_i32 = arith.constant 0 : i32
    %c0_i32_0 = arith.constant 0 : i32
    %c0_i32_1 = arith.constant 0 : i32
    return %c0_i32, %c0_i32_0 : i32, i32
  }
  func.func @transform_13(%arg0: i32) -> (i32, i32) {
    %c0_i32 = arith.constant 0 : i32
    %c0_i32_0 = arith.constant 0 : i32
    %c0_i32_1 = arith.constant 0 : i32
    return %c0_i32, %c0_i32_0 : i32, i32
  }
  func.func @transform_14(%arg0: i32) -> (i32, i32) {
    %c0_i32 = arith.constant 0 : i32
    %c0_i32_0 = arith.constant 0 : i32
    %c0_i32_1 = arith.constant 0 : i32
    return %c0_i32, %c0_i32_0 : i32, i32
  }
  func.func @transform_15(%arg0: i32) -> (i32, i32) {
    %c0_i32 = arith.constant 0 : i32
    %c0_i32_0 = arith.constant 0 : i32
    %c0_i32_1 = arith.constant 0 : i32
    return %c0_i32, %c0_i32_0 : i32, i32
  }
  func.func @transform_16(%arg0: i32) -> (i32, i32) {
    %c0_i32 = arith.constant 0 : i32
    %c0_i32_0 = arith.constant 0 : i32
    %c0_i32_1 = arith.constant 0 : i32
    return %c0_i32, %c0_i32_0 : i32, i32
  }
  func.func @transform_17(%arg0: i32) -> (i32, i32, i32) {
    %c0_i32 = arith.constant 0 : i32
    %c0_i32_0 = arith.constant 0 : i32
    %c0_i32_1 = arith.constant 0 : i32
    return %arg0, %c0_i32, %c0_i32_0 : i32, i32, i32
  }
}

</mosaic_0001>

<bundles_post_ra>
// kernel: efficientnet_forward.1
= control target key start
LH: loop header
LB: loop body
LE: loop exit
PB: predicated region body
PF: predicated region fallthrough
CT: control target
= control target key end

     0   :  { %s12018_s0 = inlined_call_operand.vmem [shape: f32[2,17,17,12], index: 0, kind: input, shape index: {}]   ;;  %s12019_s1 = inlined_call_operand.vmem [shape: bf16[2,2,12,32], index: 1, kind: input, shape index: {}]   ;;  %s12020_s2 = inlined_call_operand.vmem [shape: f32[1,32], index: 2, kind: input, shape index: {}]   ;;  %s12021_s3 = inlined_call_operand.vmem [shape: bf16[32,128], index: 3, kind: input, shape index: {}]   ;;  %s12022_s4 = inlined_call_operand.vmem [shape: f32[1,128], index: 4, kind: input, shape index: {}]   ;;  %s12023_s5 = inlined_call_operand.vmem [shape: f32[3,3,128], index: 5, kind: input, shape index: {}]   ;;  %s12024_s6 = inlined_call_operand.vmem [shape: f32[1,1,128], index: 6, kind: input, shape index: {}]   ;;  %s12025_s7 = inlined_call_operand.vmem [shape: f32[128,8], index: 7, kind: input, shape index: {}]   ;;  %s12026_s8 = inlined_call_operand.vmem [shape: f32[1,8], index: 8, kind: input, shape index: {}]   ;;  %s12027_s9 = inlined_call_operand.vmem [shape: f32[8,128], index: 9, kind: input, shape index: {}]   ;;  %s12028_s10 = inlined_call_operand.vmem [shape: f32[1,128], index: 10, kind: input, shape index: {}]   ;;  %s12029_s11 = inlined_call_operand.vmem [shape: bf16[128,32], index: 11, kind: input, shape index: {}]   ;;  %s12030_s12 = inlined_call_operand.vmem [shape: f32[1,32], index: 12, kind: input, shape index: {}]   ;;  %s12031_s13 = inlined_call_operand.vmem [shape: bf16[32,256], index: 13, kind: input, shape index: {}]   ;;  %s12032_s14 = inlined_call_operand.vmem [shape: f32[1,256], index: 14, kind: input, shape index: {}]   ;;  %s12033_s15 = inlined_call_operand.vmem [shape: bf16[256,128], index: 15, kind: input, shape index: {}]   ;;  %s12034_s16 = inlined_call_operand.vmem [shape: f32[1,128], index: 16, kind: input, shape index: {}]   ;;  %s12035_s17 = inlined_call_operand.hbm [shape: f32[2,1,128], index: 17, kind: output, shape index: {}]  }
   0x1   :  { %12243 = sst [smem:[#allocation98_spill]] %s12018_s0 }
   0x2   :  { %12244 = sst [smem:[#allocation99_spill]] %s12019_s1 }
   0x3   :  { %12245 = sst [smem:[#allocation100_spill]] %s12020_s2 }
   0x4   :  { %12246 = sst [smem:[#allocation101_spill]] %s12021_s3 }
   0x5   :  { %12247 = sst [smem:[#allocation102_spill]] %s12022_s4 }
   0x6   :  { %22 = vsyncpa [#allocation3], 0 }
   0x7   :  { %24 = vsyncpa [#allocation3 + $0x1], 0  ;;  %s7891_s24 = smov 0   ;;  %s7893_s25 = smov 0  }
   0x8   :  { %s7895_s26 = smov 0   ;;  %s7897_s27 = smov 0  }
   0x9 LB: > { %12248 = sst [smem:[#allocation5_spill]] %s7790_s26  ;;  %s7912_s28 = sadd.s32 4294967295, %s7794_s27   ;;  %s7794_s27 = sphi %s7897_s27, %s12793_s27   ;;  %s7790_s26 = sphi %s7895_s26, %s12795_s26   ;;  %s7786_s25 = sphi %s7893_s25, %s12797_s25   ;;  %s7782_s24 = sphi %s7891_s24, %s12796_s24  }
   0xa   : > { %s6075_s29 = sadd.s32 4294967294, %s7794_s27   ;;  %s7916_s0 = sadd.s32 1, %s7794_s27  }
   0xb   : > { %12249 = sst [smem:[#allocation6_spill]] %s7916_s0  ;;  %s399_s30 = sadd.s32 1, %s7790_s26 }
   0xc   : > { %s396_s18 = ssub.s32 %s7794_s27, %s7916_s0  ;;  %p409_p0 = scmp.ne.s32.totalorder %s7790_s26, %s7786_s25 }
   0xd   : > { %p397_p1 = scmp.eq.s32.totalorder %s396_s18, 0  ;;  %p410_p2 = scmp.eq.s32.totalorder %s7912_s28, 1 }
   0xe   : > { %p415_p3 = scmp.ne.s32.totalorder %s7786_s25, %s7782_s24  ;;  %p416_p4 = scmp.eq.s32.totalorder %s6075_s29, 1 }
   0xf   : > { %s7927_s19 = scalar_select %p397_p1, %s7790_s26, %s399_s30  }
  0x10   : > { %p7929_p5 = por %p410_p2, %p409_p0  ;;  %p7933_p6 = por %p416_p4, %p415_p3 }
  0x11   : > { %12250 = sst [smem:[#allocation7_spill]] %s7927_s19  ;;  %p6078_p7 = scmp.ge.s32.totalorder %s7794_s27, 1 }
  0x12   : > { %p490_p8 = scmp.lt.s32.totalorder %s7794_s27, 3 }
  0x14   : > { %p491_p9 = pnand %p6078_p7, %p490_p8 }
  0x16   : > { %494 = sbr.rel (%p491_p9) target bundleno = 2507 (0x9cb), region = 88 }
  0x1d   : > { %s12253_s23 = sld [smem:[#allocation99_spill]]  ;;  %vm850_vm0 = vcmask 1045504   ;;  %p541_p10 = scmp.lt.s32.totalorder %s7912_s28, 1  ;;  %vm664_vm1 = vcmask 1046528   ;;  %vm801_vm2 = vcmask 97280   ;;  %vm1960_vm3 = vcmask 261120  }
  0x1e   : > { %s12254_s26 = sld [smem:[#allocation98_spill]]  ;;  %s12255_s3 = sld [smem:[#allocation101_spill]]  ;;  %vm4374_vm4 = vcmask 1040384   ;;  %vm7797_vm5 = vmmov 0   ;;  %vm4622_vm6 = vcmask 64512  }
  0x1f   : > { %s542_s18 = scalar_select %p541_p10, %s7912_s28, 1 }
  0x20   : > { %s12256_s2 = sld [smem:[#allocation100_spill]]  ;;  %s12289_s4 = sld [smem:[#allocation102_spill]] }
  0x21   : > { %s6937_s19 = smul.u32 408, %s542_s18  ;;  %s539_s18 = sand.u32 1, %s7786_s25  }
  0x22   : > { %s6399_s22 = sshll.u32 %s7912_s28, 4  ;;  %s6008_s21 = scalar_lea.sflag [#allocation3], %s539_s18 }
  0x23   : > { %v6981_v0 = vld [vmem:[%s12253_s23 + $0x8] sm:$0x3f]   ;;  %v6982_v2 = vld [vmem:[%s12253_s23] sm:$0x3f]   ;;  %v8009_v42 = vld [vmem:[%s12253_s23 + $0x10] sm:$0x3f]  }
  0x24   : > { %6933 = vmatprep.subr.msk.bf16.mxu0 %vm850_vm0, %v6981_v0  ;;  %v852_v1 = vsel %vm850_vm0, %v6981_v0, 0  ;;  %s7953_s0 = scalar_lea.vmem %s12254_s26, %s6937_s19  ;;  %v1069_v6 = vsel %vm850_vm0, %v6982_v2, 0  ;;  %s540_s26 = scalar_lea.vmem [#allocation2], %s539_s18 }
  0x25   : > { %6554 = vmatpush3.bf16.msra.mxu0 %v852_v1  ;;  %v7956_v3 = vld [vmem:[%s7953_s0] sm:$0xff]  ;;  %v7959_v4 = vld [vmem:[%s7953_s0 + $0x8] sm:$0xff]  ;;  %v549_v5 = vld [vmem:[%s7953_s0 + $0x10] sm:$0x1]  ;;  %s6020_s19 = sshll.u32 %s540_s26, 4  ;;  %s7800_s28 = smov [#allocation2]   ;;  %s11978_s19 = int_to_ptr.vmem [resolvable:$true] %s6020_s19 }
  0x26   : > { %6934 = vmatprep.subr.msk.bf16.mxu0 %vm850_vm0, %v6982_v2  ;;  %v665_v7 = vrot.slane %v7956_v3, 1  ;;  %v666_v8 = vrot.slane %v7959_v4, 1  ;;  %v668_v9 = vrot.slane %v549_v5, 1  ;;  %v550_v10 = vld [vmem:[%s7953_s0 + $0x18] sm:$0xff]  ;;  %v551_v11 = vld [vmem:[%s7953_s0 + $0x20] sm:$0xff]  ;;  %v7968_v12 = vld [vmem:[%s7953_s0 + $0x30] sm:$0xff] }
  0x27   : > { %v552_v13 = vld [vmem:[%s7953_s0 + $0x28] sm:$0x1]  ;;  %v7971_v14 = vpack.c.bf16 %v551_v11, %v550_v10  ;;  %v670_v15 = vrot.slane %v550_v10, 1  ;;  %v671_v16 = vrot.slane %v551_v11, 1  ;;  %v7974_v17 = vld [vmem:[%s7953_s0 + $0x38] sm:$0xff]  ;;  %v675_v18 = vrot.slane %v7968_v12, 1 }
  0x28   : > { %v667_v19 = vsel %vm664_vm1, %v665_v7, %v666_v8  ;;  %v669_v20 = vsel %vm664_vm1, %v666_v8, %v668_v9  ;;  %v673_v21 = vrot.slane %v552_v13, 1  ;;  %v555_v22 = vld [vmem:[%s7953_s0 + $0x40] sm:$0x1]  ;;  %v676_v23 = vrot.slane %v7974_v17, 1  ;;  %v7982_v24 = vld [vmem:[%s7953_s0 + $0x48] sm:$0xff]  ;;  %v7985_v25 = vld [vmem:[%s7953_s0 + $0x50] sm:$0xff] }
  0x29   : > { %v777_v26 = vpack.c.bf16 %v669_v20, %v667_v19  ;;  %v672_v27 = vsel %vm664_vm1, %v670_v15, %v671_v16  ;;  %v678_v28 = vrot.slane %v555_v22, 1  ;;  %v558_v29 = vld [vmem:[%s7953_s0 + $0x58] sm:$0x1]  ;;  %v680_v30 = vrot.slane %v7982_v24, 1  ;;  %v7991_v31 = vld [vmem:[%s7953_s0 + $0x60] sm:$0xff]  ;;  %v7994_v32 = vld [vmem:[%s7953_s0 + $0x68] sm:$0xff] }
  0x2a   : > { %v674_v33 = vsel %vm664_vm1, %v671_v16, %v673_v21  ;;  %v677_v34 = vsel %vm664_vm1, %v675_v18, %v676_v23  ;;  %v681_v35 = vrot.slane %v7985_v25, 1  ;;  %v683_v36 = vrot.slane %v558_v29, 1  ;;  %v561_v37 = vld [vmem:[%s7953_s0 + $0x70] sm:$0x1]  ;;  %v8022_v49 = vld [vmem:[%s7953_s0 + $0x78] sm:$0xff]  ;;  %v8025_v50 = vld [vmem:[%s7953_s0 + $0x80] sm:$0xff] }
  0x2b   : > { %6555 = vmatprep.mubr.msk.bf16.mxu0 %vm801_vm2, %v777_v26  ;;  %v8001_v38 = vpack.c.bf16 %v674_v33, %v672_v27  ;;  %v679_v39 = vsel %vm664_vm1, %v676_v23, %v678_v28  ;;  %v685_v40 = vrot.slane %v7991_v31, 1  ;;  %v686_v41 = vrot.slane %v7994_v32, 1  ;;  %v564_v51 = vld [vmem:[%s7953_s0 + $0x88] sm:$0x1]  ;;  %v565_v52 = vld [vmem:[%s7953_s0 + $0x90] sm:$0xff]  ;;  %v566_v53 = vld [vmem:[%s7953_s0 + $0x98] sm:$0xff] }
  0x2c   : > { %v8011_v43 = vpack.c.bf16 %v679_v39, %v677_v34  ;;  %v688_v44 = vrot.slane %v561_v37, 1  ;;  %v682_v45 = vsel %vm664_vm1, %v680_v30, %v681_v35  ;;  %v684_v46 = vsel %vm664_vm1, %v681_v35, %v683_v36  ;;  %v567_v54 = vld [vmem:[%s7953_s0 + $0xa0] sm:$0x1]  ;;  %v568_v63 = vld [vmem:[%s7953_s0 + $0xa8] sm:$0xff]  ;;  %v569_v0 = vld [vmem:[%s7953_s0 + $0xb0] sm:$0xff] }
  0x2d   : > { %6556 = vmatmul.mubr.msk.bf16.vlgmr.msra.gmra.mrb[0].mxu0 %vm801_vm2, %v8001_v38  ;;  %v687_v47 = vsel %vm664_vm1, %v685_v40, %v686_v41  ;;  %v8033_v55 = vpack.c.bf16 %v684_v46, %v682_v45  ;;  %v690_v57 = vrot.slane %v8022_v49, 1  ;;  %v691_v58 = vrot.slane %v8025_v50, 1  ;;  %v570_v1 = vld [vmem:[%s7953_s0 + $0xb8] sm:$0x1]  ;;  %v571_v2 = vld [vmem:[%s7953_s0 + $0xc0] sm:$0xff]  ;;  %v572_v5 = vld [vmem:[%s7953_s0 + $0xc8] sm:$0xff] }
  0x2e   : > { %6588 = vmatpush3.bf16.msra.mxu0 %v1069_v6  ;;  %6559 = vmatprep.mubr.msk.bf16.mxu0 %vm801_vm2, %v8011_v43  ;;  %v689_v48 = vsel %vm664_vm1, %v686_v41, %v688_v44  ;;  %v693_v59 = vrot.slane %v564_v51, 1  ;;  %v695_v60 = vrot.slane %v565_v52, 1  ;;  %v696_v61 = vrot.slane %v566_v53, 1  ;;  %v573_v6 = vld [vmem:[%s7953_s0 + $0xd0] sm:$0x1]  ;;  %v574_v10 = vld [vmem:[%s7953_s0 + $0xd8] sm:$0xff] }
  0x2f   : > { %6935 = vmatprep.subr.msk.bf16.mxu0 %vm850_vm0, %v8009_v42  ;;  %v8035_v56 = vpack.c.bf16 %v689_v48, %v687_v47  ;;  %v698_v62 = vrot.slane %v567_v54, 1  ;;  %v692_v7 = vsel %vm664_vm1, %v690_v57, %v691_v58  ;;  %v700_v9 = vrot.slane %v568_v63, 1  ;;  %v575_v11 = vld [vmem:[%s7953_s0 + $0xe0] sm:$0xff]  ;;  %v576_v19 = vld [vmem:[%s7953_s0 + $0xe8] sm:$0x1]  ;;  %v577_v21 = vld [vmem:[%s7953_s0 + $0xf0] sm:$0xff] }
  0x30   : > { %v694_v8 = vsel %vm664_vm1, %v691_v58, %v693_v59  ;;  %v697_v13 = vsel %vm664_vm1, %v695_v60, %v696_v61  ;;  %v701_v16 = vrot.slane %v569_v0, 1  ;;  %v703_v18 = vrot.slane %v570_v1, 1  ;;  %v578_v36 = vld [vmem:[%s7953_s0 + $0xf8] sm:$0xff]  ;;  %v579_v37 = vld [vmem:[%s7953_s0 + $0x100] sm:$0x1]  ;;  %v580_v39 = vld [vmem:[%s7953_s0 + $0x108] sm:$0xff] }
  0x31   : > { %v699_v15 = vsel %vm664_vm1, %v696_v61, %v698_v62  ;;  %v8056_v20 = vpack.c.bf16 %v694_v8, %v692_v7  ;;  %v705_v23 = vrot.slane %v571_v2, 1  ;;  %v706_v26 = vrot.slane %v572_v5, 1  ;;  %v581_v40 = vld [vmem:[%s7953_s0 + $0x110] sm:$0xff]  ;;  %v583_v47 = vld [vmem:[%s7953_s0 + $0x120] sm:$0xff]  ;;  %v584_v48 = vld [vmem:[%s7953_s0 + $0x128] sm:$0xff] }
  0x32   : > { %v8059_v22 = vpack.c.bf16 %v699_v15, %v697_v13  ;;  %v708_v27 = vrot.slane %v573_v6, 1  ;;  %v702_v28 = vsel %vm664_vm1, %v700_v9, %v701_v16  ;;  %v704_v29 = vsel %vm664_vm1, %v701_v16, %v703_v18  ;;  %v586_v51 = vld [vmem:[%s7953_s0 + $0x138] sm:$0xff]  ;;  %v587_v54 = vld [vmem:[%s7953_s0 + $0x140] sm:$0xff]  ;;  %v589_v57 = vld [vmem:[%s7953_s0 + $0x150] sm:$0xff] }
  0x33   : > { %v710_v30 = vrot.slane %v574_v10, 1  ;;  %v711_v33 = vrot.slane %v575_v11, 1  ;;  %v713_v34 = vrot.slane %v576_v19, 1  ;;  %v715_v35 = vrot.slane %v577_v21, 1  ;;  %v590_v58 = vld [vmem:[%s7953_s0 + $0x158] sm:$0xff]  ;;  %v8089_v59 = vld [vmem:[%s7953_s0 + $0x168] sm:$0xff] }
  0x34   : > { %v8071_v41 = vpack.c.bf16 %v7974_v17, %v7968_v12  ;;  %v8075_v44 = vpack.c.bf16 %v7985_v25, %v7982_v24  ;;  %v8079_v45 = vpack.c.bf16 %v704_v29, %v702_v28  ;;  %v707_v46 = vsel %vm664_vm1, %v705_v23, %v706_v26  ;;  %v8092_v12 = vld [vmem:[%s7953_s0 + $0x170] sm:$0xff] }
  0x35   : > { %6560 = vmatmul.mubr.msk.bf16.gmra.mrb[4].mxu0 %vm801_vm2, %v8033_v55  ;;  %v8096_v17 = vpack.c.bf16 %v7994_v32, %v7991_v31  ;;  %v709_v24 = vsel %vm664_vm1, %v706_v26, %v708_v27  ;;  %v8101_v25 = vpack.c.bf16 %v8025_v50, %v8022_v49  ;;  %v8103_v60 = vpack.c.bf16 %v566_v53, %v565_v52 }
  0x36   : > { %6563 = vmatprep.mubr.msk.bf16.mxu0 %vm801_vm2, %v8035_v56  ;;  %v8105_v61 = vpack.c.bf16 %v569_v0, %v568_v63  ;;  %v8107_v62 = vpack.c.bf16 %v572_v5, %v571_v2  ;;  %v8109_v1 = vpack.c.bf16 %v575_v11, %v574_v10  ;;  %v8111_v6 = vpack.c.bf16 %v578_v36, %v577_v21  ;;  %v582_v63 = vld [vmem:[%s7953_s0 + $0x118] sm:$0x1]  ;;  %v585_v10 = vld [vmem:[%s7953_s0 + $0x130] sm:$0x1] }
  0x37   : > { %v8113_v31 = vpack.c.bf16 %v581_v40, %v580_v39  ;;  %v8115_v32 = vpack.c.bf16 %v584_v48, %v583_v47  ;;  %v8117_v7 = vpack.c.bf16 %v587_v54, %v586_v51  ;;  %v8119_v8 = vpack.c.bf16 %v590_v58, %v589_v57 }
  0x38   : > { %v8123_v49 = vpack.c.bf16 %v8092_v12, %v8089_v59  ;;  %v8125_v50 = vpack.c.bf16 %v709_v24, %v707_v46  ;;  %v716_v52 = vrot.slane %v578_v36, 1  ;;  %v718_v53 = vrot.slane %v579_v37, 1 }
  0x39   : > { %v712_v0 = vsel %vm664_vm1, %v710_v30, %v711_v33  ;;  %v714_v2 = vsel %vm664_vm1, %v711_v33, %v713_v34  ;;  %v720_v15 = vrot.slane %v580_v39, 1  ;;  %v721_v16 = vrot.slane %v581_v40, 1  ;;  %v588_v30 = vld [vmem:[%s7953_s0 + $0x148] sm:$0x1]  ;;  %v591_v33 = vld [vmem:[%s7953_s0 + $0x160] sm:$0x1] }
  0x3a   : > { %v717_v5 = vsel %vm664_vm1, %v715_v35, %v716_v52  ;;  %v719_v9 = vsel %vm664_vm1, %v716_v52, %v718_v53  ;;  %v8137_v11 = vpack.c.bf16 %v714_v2, %v712_v0  ;;  %v723_v18 = vrot.slane %v582_v63, 1 }
  0x3b   : > { %v8139_v13 = vpack.c.bf16 %v719_v9, %v717_v5  ;;  %v725_v19 = vrot.slane %v583_v47, 1  ;;  %v726_v21 = vrot.slane %v584_v48, 1  ;;  %v728_v23 = vrot.slane %v585_v10, 1 }
  0x3c   : > { %v722_v26 = vsel %vm664_vm1, %v720_v15, %v721_v16  ;;  %v724_v27 = vsel %vm664_vm1, %v721_v16, %v723_v18  ;;  %v730_v36 = vrot.slane %v586_v51, 1  ;;  %v731_v37 = vrot.slane %v587_v54, 1  ;;  %v594_v51 = vld [vmem:[%s7953_s0 + $0x178] sm:$0x1] }
  0x3d   : > { %6564 = vmatmul.mubr.msk.bf16.gmra.mrb[8].mxu0 %vm801_vm2, %v8056_v20  ;;  %v727_v28 = vsel %vm664_vm1, %v725_v19, %v726_v21  ;;  %v729_v29 = vsel %vm664_vm1, %v726_v21, %v728_v23  ;;  %v8151_v34 = vpack.c.bf16 %v724_v27, %v722_v26  ;;  %v733_v39 = vrot.slane %v588_v30, 1 }
  0x3e   : > { %6567 = vmatprep.mubr.msk.bf16.mxu0 %vm801_vm2, %v8059_v22  ;;  %v8153_v35 = vpack.c.bf16 %v729_v29, %v727_v28  ;;  %v735_v40 = vrot.slane %v589_v57, 1  ;;  %v736_v46 = vrot.slane %v590_v58, 1  ;;  %v738_v47 = vrot.slane %v591_v33, 1 }
  0x3f   : > { %v732_v48 = vsel %vm664_vm1, %v730_v36, %v731_v37  ;;  %v734_v24 = vsel %vm664_vm1, %v731_v37, %v733_v39  ;;  %v740_v58 = vrot.slane %v8089_v59, 1  ;;  %v741_v63 = vrot.slane %v8092_v12, 1  ;;  %v6984_v12 = vld [vmem:[%s12253_s23 + $0x18] sm:$0x3f]  }
  0x40   : > { %v737_v52 = vsel %vm664_vm1, %v735_v40, %v736_v46  ;;  %v739_v53 = vsel %vm664_vm1, %v736_v46, %v738_v47  ;;  %v8164_v54 = vpack.c.bf16 %v734_v24, %v732_v48  ;;  %v743_v0 = vrot.slane %v594_v51, 1 }
  0x41   : > { %v8166_v57 = vpack.c.bf16 %v739_v53, %v737_v52  ;;  %v742_v2 = vsel %vm664_vm1, %v740_v58, %v741_v63  ;;  %v598_v10 = vpack.c.bf16 %v7959_v4, %v7956_v3  ;;  %v1245_v59 = vsel %vm850_vm0, %v8009_v42, 0  ;;  %v595_v4 = vld [vmem:[%s7953_s0 + $0x180] sm:$0xff] }
  0x42   : > { %v744_v5 = vsel %vm664_vm1, %v741_v63, %v743_v0  ;;  %v1463_v3 = vsel %vm850_vm0, %v6984_v12, 0 }
  0x43   : > { %v792_v9 = vpack.c.bf16 %v744_v5, %v742_v2 }
  0x45   : > { %6568 = vmatmul.mubr.msk.bf16.gmra.mrb[12].mxu0 %vm801_vm2, %v8079_v45 }
  0x46   : > { %6571 = vmatprep.mubr.msk.bf16.mxu0 %vm801_vm2, %v8125_v50 }
  0x4d   : > { %6572 = vmatmul.mubr.msk.bf16.gmra.mrb[16].mxu0 %vm801_vm2, %v8137_v11 }
  0x4e   : > { %6575 = vmatprep.mubr.msk.bf16.mxu0 %vm801_vm2, %v8139_v13 }
  0x55   : > { %6576 = vmatmul.mubr.msk.bf16.gmra.mrb[20].mxu0 %vm801_vm2, %v8151_v34 }
  0x56   : > { %6579 = vmatprep.mubr.msk.bf16.mxu0 %vm801_vm2, %v8153_v35 }
  0x5d   : > { %6580 = vmatmul.mubr.msk.bf16.gmra.mrb[24].mxu0 %vm801_vm2, %v8164_v54 }
  0x5e   : > { %6583 = vmatprep.mubr.msk.bf16.mxu0 %vm801_vm2, %v8166_v57 }
  0x65   : > { %6584 = vmatmul.mubr.msk.bf16.gmra.mrb[28].mxu0 %vm801_vm2, %v792_v9 }
  0x66   : > { %6589 = vmatprep.mubr.msk.bf16.mxu0 %vm801_vm2, %v598_v10 }
  0x6d   : > { %6590 = vmatmul.mubr.msk.bf16.vlgmr.msra.gmra.mrb[0].mxu0 %vm801_vm2, %v7971_v14 }
  0x6e   : > { %6622 = vmatpush3.bf16.msra.mxu0 %v1245_v59  ;;  %6593 = vmatprep.mubr.msk.bf16.mxu0 %vm801_vm2, %v8071_v41 }
  0x6f   : > { %6936 = vmatprep.subr.msk.bf16.mxu0 %vm850_vm0, %v6984_v12 }
  0x75   : > { %6594 = vmatmul.mubr.msk.bf16.gmra.mrb[4].mxu0 %vm801_vm2, %v8075_v44 }
  0x76   : > { %6597 = vmatprep.mubr.msk.bf16.mxu0 %vm801_vm2, %v8096_v17 }
  0x7d   : > { %6598 = vmatmul.mubr.msk.bf16.gmra.mrb[8].mxu0 %vm801_vm2, %v8101_v25 }
  0x7e   : > { %6601 = vmatprep.mubr.msk.bf16.mxu0 %vm801_vm2, %v8103_v60 }
  0x85   : > { %6602 = vmatmul.mubr.msk.bf16.gmra.mrb[12].mxu0 %vm801_vm2, %v8105_v61 }
  0x86   : > { %6605 = vmatprep.mubr.msk.bf16.mxu0 %vm801_vm2, %v8107_v62 }
  0x8d   : > { %6606 = vmatmul.mubr.msk.bf16.gmra.mrb[16].mxu0 %vm801_vm2, %v8109_v1 }
  0x8e   : > { %6609 = vmatprep.mubr.msk.bf16.mxu0 %vm801_vm2, %v8111_v6 }
  0x95   : > { %6610 = vmatmul.mubr.msk.bf16.gmra.mrb[20].mxu0 %vm801_vm2, %v8113_v31 }
  0x96   : > { %6613 = vmatprep.mubr.msk.bf16.mxu0 %vm801_vm2, %v8115_v32 }
  0x9d   : > { %6614 = vmatmul.mubr.msk.bf16.gmra.mrb[24].mxu0 %vm801_vm2, %v8117_v7 }
  0x9e   : > { %6617 = vmatprep.mubr.msk.bf16.mxu0 %vm801_vm2, %v8119_v8 }
  0xa5   : > { %6618 = vmatmul.mubr.msk.bf16.gmra.mrb[28].mxu0 %vm801_vm2, %v8123_v49 }
  0xa6   : > { %6623 = vmatprep.mubr.msk.bf16.mxu0 %vm801_vm2, %v7971_v14  ;;  %v596_v14 = vld [vmem:[%s7953_s0 + $0x188] sm:$0xff] }
  0xa7   : > { %v1232_v42 = vpack.c.bf16 %v596_v14, %v595_v4 }
  0xad   : > { %6624 = vmatmul.mubr.msk.bf16.vlgmr.msra.gmra.mrb[0].mxu0 %vm801_vm2, %v8071_v41 }
  0xae   : > { %6656 = vmatpush3.bf16.msra.mxu0 %v1463_v3  ;;  %6627 = vmatprep.mubr.msk.bf16.mxu0 %vm801_vm2, %v8075_v44  ;;  %v6985_v44 = vld [vmem:[%s12255_s3] sm:$0xff]  }
  0xaf   : > { %6689 = vmatprep.subr.bf16.mxu1 %v6985_v44 }
  0xb0   : > { %6690 = vmatpush3.bf16.msra.mxu1 %v6985_v44 }
  0xb5   : > { %6628 = vmatmul.mubr.msk.bf16.gmra.mrb[4].mxu0 %vm801_vm2, %v8096_v17  ;;  %v8292_v17 = vld [vmem:[%s12256_s2] ss:$0 sm:$0xff]  ;;  %s11976_s2 = scalar_lea.hbm %s12035_s17, %s6399_s22 }
  0xb6   : > { %6631 = vmatprep.mubr.msk.bf16.mxu0 %vm801_vm2, %v8101_v25 }
  0xbd   : > { %6632 = vmatmul.mubr.msk.bf16.gmra.mrb[8].mxu0 %vm801_vm2, %v8103_v60 }
  0xbe   : > { %6635 = vmatprep.mubr.msk.bf16.mxu0 %vm801_vm2, %v8105_v61 }
  0xc5   : > { %6636 = vmatmul.mubr.msk.bf16.gmra.mrb[12].mxu0 %vm801_vm2, %v8107_v62 }
  0xc6   : > { %6639 = vmatprep.mubr.msk.bf16.mxu0 %vm801_vm2, %v8109_v1 }
  0xcd   : > { %6640 = vmatmul.mubr.msk.bf16.gmra.mrb[16].mxu0 %vm801_vm2, %v8111_v6 }
  0xce   : > { %6643 = vmatprep.mubr.msk.bf16.mxu0 %vm801_vm2, %v8113_v31 }
  0xd5   : > { %6644 = vmatmul.mubr.msk.bf16.gmra.mrb[20].mxu0 %vm801_vm2, %v8115_v32 }
  0xd6   : > { %6647 = vmatprep.mubr.msk.bf16.mxu0 %vm801_vm2, %v8117_v7 }
  0xdd   : > { %6648 = vmatmul.mubr.msk.bf16.gmra.mrb[24].mxu0 %vm801_vm2, %v8119_v8 }
  0xde   : > { %6651 = vmatprep.mubr.msk.bf16.mxu0 %vm801_vm2, %v8123_v49 }
  0xe5   : > { %6652 = vmatmul.mubr.msk.bf16.gmra.mrb[28].mxu0 %vm801_vm2, %v1232_v42 }
  0xe6   : > { %6657 = vmatprep.mubr.msk.bf16.mxu0 %vm801_vm2, %v8001_v38  ;;  %v597_v38 = vld [vmem:[%s7953_s0 + $0x190] sm:$0x1]  ;;  %s7732_s0 = scalar_lea.vmem %s11978_s19, 16 }
  0xe7   : > { %p7733_p11 = scmp.ne.s32.totalorder %s11978_s19, %s7732_s0 }
  0xe9   : > { %p7734_p12 = pnand %p7733_p11, %p7929_p5 }
  0xeb   : > { %p7735_p13 = pneg %p7734_p12 }
  0xed   : > { %6658 = vmatmul.mubr.msk.bf16.vlgmr.msra.gmra.mrb[0].mxu0 %vm801_vm2, %v8011_v43  ;;  %v1443_v43 = vrot.slane %v595_v4, 1 }
  0xee   : > { %6661 = vmatprep.mubr.msk.bf16.mxu0 %vm801_vm2, %v8033_v55  ;;  %v1444_v55 = vrot.slane %v596_v14, 1 }
  0xf5   : > { %6662 = vmatmul.mubr.msk.bf16.gmra.mrb[4].mxu0 %vm801_vm2, %v8035_v56  ;;  %v1446_v56 = vrot.slane %v597_v38, 1 }
  0xf6   : > { %6665 = vmatprep.mubr.msk.bf16.mxu0 %vm801_vm2, %v8056_v20  ;;  %v1445_v20 = vsel %vm664_vm1, %v1443_v43, %v1444_v55 }
  0xfd   : > { %6666 = vmatmul.mubr.msk.bf16.gmra.mrb[8].mxu0 %vm801_vm2, %v8059_v22  ;;  %v1447_v22 = vsel %vm664_vm1, %v1444_v55, %v1446_v56 }
  0xfe   : > { %6669 = vmatprep.mubr.msk.bf16.mxu0 %vm801_vm2, %v8079_v45  ;;  %v1450_v41 = vpack.c.bf16 %v1447_v22, %v1445_v20  ;;  %v6986_v45 = vld [vmem:[%s12255_s3 + $0x8] sm:$0xff]   ;;  %s7736_s3 = sshll.u32 %s7800_s28, 4  ;;  %s7737_s3 = int_to_ptr.vmem [resolvable:$false] %s7736_s3 }
  0xff   : > { %6691 = vmatprep.subr.bf16.mxu1 %v6986_v45  ;;  %p7739_p0 = scmp.lt.s32.totalorder %s11978_s19, %s7737_s3 }
 0x100   : > { %6692 = vmatpush3.bf16.msra.mxu1 %v6986_v45 }
 0x105   : > { %6670 = vmatmul.mubr.msk.bf16.gmra.mrb[12].mxu0 %vm801_vm2, %v8125_v50 }
 0x106   : > { %6673 = vmatprep.mubr.msk.bf16.mxu0 %vm801_vm2, %v8137_v11 }
 0x10d   : > { %6674 = vmatmul.mubr.msk.bf16.gmra.mrb[16].mxu0 %vm801_vm2, %v8139_v13 }
 0x10e   : > { %6677 = vmatprep.mubr.msk.bf16.mxu0 %vm801_vm2, %v8151_v34 }
 0x115   : > { %6678 = vmatmul.mubr.msk.bf16.gmra.mrb[20].mxu0 %vm801_vm2, %v8153_v35 }
 0x116   : > { %6681 = vmatprep.mubr.msk.bf16.mxu0 %vm801_vm2, %v8164_v54 }
 0x11d   : > { %6682 = vmatmul.mubr.msk.bf16.gmra.mrb[24].mxu0 %vm801_vm2, %v8166_v57 }
 0x11e   : > { %6685 = vmatprep.mubr.msk.bf16.mxu0 %vm801_vm2, %v792_v9 }
 0x125   : > { %6686 = vmatmul.mubr.msk.bf16.gmra.mrb[28].mxu0 %vm801_vm2, %v1450_v41 }
 0x1c0   : > { %v6659_v25 = vpop.f32.mrb[0].mxu0 }
 0x1c1   : > { %v8295_v60 = vadd.f32 %v6659_v25, %v8292_v17  ;;  %v1499_v61 = vpop.f32.mrb[1].mxu0 }
 0x1c2   : > { %v8298_v62 = vadd.f32 %v8292_v17, %v1499_v61  ;;  %v6660_v1 = vpop.f32.mrb[2].mxu0 }
 0x1c3   : > { %v6157_v6 = vmul.f32 -1.442695, %v8295_v60  ;;  %v8302_v31 = vadd.f32 %v6660_v1, %v8292_v17  ;;  %v1502_v32 = vpop.f32.mrb[3].mxu0 }
 0x1c4   : > { %v6155_v7 = vmul.f32 -1.442695, %v8298_v62  ;;  %v8306_v8 = vadd.f32 %v8292_v17, %v1502_v32 }
 0x1c5   : > { %7017 = vpow2.f32 %v6157_v6  ;;  %v6158_v49 = vmul.f32 -1.442695, %v8302_v31 }
 0x1c6   : > { %7019 = vpow2.f32 %v6155_v7  ;;  %v6156_v50 = vmul.f32 -1.442695, %v8306_v8 }
 0x1c7   : > { %7021 = vpow2.f32 %v6158_v49 }
 0x1c8   : > { %7023 = vpow2.f32 %v6156_v50  ;;  %v6663_v11 = vpop.f32.mrb[4].mxu0 }
 0x1c9   : > { %v8311_v13 = vadd.f32 %v6663_v11, %v8292_v17  ;;  %v1515_v15 = vpop.f32.mrb[5].mxu0 }
 0x1ca   : > { %v8314_v16 = vadd.f32 %v8292_v17, %v1515_v15  ;;  %v6664_v18 = vpop.f32.mrb[6].mxu0 }
 0x1cb   : > { %v6161_v19 = vmul.f32 -1.442695, %v8311_v13  ;;  %v8318_v21 = vadd.f32 %v6664_v18, %v8292_v17  ;;  %v1518_v23 = vpop.f32.mrb[7].mxu0 }
 0x1cc   : > { %v6159_v26 = vmul.f32 -1.442695, %v8314_v16  ;;  %v8322_v27 = vadd.f32 %v8292_v17, %v1518_v23 }
 0x1cd   : > { %7025 = vpow2.f32 %v6161_v19  ;;  %v6162_v28 = vmul.f32 -1.442695, %v8318_v21 }
 0x1ce   : > { %7027 = vpow2.f32 %v6159_v26  ;;  %v6160_v29 = vmul.f32 -1.442695, %v8322_v27 }
 0x1cf   : > { %v7018_v30 = vpop.eup %7017  ;;  %7029 = vpow2.f32 %v6162_v28 }
 0x1d0   : > { %v7020_v33 = vpop.eup %7019  ;;  %v1795_v34 = vadd.f32 1.0, %v7018_v30  ;;  %7031 = vpow2.f32 %v6160_v29  ;;  %v6667_v35 = vpop.f32.mrb[8].mxu0 }
 0x1d1   : > { %v7022_v36 = vpop.eup %7021  ;;  %v1793_v37 = vadd.f32 1.0, %v7020_v33  ;;  %v8327_v39 = vadd.f32 %v6667_v35, %v8292_v17  ;;  %v1531_v40 = vpop.f32.mrb[9].mxu0 }
 0x1d2   : > { %v7024_v46 = vpop.eup %7023  ;;  %7033 = vrcp.f32 %v1795_v34  ;;  %v1796_v47 = vadd.f32 1.0, %v7022_v36  ;;  %v8330_v48 = vadd.f32 %v8292_v17, %v1531_v40  ;;  %v6668_v24 = vpop.f32.mrb[10].mxu0 }
 0x1d3   : > { %7035 = vrcp.f32 %v1793_v37  ;;  %v1794_v52 = vadd.f32 1.0, %v7024_v46  ;;  %v6165_v53 = vmul.f32 -1.442695, %v8327_v39  ;;  %v8334_v51 = vadd.f32 %v6668_v24, %v8292_v17  ;;  %v1534_v54 = vpop.f32.mrb[11].mxu0 }
 0x1d4   : > { %7037 = vrcp.f32 %v1796_v47  ;;  %v6163_v57 = vmul.f32 -1.442695, %v8330_v48  ;;  %v8338_v58 = vadd.f32 %v8292_v17, %v1534_v54 }
 0x1d5   : > { %7039 = vrcp.f32 %v1794_v52  ;;  %v6166_v63 = vmul.f32 -1.442695, %v8334_v51 }
 0x1d6   : > { %7041 = vpow2.f32 %v6165_v53  ;;  %v6164_v0 = vmul.f32 -1.442695, %v8338_v58 }
 0x1d7   : > { %v7026_v2 = vpop.eup %7025  ;;  %7043 = vpow2.f32 %v6163_v57 }
 0x1d8   : > { %v7028_v5 = vpop.eup %7027  ;;  %v1799_v9 = vadd.f32 1.0, %v7026_v2  ;;  %7045 = vpow2.f32 %v6166_v63  ;;  %v6671_v10 = vpop.f32.mrb[12].mxu0 }
 0x1d9   : > { %v7030_v59 = vpop.eup %7029  ;;  %v1797_v12 = vadd.f32 1.0, %v7028_v5  ;;  %7047 = vpow2.f32 %v6164_v0  ;;  %v8343_v3 = vadd.f32 %v6671_v10, %v8292_v17  ;;  %v1547_v4 = vpop.f32.mrb[13].mxu0 }
 0x1da   : > { %v7032_v14 = vpop.eup %7031  ;;  %7049 = vrcp.f32 %v1799_v9  ;;  %v1800_v42 = vadd.f32 1.0, %v7030_v59  ;;  %v8346_v38 = vadd.f32 %v8292_v17, %v1547_v4  ;;  %v6672_v43 = vpop.f32.mrb[14].mxu0 }
 0x1db   : > { %7051 = vrcp.f32 %v1797_v12  ;;  %v1798_v55 = vadd.f32 1.0, %v7032_v14  ;;  %v6169_v56 = vmul.f32 -1.442695, %v8343_v3  ;;  %v8350_v20 = vadd.f32 %v6672_v43, %v8292_v17  ;;  %v1550_v22 = vpop.f32.mrb[15].mxu0 }
 0x1dc   : > { %v7034_v41 = vpop.eup %7033  ;;  %7053 = vrcp.f32 %v1800_v42  ;;  %v6167_v44 = vmul.f32 -1.442695, %v8346_v38  ;;  %v8354_v45 = vadd.f32 %v8292_v17, %v1550_v22 }
 0x1dd   : > { %v7036_v25 = vpop.eup %7035  ;;  %7055 = vrcp.f32 %v1798_v55  ;;  %v6170_v61 = vmul.f32 -1.442695, %v8350_v20  ;;  %v8362_v50 = vmul.f32 %v7034_v41, %v8295_v60 }
 0x1de   : > { %v7038_v1 = vpop.eup %7037  ;;  %7057 = vpow2.f32 %v6169_v56  ;;  %v6168_v6 = vmul.f32 -1.442695, %v8354_v45  ;;  %v8365_v11 = vmul.f32 %v7036_v25, %v8298_v62 }
 0x1df   : > { %v7040_v32 = vpop.eup %7039  ;;  %v8359_v7 = vmul.f32 %v7038_v1, %v8302_v31  ;;  %7059 = vpow2.f32 %v6167_v44  ;;  %12258 = vst [vmem:[#allocation9_spill] sm:$0xff] %v8362_v50 }
 0x1e0   : > { %v7042_v49 = vpop.eup %7041  ;;  %12259 = vst [vmem:[#allocation10_spill] sm:$0xff] %v8365_v11  ;;  %v8368_v15 = vmul.f32 %v7040_v32, %v8306_v8  ;;  %7061 = vpow2.f32 %v6170_v61  ;;  %v6675_v18 = vpop.f32.mrb[16].mxu0 }
 0x1e1   : > { %12257 = vst [vmem:[#allocation8_spill] sm:$0xff] %v8359_v7  ;;  %v7044_v19 = vpop.eup %7043  ;;  %v1803_v23 = vadd.f32 1.0, %v7042_v49  ;;  %7063 = vpow2.f32 %v6168_v6  ;;  %v8371_v26 = vadd.f32 %v6675_v18, %v8292_v17  ;;  %v1563_v31 = vpop.f32.mrb[17].mxu0  ;;  %v1922_v60 = vpack.c.bf16 %v8359_v7, %v8362_v50 }
 0x1e2   : > { %12260 = vst [vmem:[#allocation11_spill] sm:$0xff] %v8368_v15  ;;  %v7046_v28 = vpop.eup %7045  ;;  %v1801_v29 = vadd.f32 1.0, %v7044_v19  ;;  %v8376_v62 = vadd.f32 %v8292_v17, %v1563_v31  ;;  %v6676_v8 = vpop.f32.mrb[18].mxu0  ;;  %v1921_v30 = vpack.c.bf16 %v8368_v15, %v8365_v11 }
 0x1e3   : > { %v7048_v33 = vpop.eup %7047  ;;  %7065 = vrcp.f32 %v1803_v23  ;;  %v1804_v34 = vadd.f32 1.0, %v7046_v28  ;;  %v6173_v35 = vmul.f32 -1.442695, %v8371_v26  ;;  %v8382_v36 = vadd.f32 %v6676_v8, %v8292_v17  ;;  %v1566_v37 = vpop.f32.mrb[19].mxu0 }
 0x1e4   : > { %v7050_v40 = vpop.eup %7049  ;;  %7067 = vrcp.f32 %v1801_v29  ;;  %v1802_v46 = vadd.f32 1.0, %v7048_v33  ;;  %v6171_v47 = vmul.f32 -1.442695, %v8376_v62  ;;  %v8386_v24 = vadd.f32 %v8292_v17, %v1566_v37  ;;  %6693 = vmatprep.mubr.msk.bf16.mxu1 %vm1960_vm3, %v1921_v30 }
 0x1e5   : > { %v7052_v52 = vpop.eup %7051  ;;  %7069 = vrcp.f32 %v1804_v34  ;;  %v6174_v53 = vmul.f32 -1.442695, %v8382_v36  ;;  %6694 = vmatmul.mubr.msk.bf16.vlgmr.msra.gmra.mrb[0].mxu1 %vm1960_vm3, %v1922_v60  ;;  %v8393_v0 = vmul.f32 %v7050_v40, %v8311_v13 }
 0x1e6   : > { %v7054_v54 = vpop.eup %7053  ;;  %7071 = vrcp.f32 %v1802_v46  ;;  %v6172_v57 = vmul.f32 -1.442695, %v8386_v24  ;;  %v8399_v9 = vmul.f32 %v7052_v52, %v8314_v16 }
 0x1e7   : > { %v7056_v63 = vpop.eup %7055  ;;  %12261 = vst [vmem:[#allocation12_spill] sm:$0xff] %v8393_v0  ;;  %v8396_v2 = vmul.f32 %v7054_v54, %v8318_v21  ;;  %7073 = vpow2.f32 %v6173_v35 }
 0x1e8   : > { %v7058_v5 = vpop.eup %7057  ;;  %12263 = vst [vmem:[#allocation14_spill] sm:$0xff] %v8399_v9  ;;  %v8402_v10 = vmul.f32 %v7056_v63, %v8322_v27  ;;  %7075 = vpow2.f32 %v6171_v47  ;;  %v6679_v59 = vpop.f32.mrb[20].mxu0 }
 0x1e9   : > { %12262 = vst [vmem:[#allocation13_spill] sm:$0xff] %v8396_v2  ;;  %v7060_v12 = vpop.eup %7059  ;;  %v1924_v4 = vpack.c.bf16 %v8396_v2, %v8393_v0  ;;  %v1807_v14 = vadd.f32 1.0, %v7058_v5  ;;  %7077 = vpow2.f32 %v6174_v53  ;;  %v8407_v13 = vadd.f32 %v6679_v59, %v8292_v17  ;;  %v1579_v21 = vpop.f32.mrb[21].mxu0 }
 0x1ea   : > { %12264 = vst [vmem:[#allocation15_spill] sm:$0xff] %v8402_v10  ;;  %v7062_v42 = vpop.eup %7061  ;;  %v1923_v16 = vpack.c.bf16 %v8402_v10, %v8399_v9  ;;  %v1805_v43 = vadd.f32 1.0, %v7060_v12  ;;  %7079 = vpow2.f32 %v6172_v57  ;;  %v8412_v27 = vadd.f32 %v8292_v17, %v1579_v21  ;;  %v6680_v55 = vpop.f32.mrb[22].mxu0 }
 0x1eb   : > { %v7064_v56 = vpop.eup %7063  ;;  %7081 = vrcp.f32 %v1807_v14  ;;  %v1808_v22 = vadd.f32 1.0, %v7062_v42  ;;  %v6177_v41 = vmul.f32 -1.442695, %v8407_v13  ;;  %v8416_v44 = vadd.f32 %v6680_v55, %v8292_v17  ;;  %v1582_v25 = vpop.f32.mrb[23].mxu0 }
 0x1ec   : > { %7083 = vrcp.f32 %v1805_v43  ;;  %v1806_v61 = vadd.f32 1.0, %v7064_v56  ;;  %v6175_v1 = vmul.f32 -1.442695, %v8412_v27  ;;  %v8420_v6 = vadd.f32 %v8292_v17, %v1582_v25  ;;  %6697 = vmatprep.mubr.msk.bf16.mxu1 %vm1960_vm3, %v1923_v16 }
 0x1ed   : > { %v7066_v32 = vpop.eup %7065  ;;  %7085 = vrcp.f32 %v1808_v22  ;;  %v6178_v49 = vmul.f32 -1.442695, %v8416_v44  ;;  %6698 = vmatmul.mubr.msk.bf16.gmra.mrb[4].mxu1 %vm1960_vm3, %v1924_v4 }
 0x1ee   : > { %v7068_v18 = vpop.eup %7067  ;;  %7087 = vrcp.f32 %v1806_v61  ;;  %v6176_v19 = vmul.f32 -1.442695, %v8420_v6  ;;  %v8427_v28 = vmul.f32 %v7066_v32, %v8327_v39 }
 0x1ef   : > { %v7070_v23 = vpop.eup %7069  ;;  %7089 = vpow2.f32 %v6177_v41  ;;  %v8433_v30 = vmul.f32 %v7068_v18, %v8330_v48 }
 0x1f0   : > { %v7072_v31 = vpop.eup %7071  ;;  %12265 = vst [vmem:[#allocation16_spill] sm:$0xff] %v8427_v28  ;;  %v8430_v60 = vmul.f32 %v7070_v23, %v8334_v51  ;;  %7091 = vpow2.f32 %v6175_v1  ;;  %v6683_v29 = vpop.f32.mrb[24].mxu0 }
 0x1f1   : > { %v7074_v8 = vpop.eup %7073  ;;  %12267 = vst [vmem:[#allocation18_spill] sm:$0xff] %v8433_v30  ;;  %v8436_v33 = vmul.f32 %v7072_v31, %v8338_v58  ;;  %7093 = vpow2.f32 %v6178_v49  ;;  %v8439_v34 = vadd.f32 %v6683_v29, %v8292_v17  ;;  %v1595_v35 = vpop.f32.mrb[25].mxu0 }
 0x1f2   : > { %12266 = vst [vmem:[#allocation17_spill] sm:$0xff] %v8430_v60  ;;  %v7076_v37 = vpop.eup %7075  ;;  %v1811_v39 = vadd.f32 1.0, %v7074_v8  ;;  %7095 = vpow2.f32 %v6176_v19  ;;  %v8442_v51 = vadd.f32 %v8292_v17, %v1595_v35  ;;  %v6684_v40 = vpop.f32.mrb[26].mxu0  ;;  %v1926_v48 = vpack.c.bf16 %v8430_v60, %v8427_v28 }
 0x1f3   : > { %12268 = vst [vmem:[#allocation19_spill] sm:$0xff] %v8436_v33  ;;  %v7078_v46 = vpop.eup %7077  ;;  %v1925_v58 = vpack.c.bf16 %v8436_v33, %v8433_v30  ;;  %v1809_v47 = vadd.f32 1.0, %v7076_v37  ;;  %v8449_v52 = vadd.f32 %v6684_v40, %v8292_v17  ;;  %v1598_v53 = vpop.f32.mrb[27].mxu0  ;;  %v6181_v63 = vmul.f32 -1.442695, %v8439_v34 }
 0x1f4   : > { %v7080_v54 = vpop.eup %7079  ;;  %7097 = vrcp.f32 %v1811_v39  ;;  %v1812_v57 = vadd.f32 1.0, %v7078_v46  ;;  %v8453_v5 = vadd.f32 %v8292_v17, %v1598_v53  ;;  %v6179_v4 = vmul.f32 -1.442695, %v8442_v51 }
 0x1f5   : > { %v7082_v59 = vpop.eup %7081  ;;  %7099 = vrcp.f32 %v1809_v47  ;;  %v1810_v12 = vadd.f32 1.0, %v7080_v54  ;;  %6701 = vmatprep.mubr.msk.bf16.mxu1 %vm1960_vm3, %v1925_v58  ;;  %v6182_v21 = vmul.f32 -1.442695, %v8449_v52 }
 0x1f6   : > { %v7084_v14 = vpop.eup %7083  ;;  %7101 = vrcp.f32 %v1812_v57  ;;  %6702 = vmatmul.mubr.msk.bf16.gmra.mrb[8].mxu1 %vm1960_vm3, %v1926_v48  ;;  %v6180_v16 = vmul.f32 -1.442695, %v8453_v5  ;;  %v8461_v55 = vmul.f32 %v7082_v59, %v8343_v3 }
 0x1f7   : > { %v7086_v42 = vpop.eup %7085  ;;  %7103 = vrcp.f32 %v1810_v12  ;;  %v8467_v25 = vmul.f32 %v7084_v14, %v8346_v38 }
 0x1f8   : > { %v7088_v43 = vpop.eup %7087  ;;  %12269 = vst [vmem:[#allocation20_spill] sm:$0xff] %v8461_v55  ;;  %v8464_v56 = vmul.f32 %v7086_v42, %v8350_v20  ;;  %7105 = vpow2.f32 %v6181_v63  ;;  %v6687_v22 = vpop.f32.mrb[28].mxu0 }
 0x1f9   : > { %v7090_v41 = vpop.eup %7089  ;;  %12271 = vst [vmem:[#allocation22_spill] sm:$0xff] %v8467_v25  ;;  %v8470_v61 = vmul.f32 %v7088_v43, %v8354_v45  ;;  %7107 = vpow2.f32 %v6179_v4  ;;  %v8473_v1 = vadd.f32 %v6687_v22, %v8292_v17  ;;  %v1611_v32 = vpop.f32.mrb[29].mxu0 }
 0x1fa   : > { %12270 = vst [vmem:[#allocation21_spill] sm:$0xff] %v8464_v56  ;;  %v7092_v49 = vpop.eup %7091  ;;  %v1815_v3 = vadd.f32 1.0, %v7090_v41  ;;  %7109 = vpow2.f32 %v6182_v21  ;;  %v8476_v20 = vadd.f32 %v8292_v17, %v1611_v32  ;;  %v6688_v18 = vpop.f32.mrb[30].mxu0  ;;  %v1928_v38 = vpack.c.bf16 %v8464_v56, %v8461_v55 }
 0x1fb   : > { %12272 = vst [vmem:[#allocation23_spill] sm:$0xff] %v8470_v61  ;;  %v7094_v19 = vpop.eup %7093  ;;  %v1927_v45 = vpack.c.bf16 %v8470_v61, %v8467_v25  ;;  %v1813_v23 = vadd.f32 1.0, %v7092_v49  ;;  %7111 = vpow2.f32 %v6180_v16  ;;  %v1614_v31 = vpop.f32.mrb[31].mxu0  ;;  %v6185_v35 = vmul.f32 -1.442695, %v8473_v1 }
 0x1fc   : > { %v7096_v29 = vpop.eup %7095  ;;  %7113 = vrcp.f32 %v1815_v3  ;;  %v1816_v8 = vadd.f32 1.0, %v7094_v19  ;;  %v8484_v37 = vadd.f32 %v6688_v18, %v8292_v17  ;;  %v6183_v40 = vmul.f32 -1.442695, %v8476_v20 }
 0x1fd   : > { %7115 = vrcp.f32 %v1813_v23  ;;  %v1814_v39 = vadd.f32 1.0, %v7096_v29  ;;  %v8488_v46 = vadd.f32 %v8292_v17, %v1614_v31  ;;  %6705 = vmatprep.mubr.msk.bf16.mxu1 %vm1960_vm3, %v1927_v45 }
 0x1fe   : > { %v7098_v48 = vpop.eup %7097  ;;  %7117 = vrcp.f32 %v1816_v8  ;;  %v6186_v58 = vmul.f32 -1.442695, %v8484_v37  ;;  %6706 = vmatmul.mubr.msk.bf16.gmra.mrb[12].mxu1 %vm1960_vm3, %v1928_v38 }
 0x1ff   : > { %v7100_v47 = vpop.eup %7099  ;;  %7119 = vrcp.f32 %v1814_v39  ;;  %v6184_v53 = vmul.f32 -1.442695, %v8488_v46  ;;  %v8504_v14 = vmul.f32 %v7098_v48, %v8371_v26 }
 0x200   : > { %v7102_v54 = vpop.eup %7101  ;;  %7121 = vpow2.f32 %v6185_v35  ;;  %v8498_v59 = vmul.f32 %v7100_v47, %v8376_v62 }
 0x201   : > { %v7104_v57 = vpop.eup %7103  ;;  %v8495_v63 = vmul.f32 %v7102_v54, %v8382_v36  ;;  %7123 = vpow2.f32 %v6183_v40  ;;  %12276 = vst [vmem:[#allocation27_spill] sm:$0xff] %v8504_v14 }
 0x202   : > { %v7106_v17 = vpop.eup %7105  ;;  %12274 = vst [vmem:[#allocation25_spill] sm:$0xff] %v8498_v59  ;;  %v8501_v12 = vmul.f32 %v7104_v57, %v8386_v24  ;;  %7125 = vpow2.f32 %v6186_v58 }
 0x203   : > { %12273 = vst [vmem:[#allocation24_spill] sm:$0xff] %v8495_v63  ;;  %v7108_v4 = vpop.eup %7107  ;;  %v1819_v21 = vadd.f32 1.0, %v7106_v17  ;;  %7127 = vpow2.f32 %v6184_v53  ;;  %v1930_v62 = vpack.c.bf16 %v8495_v63, %v8504_v14 }
 0x204   : > { %12275 = vst [vmem:[#allocation26_spill] sm:$0xff] %v8501_v12  ;;  %v7110_v42 = vpop.eup %7109  ;;  %v1929_v36 = vpack.c.bf16 %v8501_v12, %v8498_v59  ;;  %v1817_v16 = vadd.f32 1.0, %v7108_v4 }
 0x205   : > { %v7112_v43 = vpop.eup %7111  ;;  %7129 = vrcp.f32 %v1819_v21  ;;  %v1820_v22 = vadd.f32 1.0, %v7110_v42 }
 0x206   : > { %v7114_v24 = vpop.eup %7113  ;;  %7131 = vrcp.f32 %v1817_v16  ;;  %v1818_v41 = vadd.f32 1.0, %v7112_v43  ;;  %6709 = vmatprep.mubr.msk.bf16.mxu1 %vm1960_vm3, %v1929_v36 }
 0x207   : > { %v7116_v26 = vpop.eup %7115  ;;  %7133 = vrcp.f32 %v1820_v22  ;;  %6710 = vmatmul.mubr.msk.bf16.gmra.mrb[16].mxu1 %vm1960_vm3, %v1930_v62  ;;  %v8522_v23 = vmul.f32 %v7114_v24, %v8407_v13 }
 0x208   : > { %v7118_v32 = vpop.eup %7117  ;;  %7135 = vrcp.f32 %v1818_v41  ;;  %v8516_v19 = vmul.f32 %v7116_v26, %v8412_v27 }
 0x209   : > { %v7120_v49 = vpop.eup %7119  ;;  %v8513_v3 = vmul.f32 %v7118_v32, %v8416_v44  ;;  %12280 = vst [vmem:[#allocation31_spill] sm:$0xff] %v8522_v23 }
 0x20a   : > { %v7122_v18 = vpop.eup %7121  ;;  %12278 = vst [vmem:[#allocation29_spill] sm:$0xff] %v8516_v19  ;;  %v8519_v38 = vmul.f32 %v7120_v49, %v8420_v6 }
 0x20b   : > { %12277 = vst [vmem:[#allocation28_spill] sm:$0xff] %v8513_v3  ;;  %v7124_v45 = vpop.eup %7123  ;;  %v1823_v31 = vadd.f32 1.0, %v7122_v18  ;;  %v1932_v44 = vpack.c.bf16 %v8513_v3, %v8522_v23 }
 0x20c   : > { %12279 = vst [vmem:[#allocation30_spill] sm:$0xff] %v8519_v38  ;;  %v7126_v29 = vpop.eup %7125  ;;  %v1931_v8 = vpack.c.bf16 %v8519_v38, %v8516_v19  ;;  %v1821_v35 = vadd.f32 1.0, %v7124_v45 }
 0x20d   : > { %v7128_v39 = vpop.eup %7127  ;;  %7137 = vrcp.f32 %v1823_v31  ;;  %v1824_v27 = vadd.f32 1.0, %v7126_v29 }
 0x20e   : > { %7139 = vrcp.f32 %v1821_v35  ;;  %v1822_v40 = vadd.f32 1.0, %v7128_v39  ;;  %6713 = vmatprep.mubr.msk.bf16.mxu1 %vm1960_vm3, %v1931_v8  ;;  %v2394_v35 = vld [vmem:[%s12023_s5] sm:$0x7] }
 0x20f   : > { %v7130_v6 = vpop.eup %7129  ;;  %7141 = vrcp.f32 %v1824_v27  ;;  %6714 = vmatmul.mubr.msk.bf16.gmra.mrb[20].mxu1 %vm1960_vm3, %v1932_v44 }
 0x210   : > { %v7132_v13 = vpop.eup %7131  ;;  %7143 = vrcp.f32 %v1822_v40  ;;  %v8540_v57 = vmul.f32 %v7130_v6, %v8439_v34 }
 0x211   : > { %v7134_v48 = vpop.eup %7133  ;;  %v8534_v53 = vmul.f32 %v7132_v13, %v8442_v51 }
 0x212   : > { %v7136_v58 = vpop.eup %7135  ;;  %v8531_v47 = vmul.f32 %v7134_v48, %v8449_v52  ;;  %12284 = vst [vmem:[#allocation35_spill] sm:$0xff] %v8540_v57 }
 0x213   : > { %12282 = vst [vmem:[#allocation33_spill] sm:$0xff] %v8534_v53  ;;  %v8537_v54 = vmul.f32 %v7136_v58, %v8453_v5 }
 0x214   : > { %12281 = vst [vmem:[#allocation32_spill] sm:$0xff] %v8531_v47  ;;  %v1934_v4 = vpack.c.bf16 %v8531_v47, %v8540_v57 }
 0x215   : > { %12283 = vst [vmem:[#allocation34_spill] sm:$0xff] %v8537_v54  ;;  %v1933_v17 = vpack.c.bf16 %v8537_v54, %v8534_v53 }
 0x217   : > { %v7138_v21 = vpop.eup %7137  ;;  %6717 = vmatprep.mubr.msk.bf16.mxu1 %vm1960_vm3, %v1933_v17 }
 0x218   : > { %v7140_v52 = vpop.eup %7139  ;;  %6718 = vmatmul.mubr.msk.bf16.gmra.mrb[24].mxu1 %vm1960_vm3, %v1934_v4  ;;  %v8558_v16 = vmul.f32 %v7138_v21, %v8473_v1 }
 0x219   : > { %v7142_v51 = vpop.eup %7141  ;;  %v8552_v34 = vmul.f32 %v7140_v52, %v8476_v20  ;;  %v8569_v20 = vld [vmem:[%s12289_s4] ss:$0 sm:$0xff] }
 0x21a   : > { %v7144_v42 = vpop.eup %7143  ;;  %v8549_v5 = vmul.f32 %v7142_v51, %v8484_v37  ;;  %12288 = vst [vmem:[#allocation39_spill] sm:$0xff] %v8558_v16  ;;  %v2397_v37 = vlaneseq  ;;  %12290 = vst [vmem:[#allocation40_spill] sm:$0xff] %v8569_v20 }
 0x21b   : > { %12286 = vst [vmem:[#allocation37_spill] sm:$0xff] %v8552_v34  ;;  %v8555_v36 = vmul.f32 %v7144_v42, %v8488_v46 }
 0x21c   : > { %12285 = vst [vmem:[#allocation36_spill] sm:$0xff] %v8549_v5  ;;  %v1936_v62 = vpack.c.bf16 %v8549_v5, %v8558_v16  ;;  %v2398_v22 = vshrl.u32 %v2397_v37, 7 }
 0x21d   : > { %12287 = vst [vmem:[#allocation38_spill] sm:$0xff] %v8555_v36  ;;  %v1935_v43 = vpack.c.bf16 %v8555_v36, %v8552_v34 }
 0x21e   : > { %v8585_v29 = vsub.s32 1, %v2398_v22  ;;  %v8592_v27 = vsub.s32 0, %v2398_v22  ;;  %v2672_v48 = vsub.s32 2, %v2398_v22 }
 0x21f   : > { %6721 = vmatprep.mubr.msk.bf16.mxu1 %vm1960_vm3, %v1935_v43 }
 0x220   : > { %6722 = vmatmul.mubr.msk.bf16.gmra.mrb[28].mxu1 %vm1960_vm3, %v1936_v62  ;;  %12291 = vst [vmem:[#allocation41_spill] sm:$0xff] %v8585_v29  ;;  %12292 = vst [vmem:[#allocation42_spill] sm:$0xff] %v8592_v27  ;;  %v8595_v40 = vrot.slane %v2394_v35, %v8585_v29  ;;  %v8612_v43 = vrot.slane %v2394_v35, %v8592_v27 }
 0x222   : > { %12293 = vst [vmem:[#allocation43_spill] sm:$0xff] %v8595_v40  ;;  %12294 = vst [vmem:[#allocation44_spill] sm:$0xff] %v8612_v43  ;;  %v2467_v62 = vmul.f32 0.0, %v8595_v40 }
 0x2b8   : > { %v6695_v46 = vpop.f32.mrb[0].mxu1 }
 0x2b9   : > { %v8572_v1 = vadd.f32 %v6695_v46, %v8569_v20  ;;  %v2043_v24 = vpop.f32.mrb[1].mxu1  ;;  %v8616_v46 = vrot.slane %v2394_v35, %v2672_v48  ;;  %v2395_v35 = vld [vmem:[%s12023_s5 + $0x4] sm:$0x7] }
 0x2ba   : > { %v8575_v41 = vadd.f32 %v8569_v20, %v2043_v24  ;;  %v6696_v26 = vpop.f32.mrb[2].mxu1  ;;  %v8637_v36 = vrot.slane %v2395_v35, %v8592_v27  ;;  %v8651_v54 = vrot.slane %v2395_v35, %v2672_v48  ;;  %v8678_v12 = vrot.slane %v2395_v35, %v8585_v29 }
 0x2bb   : > { %v6208_v32 = vmul.f32 -1.442695, %v8572_v1  ;;  %v8579_v49 = vadd.f32 %v6696_v26, %v8569_v20  ;;  %v2046_v18 = vpop.f32.mrb[3].mxu1  ;;  %12295 = vst [vmem:[#allocation45_spill] sm:$0xff] %v8616_v46 }
 0x2bc   : > { %v6206_v45 = vmul.f32 -1.442695, %v8575_v41  ;;  %v8583_v31 = vadd.f32 %v8569_v20, %v2046_v18  ;;  %12300 = vst [vmem:[#allocation50_spill] sm:$0xff] %v8637_v36  ;;  %12302 = vst [vmem:[#allocation52_spill] sm:$0xff] %v8651_v54  ;;  %v8654_v47 = vmul.f32 0.0, %v8637_v36 }
 0x2bd   : > { %7145 = vpow2.f32 %v6208_v32  ;;  %v6209_v8 = vmul.f32 -1.442695, %v8579_v49  ;;  %12308 = vst [vmem:[#allocation58_spill] sm:$0xff] %v8678_v12 }
 0x2be   : > { %7147 = vpow2.f32 %v6206_v45  ;;  %v6207_v39 = vmul.f32 -1.442695, %v8583_v31  ;;  %v8620_v45 = vmul.f32 0.0, %v8612_v43  ;;  %12303 = vst [vmem:[#allocation53_spill] sm:$0xff] %v8654_v47 }
 0x2bf   : > { %7149 = vpow2.f32 %v6209_v8 }
 0x2c0   : > { %7151 = vpow2.f32 %v6207_v39  ;;  %v6699_v44 = vpop.f32.mrb[4].mxu1  ;;  %12296 = vst [vmem:[#allocation46_spill] sm:$0xff] %v8620_v45  ;;  %v2529_v39 = vrot.slane %v2467_v62, 1 }
 0x2c1   : > { %v8598_v6 = vadd.f32 %v6699_v44, %v8569_v20  ;;  %v2059_v13 = vpop.f32.mrb[5].mxu1 }
 0x2c2   : > { %v8601_v58 = vadd.f32 %v8569_v20, %v2059_v13  ;;  %v6700_v17 = vpop.f32.mrb[6].mxu1 }
 0x2c3   : > { %v6212_v4 = vmul.f32 -1.442695, %v8598_v6  ;;  %v8605_v21 = vadd.f32 %v6700_v17, %v8569_v20  ;;  %v2062_v52 = vpop.f32.mrb[7].mxu1  ;;  %v2674_v17 = vmul.f32 0.0, %v8616_v46 }
 0x2c4   : > { %v6210_v51 = vmul.f32 -1.442695, %v8601_v58  ;;  %v8609_v42 = vadd.f32 %v8569_v20, %v2062_v52 }
 0x2c5   : > { %7153 = vpow2.f32 %v6212_v4  ;;  %v6213_v37 = vmul.f32 -1.442695, %v8605_v21 }
 0x2c6   : > { %7155 = vpow2.f32 %v6210_v51  ;;  %v6211_v22 = vmul.f32 -1.442695, %v8609_v42 }
 0x2c7   : > { %v7146_v24 = vpop.eup %7145  ;;  %7157 = vpow2.f32 %v6213_v37 }
 0x2c8   : > { %v7148_v26 = vpop.eup %7147  ;;  %v2268_v32 = vadd.f32 1.0, %v7146_v24  ;;  %7159 = vpow2.f32 %v6211_v22 }
 0x2c9   : > { %v7150_v18 = vpop.eup %7149  ;;  %v2266_v8 = vadd.f32 1.0, %v7148_v26  ;;  %v6703_v44 = vpop.f32.mrb[8].mxu1 }
 0x2ca   : > { %v7152_v13 = vpop.eup %7151  ;;  %7161 = vrcp.f32 %v2268_v32  ;;  %v2269_v4 = vadd.f32 1.0, %v7150_v18  ;;  %v8627_v52 = vadd.f32 %v6703_v44, %v8569_v20  ;;  %v2075_v51 = vpop.f32.mrb[9].mxu1 }
 0x2cb   : > { %7163 = vrcp.f32 %v2266_v8  ;;  %v2267_v37 = vadd.f32 1.0, %v7152_v13  ;;  %v8630_v22 = vadd.f32 %v8569_v20, %v2075_v51  ;;  %v6704_v62 = vpop.f32.mrb[10].mxu1  ;;  %v2396_v8 = vld [vmem:[%s12023_s5 + $0x8] sm:$0x7]  ;;  %v2623_v13 = vadd.f32 %v2529_v39, %v8620_v45 }
 0x2cc   : > { %12297 = vst [vmem:[#allocation47_spill] sm:$0xff] %v8627_v52  ;;  %v6216_v24 = vmul.f32 -1.442695, %v8627_v52  ;;  %v8634_v26 = vadd.f32 %v6704_v62, %v8569_v20  ;;  %v2078_v32 = vpop.f32.mrb[11].mxu1  ;;  %v8647_v51 = vrot.slane %v2674_v17, 2  ;;  %7165 = vrcp.f32 %v2269_v4 }
 0x2cd   : > { %12298 = vst [vmem:[#allocation48_spill] sm:$0xff] %v8630_v22  ;;  %v6214_v18 = vmul.f32 -1.442695, %v8630_v22  ;;  %v8641_v44 = vadd.f32 %v8569_v20, %v2078_v32  ;;  %7167 = vrcp.f32 %v2267_v37  ;;  %v8656_v57 = vrot.slane %v2396_v8, %v2672_v48 }
 0x2ce   : > { %12299 = vst [vmem:[#allocation49_spill] sm:$0xff] %v8634_v26  ;;  %v6217_v62 = vmul.f32 -1.442695, %v8634_v26  ;;  %7169 = vpow2.f32 %v6216_v24  ;;  %v8659_v38 = vadd.f32 %v8647_v51, %v2623_v13  ;;  %v3196_v24 = vmul.f32 0.0, %v8651_v54 }
 0x2cf   : > { %12301 = vst [vmem:[#allocation51_spill] sm:$0xff] %v8641_v44  ;;  %v7154_v34 = vpop.eup %7153  ;;  %v6215_v5 = vmul.f32 -1.442695, %v8641_v44  ;;  %7171 = vpow2.f32 %v6214_v18  ;;  %v3718_v3 = vmul.f32 0.0, %v8656_v57  ;;  %v8669_v18 = vrot.slane %v2396_v8, %v8592_v27 }
 0x2d0   : > { %v7156_v16 = vpop.eup %7155  ;;  %v2272_v32 = vadd.f32 1.0, %v7154_v34  ;;  %7173 = vpow2.f32 %v6217_v62 }
 0x2d1   : > { %v7158_v53 = vpop.eup %7157  ;;  %v2270_v39 = vadd.f32 1.0, %v7156_v16  ;;  %v6707_v17 = vpop.f32.mrb[12].mxu1  ;;  %7175 = vpow2.f32 %v6215_v5  ;;  %12306 = vst [vmem:[#allocation56_spill] sm:$0xff] %v8669_v18  ;;  %v8681_v5 = vrot.slane %v2396_v8, %v8585_v29  ;;  %v8687_v59 = vmul.f32 0.0, %v8669_v18 }
 0x2d2   : > { %v7160_v4 = vpop.eup %7159  ;;  %v2273_v37 = vadd.f32 1.0, %v7158_v53  ;;  %v8662_v19 = vadd.f32 %v6707_v17, %v8569_v20  ;;  %v2091_v34 = vpop.f32.mrb[13].mxu1  ;;  %7177 = vrcp.f32 %v2272_v32  ;;  %v2930_v32 = vadd.f32 %v8654_v47, %v8659_v38 }
 0x2d3   : > { %v2271_v23 = vadd.f32 1.0, %v7160_v4  ;;  %v8666_v48 = vpop.f32.mrb[14].mxu1  ;;  %7179 = vrcp.f32 %v2270_v39  ;;  %12309 = vst [vmem:[#allocation59_spill] sm:$0xff] %v8687_v59  ;;  %v8693_v35 = vrot.slane %v3718_v3, 2 }
 0x2d4   : > { %12304 = vst [vmem:[#allocation54_spill] sm:$0xff] %v8662_v19  ;;  %12305 = vst [vmem:[#allocation55_spill] sm:$0xff] %v8666_v48  ;;  %v7162_v16 = vpop.eup %7161  ;;  %v6220_v53 = vmul.f32 -1.442695, %v8662_v19  ;;  %v8672_v13 = vpop.f32.mrb[15].mxu1  ;;  %7181 = vrcp.f32 %v2273_v37 }
 0x2d5   : > { %12307 = vst [vmem:[#allocation57_spill] sm:$0xff] %v8672_v13  ;;  %v7164_v62 = vpop.eup %7163  ;;  %v8675_v17 = vmul.f32 %v7162_v16, %v8572_v1  ;;  %v8691_v16 = vrot.slane %v3196_v24, 2  ;;  %12311 = vst [vmem:[#allocation61_spill] sm:$0xff] %v8693_v35  ;;  %7183 = vrcp.f32 %v2271_v23 }
 0x2d6   : > { %v2362_v4 = vmul.f32 %v7164_v62, %v8575_v41  ;;  %v7166_v8 = vpop.eup %7165  ;;  %7185 = vpow2.f32 %v6220_v53  ;;  %v8702_v62 = vadd.f32 %v8569_v20, %v2091_v34 }
 0x2d7   : > { %v2470_v1 = vmul.f32 %v8595_v40, %v8675_v17  ;;  %12310 = vst [vmem:[#allocation60_spill] sm:$0xff] %v8691_v16  ;;  %v7168_v37 = vpop.eup %7167  ;;  %v8706_v29 = vmul.f32 %v8612_v43, %v8675_v17  ;;  %v8710_v3 = vmul.f32 %v8616_v46, %v8675_v17  ;;  %v8717_v24 = vmul.f32 %v8678_v12, %v8675_v17 }
 0x2d8   : > { %v8696_v39 = vmul.f32 %v8595_v40, %v2362_v4  ;;  %v8699_v41 = vmul.f32 %v8616_v46, %v2362_v4  ;;  %12312 = vst [vmem:[#allocation62_spill] sm:$0xff] %v8702_v62  ;;  %v8713_v23 = vmul.f32 %v8678_v12, %v2362_v4  ;;  %v8719_v53 = vpop.eup %7169  ;;  %v2898_v14 = vmul.f32 %v8637_v36, %v2362_v4 }
 0x2d9   : > { %12313 = vst [vmem:[#allocation63_spill] sm:$0xff] %v8719_v53  ;;  %v2534_v34 = vrot.slane %v2470_v1, 1  ;;  %v8724_v61 = vmul.f32 %v8651_v54, %v2362_v4  ;;  %v8726_v25 = vpop.eup %7171  ;;  %v2402_v56 = vmul.f32 %v8612_v43, %v2362_v4  ;;  %v8732_v33 = vmul.f32 %v8651_v54, %v8675_v17 }
 0x2da   : > { %v2531_v63 = vrot.slane %v8696_v39, 1  ;;  %12314 = vst [vmem:[#allocation64_spill] sm:$0xff] %v8726_v25  ;;  %v8736_v1 = vmul.f32 %v8681_v5, %v8675_v17  ;;  %v8738_v39 = vpop.eup %7173  ;;  %v2738_v60 = vrot.slane %v8699_v41, 2  ;;  %v8744_v28 = vmul.f32 %v8656_v57, %v8675_v17 }
 0x2db   : > { %12315 = vst [vmem:[#allocation65_spill] sm:$0xff] %v8738_v39  ;;  %v8747_v4 = vmul.f32 %v7166_v8, %v8579_v49  ;;  %v8749_v55 = vpop.eup %7175  ;;  %v3049_v9 = vrot.slane %v8717_v24, 1  ;;  %v12317_v2 = vrot.slane %v8713_v23, 1  ;;  %v3260_v15 = vrot.slane %v8724_v61, 2  ;;  %v8801_v39 = vpop.f32.mrb[16].mxu1 }
 0x2dc   : > { %v2625_v30 = vadd.f32 %v2531_v63, %v8620_v45  ;;  %12316 = vst [vmem:[#allocation66_spill] sm:$0xff] %v8749_v55  ;;  %v8756_v11 = vpop.eup %7177  ;;  %v8759_v41 = vadd.f32 %v2534_v34, %v8620_v45  ;;  %v2931_v49 = vadd.f32 %v2898_v14, %v8659_v38  ;;  %v2363_v61 = vmul.f32 %v7168_v37, %v8583_v31 }
 0x2dd   : > { %v3142_v0 = vadd.f32 %v12317_v2, %v2930_v32  ;;  %v8764_v8 = vmul.f32 %v8595_v40, %v8747_v4  ;;  %v8766_v10 = vpop.eup %7179  ;;  %v2985_v19 = vmul.f32 %v8678_v12, %v8747_v4  ;;  %v12320_v22 = vrot.slane %v8736_v1, 1  ;;  %12321 = vst [vmem:[#allocation69_spill] sm:$0xff] %v8801_v39 }
 0x2de   : > { %v2848_v7 = vadd.f32 %v2738_v60, %v2625_v30  ;;  %v8771_v32 = vpop.eup %7181  ;;  %v2469_v31 = vmul.f32 %v8595_v40, %v2363_v61  ;;  %v2403_v26 = vmul.f32 %v8612_v43, %v2363_v61  ;;  %v2899_v13 = vmul.f32 %v8637_v36, %v2363_v61 }
 0x2df   : > { %v3373_v50 = vadd.f32 %v3260_v15, %v3142_v0  ;;  %v12081_v14 = vrot.slane %v8764_v8, 1  ;;  %v8778_v44 = vpop.eup %7183  ;;  %v8783_v0 = vmul.f32 %v8616_v46, %v8747_v4  ;;  %v2983_v55 = vmul.f32 %v8678_v12, %v2363_v61 }
 0x2e0   : > { %v2933_v27 = vadd.f32 %v8654_v47, %v2848_v7  ;;  %12318 = vst [vmem:[#allocation67_spill] sm:$0xff] %v8778_v44  ;;  %v2900_v7 = vmul.f32 %v8637_v36, %v8675_v17  ;;  %v8788_v37 = vpop.eup %7185  ;;  %v2532_v62 = vrot.slane %v2469_v31, 1  ;;  %v3050_v48 = vrot.slane %v2985_v19, 1 }
 0x2e1   : > { %v3456_v24 = vadd.f32 %v8687_v59, %v3373_v50  ;;  %12319 = vst [vmem:[#allocation68_spill] sm:$0xff] %v8788_v37  ;;  %v8793_v2 = vsel %vm664_vm1, %v2534_v34, %v12081_v14  ;;  %v2676_v50 = vmul.f32 %v8616_v46, %v2363_v61  ;;  %v8808_v34 = vld [vmem:[%s12024_s6] ss:$0 sm:$0xff]  ;;  %v3195_v20 = vmul.f32 %v8651_v54, %v2363_v61 }
 0x2e2   : > { %v3145_v30 = vadd.f32 %v3049_v9, %v2933_v27  ;;  %v12322_v27 = vrot.slane %v8732_v33, 2  ;;  %v2533_v31 = vsel %vm664_vm1, %v2531_v63, %v2532_v62  ;;  %v2627_v25 = vadd.f32 %v2532_v62, %v2403_v26 }
 0x2e3   : > { %v3664_v52 = vadd.f32 %v12320_v22, %v3456_v24  ;;  %v2739_v14 = vrot.slane %v2676_v50, 2  ;;  %v12323_v22 = vrot.slane %v8744_v28, 2  ;;  %v2932_v39 = vadd.f32 %v2899_v13, %v8659_v38 }
 0x2e4   : > { %v3376_v37 = vadd.f32 %v12322_v27, %v3145_v30  ;;  %v2626_v53 = vadd.f32 %v2533_v31, %v2402_v56  ;;  %v2901_v50 = vmul.f32 %v8637_v36, %v8747_v4  ;;  %v3047_v44 = vrot.slane %v2983_v55, 1 }
 0x2e5   : > { %v3887_v24 = vadd.f32 %v12323_v22, %v3664_v52  ;;  %v2740_v30 = vsel %vm850_vm0, %v2738_v60, %v2739_v14  ;;  %v2741_v27 = vsel %vm850_vm0, %v2739_v14, %v8647_v51  ;;  %v3051_v52 = vsel %vm664_vm1, %v3049_v9, %v3050_v48 }
 0x2e6   : > { %v2850_v61 = vadd.f32 %v2741_v27, %v2627_v25  ;;  %v2849_v63 = vadd.f32 %v2740_v30, %v2626_v53  ;;  %v3198_v38 = vmul.f32 %v8651_v54, %v8747_v4  ;;  %v3261_v56 = vrot.slane %v3195_v20, 2  ;;  %v8832_v25 = vpop.f32.mrb[17].mxu1 }
 0x2e7   : > { %v8821_v19 = vadd.f32 %v8808_v34, %v3887_v24  ;;  %v3426_v60 = vmul.f32 %v8669_v18, %v8675_v17  ;;  %v12324_v62 = vrot.slane %v8713_v23, 1  ;;  %v3144_v22 = vadd.f32 %v3047_v44, %v2932_v39  ;;  %12325 = vst [vmem:[#allocation70_spill] sm:$0xff] %v8832_v25 }
 0x2e8   : > { %v2935_v13 = vadd.f32 %v2901_v50, %v2850_v61  ;;  %v2934_v55 = vadd.f32 %v2900_v7, %v2849_v63  ;;  %v3262_v53 = vsel %vm850_vm0, %v3260_v15, %v3261_v56  ;;  %v3264_v20 = vsel %vm850_vm0, %v3261_v56, %v8691_v16 }
 0x2e9   : > { %v6239_v26 = vmul.f32 -1.442695, %v8821_v19  ;;  %v3048_v14 = vsel %vm664_vm1, %v12324_v62, %v3047_v44  ;;  %v3266_v17 = vrot.slane %v3198_v38, 2  ;;  %v3375_v31 = vadd.f32 %v3264_v20, %v3144_v22 }
 0x2ea   : > { %v3143_v9 = vadd.f32 %v3048_v14, %v2931_v49  ;;  %v3147_v24 = vadd.f32 %v3050_v48, %v2935_v13  ;;  %v3146_v30 = vadd.f32 %v3051_v52, %v2934_v55  ;;  %v3427_v23 = vmul.f32 %v8669_v18, %v8747_v4 }
 0x2eb   : > { %7187 = vpow2.f32 %v6239_v26  ;;  %v3509_v44 = vmul.f32 %v8681_v5, %v8747_v4  ;;  %v12326_v39 = vrot.slane %v8732_v33, 2  ;;  %v3268_v15 = vsel %vm850_vm0, %v3266_v17, %v8691_v16 }
 0x2ec   : > { %v3374_v27 = vadd.f32 %v3262_v53, %v3143_v9  ;;  %v3717_v48 = vmul.f32 %v8656_v57, %v8747_v4  ;;  %v2368_v7 = vmul.f32 %v8756_v11, %v8598_v6  ;;  %v8852_v61 = vadd.f32 %v3268_v15, %v3147_v24 }
 0x2ed   : > { %v3267_v49 = vsel %vm850_vm0, %v12326_v39, %v3266_v17  ;;  %v3458_v63 = vadd.f32 %v3427_v23, %v3375_v31  ;;  %v2405_v33 = vmul.f32 %v8612_v43, %v8747_v4  ;;  %v3571_v38 = vrot.slane %v3509_v44, 1 }
 0x2ee   : > { %v8850_v50 = vadd.f32 %v3267_v49, %v3146_v30  ;;  %v3457_v52 = vadd.f32 %v3426_v60, %v3374_v27  ;;  %v3779_v56 = vrot.slane %v3717_v48, 2  ;;  %v8857_v26 = vmul.f32 %v8595_v40, %v2368_v7 }
 0x2ef   : > { %v12327_v13 = vrot.slane %v8710_v3, 2  ;;  %v12089_v11 = vrot.slane %v8783_v0, 2  ;;  %v8864_v6 = vmul.f32 %v8616_v46, %v2368_v7  ;;  %v8867_v60 = vmul.f32 %v8678_v12, %v2368_v7 }
 0x2f0   : > { %v12328_v14 = vrot.slane %v8764_v8, 1  ;;  %v12329_v22 = vrot.slane %v8736_v1, 1  ;;  %v3666_v9 = vadd.f32 %v3571_v38, %v3458_v63  ;;  %v12330_v53 = vrot.slane %v8744_v28, 2  ;;  %v8885_v8 = vpop.f32.mrb[18].mxu1 }
 0x2f1   : > { %v2851_v62 = vadd.f32 %v12327_v13, %v8759_v41  ;;  %v3459_v20 = vadd.f32 %v8687_v59, %v3376_v37  ;;  %v3782_v17 = vsel %vm850_vm0, %v3779_v56, %v8693_v35  ;;  %v8883_v31 = vmul.f32 %v8651_v54, %v2368_v7  ;;  %12331 = vst [vmem:[#allocation71_spill] sm:$0xff] %v8885_v8 }
 0x2f2   : > { %v8871_v4 = vadd.f32 %v12328_v14, %v2405_v33  ;;  %v3572_v55 = vsel %vm664_vm1, %v12329_v22, %v3571_v38  ;;  %v3780_v41 = vsel %vm850_vm0, %v12330_v53, %v3779_v56  ;;  %v3889_v30 = vadd.f32 %v3782_v17, %v3666_v9 }
 0x2f3   : > { %v3665_v24 = vadd.f32 %v3572_v55, %v3457_v52  ;;  %v8888_v1 = vmul.f32 %v8612_v43, %v2368_v7  ;;  %v12091_v27 = vrot.slane %v8857_v26, 1  ;;  %v8892_v28 = vmul.f32 %v8637_v36, %v2368_v7 }
 0x2f4   : > { %v3055_v44 = vrot.slane %v8867_v60, 1  ;;  %v2366_v39 = vmul.f32 %v8766_v10, %v8601_v58  ;;  %v8899_v15 = vadd.f32 %v8808_v34, %v3889_v30  ;;  %v8902_v48 = vmul.f32 %v8681_v5, %v2368_v7 }
 0x2f5   : > { %v3888_v23 = vadd.f32 %v3780_v41, %v3665_v24  ;;  %v7188_v49 = vpop.eup %7187  ;;  %v2629_v52 = vadd.f32 %v8793_v2, %v8706_v29  ;;  %v12332_v63 = vmov %v12327_v13  ;;  %v8916_v58 = vmul.f32 %v8669_v18, %v2368_v7 }
 0x2f6   : > { %v2744_v33 = vsel %vm850_vm0, %v12332_v63, %v12089_v11  ;;  %v4134_v38 = vadd.f32 1.0, %v7188_v49  ;;  %v6241_v13 = vmul.f32 -1.442695, %v8899_v15  ;;  %v8920_v14 = vmul.f32 %v8656_v57, %v2368_v7 }
 0x2f7   : > { %v8912_v56 = vadd.f32 %v8808_v34, %v3888_v23  ;;  %v8923_v29 = vmul.f32 %v8595_v40, %v2366_v39  ;;  %v8926_v3 = vmul.f32 %v8616_v46, %v2366_v39  ;;  %v2852_v22 = vadd.f32 %v2744_v33, %v2629_v52  ;;  %v8951_v52 = vpop.f32.mrb[19].mxu1 }
 0x2f8   : > { %7189 = vrcp.f32 %v4134_v38  ;;  %v2902_v55 = vmul.f32 %v8637_v36, %v2366_v39  ;;  %v3576_v9 = vrot.slane %v8902_v48, 1  ;;  %v8936_v24 = vmul.f32 %v8678_v12, %v2366_v39  ;;  %12333 = vst [vmem:[#allocation72_spill] sm:$0xff] %v8951_v52 }
 0x2f9   : > { %v6240_v2 = vmul.f32 -1.442695, %v8912_v56  ;;  %7191 = vpow2.f32 %v6241_v13  ;;  %v12087_v53 = vrot.slane %v8923_v29, 1  ;;  %v12085_v7 = vrot.slane %v8926_v3, 2 }
 0x2fa   : > { %v8933_v41 = vadd.f32 %v2902_v55, %v2852_v22  ;;  %v8939_v17 = vmul.f32 %v8651_v54, %v2366_v39  ;;  %v3428_v23 = vmul.f32 %v8669_v18, %v2366_v39  ;;  %v8946_v49 = vmul.f32 %v8681_v5, %v2366_v39 }
 0x2fb   : > { %7193 = vpow2.f32 %v6240_v2  ;;  %v2631_v30 = vadd.f32 %v12087_v53, %v8620_v45  ;;  %v8949_v48 = vmul.f32 %v8656_v57, %v2366_v39  ;;  %v3787_v63 = vrot.slane %v8920_v14, 2 }
 0x2fc   : > { %v2936_v33 = vadd.f32 %v8654_v47, %v2851_v62  ;;  %v12084_v38 = vrot.slane %v8936_v24, 1  ;;  %v8958_v13 = vmul.f32 %v8771_v32, %v8605_v21  ;;  %v8961_v2 = vmul.f32 %v8612_v43, %v2366_v39 }
 0x2fd   : > { %v2854_v22 = vadd.f32 %v12085_v7, %v2631_v30  ;;  %v8966_v55 = vadd.f32 %v3428_v23, %v8850_v50  ;;  %v12086_v10 = vrot.slane %v8946_v49, 1  ;;  %v12088_v14 = vrot.slane %v8939_v17, 2 }
 0x2fe   : > { %v3148_v62 = vadd.f32 %v12084_v38, %v2936_v33  ;;  %v8974_v21 = vmul.f32 %v8595_v40, %v8958_v13  ;;  %v8978_v32 = vmul.f32 %v8616_v46, %v8958_v13  ;;  %v12092_v30 = vrot.slane %v8949_v48, 2 }
 0x2ff   : > { %v2939_v39 = vadd.f32 %v8654_v47, %v2854_v22  ;;  %v3667_v50 = vadd.f32 %v12086_v10, %v3459_v20  ;;  %v8986_v23 = vmul.f32 %v8678_v12, %v8958_v13  ;;  %v8993_v38 = vmul.f32 %v8637_v36, %v8958_v13  ;;  %v12334_v22 = vld [vmem:[#allocation67_spill] sm:$0xff] }
 0x300   : > { %v3379_v33 = vadd.f32 %v12088_v14, %v3148_v62  ;;  %v12090_v37 = vrot.slane %v8974_v21, 1  ;;  %v2367_v7 = vmul.f32 %v12334_v22, %v8609_v42 }
 0x301   : > { %v8999_v20 = vadd.f32 %v3055_v44, %v2939_v39  ;;  %v3890_v10 = vadd.f32 %v12092_v30, %v3667_v50  ;;  %v12095_v62 = vrot.slane %v8986_v23, 1  ;;  %v9015_v39 = vmul.f32 %v8651_v54, %v8958_v13 }
 0x302   : > { %v7190_v14 = vpop.eup %7189  ;;  %v3462_v11 = vadd.f32 %v8687_v59, %v3379_v33  ;;  %v9011_v42 = vsel %vm664_vm1, %v12091_v27, %v12090_v37  ;;  %v9019_v50 = vmul.f32 %v8669_v18, %v8958_v13  ;;  %v9036_v27 = vmul.f32 %v8681_v5, %v8958_v13 }
 0x303   : > { %v7192_v22 = vpop.eup %7191  ;;  %v9022_v53 = vmul.f32 %v7190_v14, %v8821_v19  ;;  %v9025_v33 = vadd.f32 %v8808_v34, %v3890_v10  ;;  %v9032_v37 = vsel %vm664_vm1, %v3055_v44, %v12095_v62  ;;  %v3722_v19 = vmul.f32 %v8656_v57, %v8958_v13 }
 0x304   : > { %v4136_v52 = vadd.f32 1.0, %v7192_v22  ;;  %v3670_v8 = vadd.f32 %v3576_v9, %v3462_v11  ;;  %v2407_v10 = vmul.f32 %v8612_v43, %v2367_v7  ;;  %v12099_v44 = vrot.slane %v9036_v27, 1 }
 0x305   : > { %12335 = vst [vmem:[#allocation67_spill] sm:$0xff] %v9025_v33  ;;  %v7194_v30 = vpop.eup %7193  ;;  %v6242_v60 = vmul.f32 -1.442695, %v9025_v33  ;;  %v3788_v47 = vrot.slane %v3722_v19, 2  ;;  %v2473_v25 = vmul.f32 %v8595_v40, %v2367_v7  ;;  %v2680_v22 = vmul.f32 %v8616_v46, %v2367_v7 }
 0x306   : > { %v4135_v59 = vadd.f32 1.0, %v7194_v30  ;;  %7195 = vrcp.f32 %v4136_v52  ;;  %v3893_v62 = vadd.f32 %v3787_v63, %v3670_v8  ;;  %v3578_v11 = vsel %vm664_vm1, %v3576_v9, %v12099_v44 }
 0x307   : > { %v12336_v14 = vrot.slane %v8783_v0, 2  ;;  %v9057_v8 = vsel %vm850_vm0, %v3787_v63, %v3788_v47  ;;  %v2538_v52 = vrot.slane %v2473_v25, 1  ;;  %v2747_v9 = vrot.slane %v2680_v22, 2 }
 0x308   : > { %7197 = vrcp.f32 %v4135_v59  ;;  %v9054_v33 = vadd.f32 %v8808_v34, %v3893_v62  ;;  %v9061_v59 = vsel %vm850_vm0, %v3788_v47, %v8693_v35  ;;  %v2903_v44 = vmul.f32 %v8637_v36, %v2367_v7 }
 0x309   : > { %v2745_v30 = vsel %vm850_vm0, %v12336_v14, %v8647_v51  ;;  %7199 = vpow2.f32 %v6242_v60  ;;  %v2987_v14 = vmul.f32 %v8678_v12, %v2367_v7  ;;  %v3200_v62 = vmul.f32 %v8651_v54, %v2367_v7 }
 0x30a   : > { %12337 = vst [vmem:[#allocation73_spill] sm:$0xff] %v9054_v33  ;;  %v2853_v19 = vadd.f32 %v2745_v30, %v8871_v4  ;;  %v6245_v0 = vmul.f32 -1.442695, %v9054_v33  ;;  %v3429_v60 = vmul.f32 %v8669_v18, %v2367_v7  ;;  %v12338_v63 = vrot.slane %v8923_v29, 1 }
 0x30b   : > { %v2633_v46 = vadd.f32 %v2538_v52, %v2407_v10  ;;  %v12339_v25 = vrot.slane %v8926_v3, 2  ;;  %v2749_v22 = vsel %vm850_vm0, %v2747_v9, %v8647_v51  ;;  %v3053_v54 = vrot.slane %v2987_v14, 1 }
 0x30c   : > { %v2539_v47 = vsel %vm664_vm1, %v12338_v63, %v2538_v52  ;;  %7201 = vpow2.f32 %v6245_v0  ;;  %v2938_v12 = vadd.f32 %v2903_v44, %v2853_v19  ;;  %v3270_v18 = vrot.slane %v3200_v62, 2 }
 0x30d   : > { %v2748_v4 = vsel %vm850_vm0, %v12339_v25, %v2747_v9  ;;  %v2632_v30 = vadd.f32 %v2539_v47, %v8961_v2  ;;  %v2856_v36 = vadd.f32 %v2749_v22, %v2633_v46  ;;  %v3461_v33 = vadd.f32 %v3429_v60, %v8852_v61  ;;  %v9084_v9 = vpop.f32.mrb[20].mxu1 }
 0x30e   : > { %v3511_v29 = vmul.f32 %v8681_v5, %v2367_v7  ;;  %v12340_v10 = vrot.slane %v8936_v24, 1  ;;  %v3150_v52 = vadd.f32 %v3053_v54, %v2938_v12  ;;  %v3720_v25 = vmul.f32 %v8656_v57, %v2367_v7  ;;  %12341 = vst [vmem:[#allocation74_spill] sm:$0xff] %v9084_v9 }
 0x30f   : > { %v2855_v63 = vadd.f32 %v2748_v4, %v2632_v30  ;;  %v9087_v2 = vadd.f32 %v8993_v38, %v2856_v36  ;;  %v12342_v44 = vrot.slane %v8939_v17, 2  ;;  %v3272_v19 = vsel %vm850_vm0, %v3270_v18, %v8691_v16  ;;  %v12344_v38 = vld [vmem:[#allocation64_spill] sm:$0xff] }
 0x310   : > { %v3054_v3 = vsel %vm664_vm1, %v12340_v10, %v3053_v54  ;;  %v7196_v24 = vpop.eup %7195  ;;  %v3381_v0 = vadd.f32 %v3272_v19, %v3150_v52  ;;  %v3574_v14 = vrot.slane %v3511_v29, 1  ;;  %v3784_v12 = vrot.slane %v3720_v25, 2  ;;  %v12343_v54 = vld [vmem:[#allocation63_spill] sm:$0xff]  ;;  %v9105_v10 = vpop.f32.mrb[21].mxu1 }
 0x311   : > { %v3149_v46 = vadd.f32 %v3054_v3, %v8933_v41  ;;  %v3271_v61 = vsel %vm850_vm0, %v12342_v44, %v3270_v18  ;;  %v2276_v7 = vadd.f32 1.0, %v12343_v54  ;;  %v4280_v60 = vmul.f32 %v7196_v24, %v8899_v15  ;;  %12346 = vst [vmem:[#allocation63_spill] sm:$0xff] %v9105_v10 }
 0x312   : > { %v7198_v62 = vpop.eup %7197  ;;  %v2274_v47 = vadd.f32 1.0, %v12344_v38  ;;  %v2635_v41 = vadd.f32 %v9011_v42, %v8888_v1  ;;  %v3464_v18 = vadd.f32 %v9019_v50, %v3381_v0  ;;  %v12345_v22 = vrot.slane %v8946_v49, 1 }
 0x313   : > { %v3380_v36 = vadd.f32 %v3271_v61, %v3149_v46  ;;  %v7200_v17 = vpop.eup %7199  ;;  %v4279_v4 = vmul.f32 %v7198_v62, %v8912_v56  ;;  %v3669_v29 = vadd.f32 %v3574_v14, %v3461_v33  ;;  %v4378_v3 = vrot.slane %v4280_v60, 7 }
 0x314   : > { %v3575_v30 = vsel %vm664_vm1, %v12345_v22, %v3574_v14  ;;  %v4137_v15 = vadd.f32 1.0, %v7200_v17  ;;  %v12347_v1 = vrot.slane %v9036_v27, 1  ;;  %v12348_v56 = vrot.slane %v8949_v48, 2 }
 0x315   : > { %v3463_v52 = vadd.f32 %v8916_v58, %v3380_v36  ;;  %v3668_v25 = vadd.f32 %v3575_v30, %v8966_v55  ;;  %v4376_v46 = vrot.slane %v4279_v4, 7  ;;  %v3786_v49 = vsel %vm850_vm0, %v3784_v12, %v8693_v35 }
 0x316   : > { %v3672_v42 = vadd.f32 %v12347_v1, %v3464_v18  ;;  %v3785_v50 = vsel %vm850_vm0, %v12348_v56, %v3784_v12  ;;  %7203 = vrcp.f32 %v4137_v15  ;;  %v3892_v61 = vadd.f32 %v3786_v49, %v3669_v29  ;;  %v7202_v19 = vpop.eup %7201  ;;  %v12363_v1 = vld [vmem:[#allocation66_spill] sm:$0xff] }
 0x317   : > { %v3671_v33 = vadd.f32 %v3578_v11, %v3463_v52  ;;  %v3891_v44 = vadd.f32 %v3785_v50, %v3668_v25  ;;  %v12349_v58 = vrot.slane %v9022_v53, 7  ;;  %v9122_v27 = vsel %vm4374_vm4, %v4376_v46, %v4378_v3  ;;  %v12359_v52 = vld [vmem:[#allocation55_spill] sm:$0xff]  ;;  %v12361_v25 = vld [vmem:[#allocation65_spill] sm:$0xff] }
 0x318   : > { %12351 = vst [vmem:[#allocation75_spill] sm:$0xff] %v9122_v27  ;;  %v3895_v48 = vadd.f32 %v9061_v59, %v3672_v42  ;;  %7205 = vrcp.f32 %v2276_v7  ;;  %v4140_v24 = vadd.f32 1.0, %v7202_v19  ;;  %v3274_v0 = vrot.slane %v9015_v39, 2  ;;  %v12368_v19 = vld [vmem:[#allocation67_spill] sm:$0xff] }
 0x319   : > { %v9119_v55 = vsel %vm4374_vm4, %v12349_v58, %v4376_v46  ;;  %v3894_v14 = vadd.f32 %v9057_v8, %v3671_v33  ;;  %v9128_v11 = vadd.f32 %v8808_v34, %v3891_v44  ;;  %v12352_v53 = vrot.slane %v8857_v26, 1  ;;  %v12365_v33 = vld [vmem:[#allocation68_spill] sm:$0xff] }
 0x31a   : > { %12350 = vst [vmem:[#allocation64_spill] sm:$0xff] %v9119_v55  ;;  %v9134_v54 = vadd.f32 %v8808_v34, %v3892_v61  ;;  %v9137_v62 = vadd.f32 %v8808_v34, %v3895_v48  ;;  %v12353_v59 = vrot.slane %v8978_v32, 2  ;;  %v12354_v7 = vrot.slane %v8864_v6, 2  ;;  %v12366_v61 = vld [vmem:[#allocation57_spill] sm:$0xff] }
 0x31b   : > { %v2634_v12 = vadd.f32 %v12352_v53, %v8620_v45  ;;  %7207 = vrcp.f32 %v4140_v24  ;;  %v9145_v8 = vadd.f32 %v8808_v34, %v3894_v14  ;;  %v6243_v60 = vmul.f32 -1.442695, %v9128_v11  ;;  %v12371_v14 = vld [vmem:[#allocation47_spill] sm:$0xff]  ;;  %v12376_v32 = vld [vmem:[#allocation53_spill] sm:$0xff] }
 0x31c   : > { %v2752_v39 = vsel %vm850_vm0, %v12354_v7, %v12353_v59  ;;  %v6244_v36 = vmul.f32 -1.442695, %v9134_v54  ;;  %v6247_v38 = vmul.f32 -1.442695, %v9137_v62  ;;  %7209 = vrcp.f32 %v2274_v47  ;;  %v12358_v47 = vld [vmem:[#allocation40_spill] sm:$0xff] }
 0x31d   : > { %v9148_v26 = vadd.f32 %v2752_v39, %v2635_v41  ;;  %v2940_v17 = vadd.f32 %v8892_v28, %v2855_v63  ;;  %7211 = vpow2.f32 %v6243_v60  ;;  %v6246_v4 = vmul.f32 -1.442695, %v9145_v8 }
 0x31e   : > { %v12355_v18 = vrot.slane %v8883_v31, 2  ;;  %v12357_v41 = vmov %v12354_v7  ;;  %7213 = vpow2.f32 %v6244_v36  ;;  %v9165_v28 = vadd.f32 %v12359_v52, %v12358_v47  ;;  %v12374_v7 = vld [vmem:[#allocation70_spill] sm:$0xff]  ;;  %v12380_v52 = vld [vmem:[#allocation71_spill] sm:$0xff] }
 0x31f   : > { %v2857_v3 = vadd.f32 %v12357_v41, %v2634_v12  ;;  %v3152_v15 = vadd.f32 %v9032_v37, %v2940_v17  ;;  %v2409_v63 = vmul.f32 %v8612_v43, %v8958_v13  ;;  %7215 = vpow2.f32 %v6246_v4  ;;  %v12372_v12 = vld [vmem:[#allocation69_spill] sm:$0xff]  ;;  %v12378_v4 = vld [vmem:[#allocation59_spill] sm:$0xff] }
 0x320   : > { %v3275_v22 = vsel %vm850_vm0, %v12355_v18, %v3274_v0  ;;  %v12356_v30 = vmov %v12355_v18  ;;  %12360 = vst [vmem:[#allocation40_spill] sm:$0xff] %v9165_v28  ;;  %v2277_v46 = vadd.f32 1.0, %v12361_v25  ;;  %v12362_v31 = vrot.slane %v8986_v23, 1  ;;  %v7204_v56 = vpop.eup %7203  ;;  %v12382_v25 = vld [vmem:[#allocation72_spill] sm:$0xff] }
 0x321   : > { %v3382_v29 = vadd.f32 %v12356_v30, %v8999_v20  ;;  %7217 = vpow2.f32 %v6247_v38  ;;  %v9173_v6 = vadd.f32 %v3275_v22, %v3152_v15  ;;  %v2275_v42 = vadd.f32 1.0, %v12363_v1 }
 0x322   : > { %v3153_v20 = vadd.f32 %v12362_v31, %v9087_v2  ;;  %v3276_v37 = vsel %vm850_vm0, %v3274_v0, %v8691_v16  ;;  %v12364_v50 = vrot.slane %v8974_v21, 1  ;;  %v2280_v44 = vadd.f32 1.0, %v12365_v33  ;;  %v7206_v2 = vpop.eup %7205  ;;  %v12370_v0 = vld [vmem:[#allocation62_spill] sm:$0xff]  ;;  %v12384_v31 = vld [vmem:[#allocation45_spill] sm:$0xff] }
 0x323   : > { %v9185_v23 = vadd.f32 %v12358_v47, %v12366_v61  ;;  %v9188_v58 = vmul.f32 %v7204_v56, %v12368_v19  ;;  %v12369_v48 = vmov %v12353_v59  ;;  %v6218_v21 = vmul.f32 -1.442695, %v12370_v0  ;;  %v12387_v56 = vld [vmem:[#allocation73_spill] sm:$0xff]  ;;  %v9252_v61 = vpop.f32.mrb[22].mxu1 }
 0x324   : > { %v2636_v49 = vadd.f32 %v12364_v50, %v2409_v63  ;;  %v9180_v13 = vadd.f32 %v3276_v37, %v3153_v20  ;;  %v2753_v24 = vsel %vm850_vm0, %v12369_v48, %v8647_v51  ;;  %v2372_v53 = vmul.f32 %v7206_v2, %v12371_v14  ;;  %12391 = vst [vmem:[#allocation73_spill] sm:$0xff] %v9252_v61  ;;  %v12392_v48 = vld [vmem:[#allocation58_spill] sm:$0xff] }
 0x325   : > { %12367 = vst [vmem:[#allocation55_spill] sm:$0xff] %v9185_v23  ;;  %7219 = vrcp.f32 %v2277_v46  ;;  %v9198_v59 = vadd.f32 %v12372_v12, %v12358_v47  ;;  %v9202_v39 = vadd.f32 %v12358_v47, %v12374_v7  ;;  %v9206_v60 = vadd.f32 %v9122_v27, %v9119_v55  ;;  %v7208_v17 = vpop.eup %7207  ;;  %v12395_v12 = vld [vmem:[#allocation56_spill] sm:$0xff] }
 0x326   : > { %v9209_v36 = vadd.f32 %v12376_v32, %v2857_v3  ;;  %7221 = vrcp.f32 %v2275_v42  ;;  %v9212_v38 = vmul.f32 -1.442695, %v9165_v28  ;;  %v9215_v18 = vadd.f32 %v12378_v4, %v3382_v29  ;;  %v7210_v41 = vpop.eup %7209 }
 0x327   : > { %12373 = vst [vmem:[#allocation65_spill] sm:$0xff] %v9198_v59  ;;  %12375 = vst [vmem:[#allocation66_spill] sm:$0xff] %v9202_v39  ;;  %v9217_v22 = vadd.f32 %v2753_v24, %v2636_v49  ;;  %7223 = vrcp.f32 %v2280_v44  ;;  %v9220_v30 = vmul.f32 -1.442695, %v9185_v23  ;;  %v9224_v3 = vmul.f32 %v8595_v40, %v2372_v53  ;;  %v7212_v46 = vpop.eup %7211 }
 0x328   : > { %12377 = vst [vmem:[#allocation68_spill] sm:$0xff] %v9212_v38  ;;  %v9228_v63 = vadd.f32 %v12380_v52, %v12358_v47  ;;  %v9232_v29 = vadd.f32 %v12358_v47, %v12382_v25  ;;  %v9235_v20 = vmul.f32 %v12384_v31, %v2372_v53  ;;  %7225 = vpow2.f32 %v6218_v21  ;;  %v7214_v37 = vpop.eup %7213  ;;  %v12389_v47 = vld [vmem:[#allocation50_spill] sm:$0xff]  ;;  %v12393_v21 = vld [vmem:[#allocation52_spill] sm:$0xff] }
 0x329   : > { %12379 = vst [vmem:[#allocation57_spill] sm:$0xff] %v9220_v30  ;;  %v9238_v1 = vmul.f32 -1.442695, %v9198_v59  ;;  %v9241_v42 = vmul.f32 -1.442695, %v9202_v39  ;;  %v9244_v50 = vmul.f32 %v7208_v17, %v12387_v56  ;;  %v4138_v49 = vadd.f32 1.0, %v7212_v46  ;;  %v7216_v2 = vpop.eup %7215 }
 0x32a   : > { %12381 = vst [vmem:[#allocation67_spill] sm:$0xff] %v9228_v63  ;;  %12383 = vst [vmem:[#allocation47_spill] sm:$0xff] %v9232_v29  ;;  %v9247_v33 = vmul.f32 %v8612_v43, %v2372_v53  ;;  %v9250_v44 = vmul.f32 %v12389_v47, %v2372_v53  ;;  %v4139_v19 = vadd.f32 1.0, %v7214_v37  ;;  %v9255_v24 = vmul.f32 %v12392_v48, %v2372_v53  ;;  %v12396_v46 = vld [vmem:[#allocation48_spill] sm:$0xff] }
 0x32b   : > { %12385 = vst [vmem:[#allocation69_spill] sm:$0xff] %v9238_v1  ;;  %12386 = vst [vmem:[#allocation70_spill] sm:$0xff] %v9241_v42  ;;  %v9258_v14 = vmul.f32 %v12393_v21, %v2372_v53  ;;  %v9261_v7 = vmul.f32 %v12395_v12, %v2372_v53  ;;  %v7218_v17 = vpop.eup %7217  ;;  %v4141_v52 = vadd.f32 1.0, %v7216_v2  ;;  %7227 = vrcp.f32 %v4138_v49  ;;  %v12397_v42 = vld [vmem:[#allocation49_spill] sm:$0xff] }
 0x32c   : > { %12388 = vst [vmem:[#allocation71_spill] sm:$0xff] %v9247_v33  ;;  %12390 = vst [vmem:[#allocation72_spill] sm:$0xff] %v9250_v44  ;;  %v2546_v25 = vrot.slane %v9224_v3, 1  ;;  %v9265_v56 = vmul.f32 %v7210_v41, %v12396_v46  ;;  %v4142_v15 = vadd.f32 1.0, %v7218_v17  ;;  %7229 = vrcp.f32 %v4139_v19 }
 0x32d   : > { %12394 = vst [vmem:[#allocation58_spill] sm:$0xff] %v9258_v14  ;;  %v9269_v27 = vmul.f32 %v8681_v5, %v2372_v53  ;;  %7231 = vrcp.f32 %v4141_v52  ;;  %v9272_v55 = vmul.f32 %v8656_v57, %v2372_v53  ;;  %v4385_v52 = vrot.slane %v9244_v50, 7 }
 0x32e   : > { %v9276_v2 = vmul.f32 %v8595_v40, %v9265_v56  ;;  %v9280_v3 = vmul.f32 %v12384_v31, %v9265_v56  ;;  %7233 = vrcp.f32 %v4142_v15  ;;  %v2906_v49 = vmul.f32 %v12389_v47, %v9265_v56 }
 0x32f   : > { %v7220_v41 = vpop.eup %7219  ;;  %v9286_v19 = vmul.f32 %v12392_v48, %v9265_v56  ;;  %v9290_v53 = vmul.f32 %v12393_v21, %v9265_v56  ;;  %v3432_v37 = vmul.f32 %v12395_v12, %v9265_v56  ;;  %v9298_v15 = vmul.f32 %v8681_v5, %v9265_v56 }
 0x330   : > { %v7222_v17 = vpop.eup %7221  ;;  %v12117_v46 = vrot.slane %v9276_v2, 1  ;;  %v9302_v23 = vadd.f32 %v2906_v49, %v9148_v26  ;;  %v9307_v50 = vmul.f32 %v8656_v57, %v9265_v56  ;;  %v9317_v59 = vmul.f32 %v7220_v41, %v12397_v42  ;;  %v9319_v26 = vpop.f32.mrb[23].mxu1 }
 0x331   : > { %v7224_v39 = vpop.eup %7223  ;;  %v9313_v10 = vadd.f32 %v3432_v37, %v9173_v6  ;;  %12398 = vst [vmem:[#allocation52_spill] sm:$0xff] %v9319_v26  ;;  %v3061_v28 = vrot.slane %v9255_v24, 1  ;;  %v12399_v9 = vrot.slane %v9286_v19, 1  ;;  %v12120_v6 = vrot.slane %v9290_v53, 2 }
 0x332   : > { %v2637_v61 = vadd.f32 %v12117_v46, %v8620_v45  ;;  %v9321_v49 = vpop.eup %7225  ;;  %v12400_v37 = vrot.slane %v9280_v3, 2  ;;  %v12401_v42 = vrot.slane %v9298_v15, 1  ;;  %v12123_v26 = vrot.slane %v9307_v50, 2 }
 0x333   : > { %v3154_v46 = vadd.f32 %v12399_v9, %v9209_v36  ;;  %v9337_v24 = vmul.f32 %v8595_v40, %v9317_v59  ;;  %v2640_v1 = vadd.f32 %v2546_v25, %v8620_v45  ;;  %v3582_v30 = vrot.slane %v9269_v27, 1 }
 0x334   : > { %v2860_v0 = vadd.f32 %v12400_v37, %v2637_v61  ;;  %v3673_v41 = vadd.f32 %v12401_v42, %v9215_v18  ;;  %v9345_v36 = vmul.f32 %v12392_v48, %v9317_v59  ;;  %v3795_v18 = vrot.slane %v9272_v55, 2 }
 0x335   : > { %v3385_v9 = vadd.f32 %v12120_v6, %v3154_v46  ;;  %v7228_v61 = vpop.eup %7227  ;;  %v12125_v38 = vrot.slane %v9337_v24, 1  ;;  %v9356_v6 = vmul.f32 -1.442695, %v9228_v63  ;;  %v12403_v46 = vld [vmem:[#allocation51_spill] sm:$0xff] }
 0x336   : > { %v2945_v37 = vadd.f32 %v12376_v32, %v2860_v0  ;;  %v3896_v42 = vadd.f32 %v12123_v26, %v3673_v41  ;;  %v7230_v14 = vpop.eup %7229  ;;  %v4282_v27 = vmul.f32 %v7228_v61, %v9128_v11  ;;  %v2371_v63 = vmul.f32 %v7222_v17, %v12403_v46 }
 0x337   : > { %v3468_v44 = vadd.f32 %v12378_v4, %v3385_v9  ;;  %12402 = vst [vmem:[#allocation56_spill] sm:$0xff] %v9356_v6  ;;  %v7232_v45 = vpop.eup %7231  ;;  %v4283_v55 = vmul.f32 %v7230_v14, %v9134_v54  ;;  %v9367_v41 = vsel %vm664_vm1, %v2546_v25, %v12125_v38  ;;  %v12405_v25 = vrot.slane %v9188_v58, 7 }
 0x338   : > { %v9359_v33 = vadd.f32 %v3061_v28, %v2945_v37  ;;  %v9362_v0 = vadd.f32 %v8808_v34, %v3896_v42  ;;  %v7234_v11 = vpop.eup %7233  ;;  %v9370_v9 = vmul.f32 %v7232_v45, %v9145_v8  ;;  %v4381_v61 = vrot.slane %v4282_v27, 7 }
 0x339   : > { %v3676_v26 = vadd.f32 %v3582_v30, %v3468_v44  ;;  %v4286_v54 = vmul.f32 %v7234_v11, %v9137_v62  ;;  %v4383_v14 = vrot.slane %v4283_v55, 7  ;;  %v12404_v42 = vrot.slane %v9345_v36, 1 }
 0x33a   : > { %v6248_v37 = vmul.f32 -1.442695, %v9362_v0  ;;  %v9383_v38 = vsel %vm4374_vm4, %v12405_v25, %v4381_v61  ;;  %v4386_v45 = vrot.slane %v9370_v9, 7  ;;  %v12407_v8 = vrot.slane %v9235_v20, 2 }
 0x33b   : > { %v9378_v6 = vsel %vm664_vm1, %v3061_v28, %v12404_v42  ;;  %12406 = vst [vmem:[#allocation48_spill] sm:$0xff] %v9383_v38  ;;  %v3899_v62 = vadd.f32 %v3795_v18, %v3676_v26  ;;  %v9391_v17 = vsel %vm4374_vm4, %v4381_v61, %v4383_v14  ;;  %v2410_v27 = vmul.f32 %v8612_v43, %v9265_v56  ;;  %v12412_v26 = vld [vmem:[#allocation54_spill] sm:$0xff] }
 0x33c   : > { %v9388_v44 = vadd.f32 %v12407_v8, %v2640_v1  ;;  %12409 = vst [vmem:[#allocation51_spill] sm:$0xff] %v9391_v17  ;;  %7235 = vpow2.f32 %v6248_v37  ;;  %v9396_v28 = vmul.f32 -1.442695, %v9232_v29  ;;  %v9399_v58 = vsel %vm4374_vm4, %v4385_v52, %v4386_v45 }
 0x33d   : > { %12411 = vst [vmem:[#allocation77_spill] sm:$0xff] %v9399_v58  ;;  %v9402_v46 = vadd.f32 %v8808_v34, %v3899_v62  ;;  %v9406_v1 = vmul.f32 %v8681_v5, %v9317_v59  ;;  %v9409_v55 = vmul.f32 %v7224_v39, %v12412_v26  ;;  %v4388_v11 = vrot.slane %v4286_v54, 7  ;;  %v9422_v39 = vpop.f32.mrb[24].mxu1 }
 0x33e   : > { %12408 = vst [vmem:[#allocation49_spill] sm:$0xff] %v9388_v44  ;;  %12410 = vst [vmem:[#allocation76_spill] sm:$0xff] %v9396_v28  ;;  %v2909_v56 = vmul.f32 %v12389_v47, %v9317_v59  ;;  %v9415_v9 = vmul.f32 %v8656_v57, %v9317_v59  ;;  %v2477_v52 = vmul.f32 %v8595_v40, %v2371_v63 }
 0x33f   : > { %v6251_v61 = vmul.f32 -1.442695, %v9402_v46  ;;  %v3583_v14 = vrot.slane %v9406_v1, 1  ;;  %v2684_v37 = vmul.f32 %v12384_v31, %v2371_v63  ;;  %v2907_v42 = vmul.f32 %v12389_v47, %v2371_v63  ;;  %12413 = vst [vmem:[#allocation54_spill] sm:$0xff] %v9422_v39 }
 0x340   : > { %v3796_v54 = vrot.slane %v9415_v9, 2  ;;  %v2411_v25 = vmul.f32 %v8612_v43, %v2371_v63  ;;  %v2544_v8 = vrot.slane %v2477_v52, 1  ;;  %v2991_v62 = vmul.f32 %v12392_v48, %v2371_v63 }
 0x341   : > { %7237 = vpow2.f32 %v6251_v61  ;;  %v3584_v26 = vsel %vm664_vm1, %v3582_v30, %v3583_v14  ;;  %v2755_v29 = vrot.slane %v2684_v37, 2  ;;  %v2944_v28 = vadd.f32 %v2907_v42, %v9217_v22 }
 0x342   : > { %v4488_v1 = vadd.f32 %v9206_v60, %v9383_v38  ;;  %v3797_v4 = vsel %vm850_vm0, %v3795_v18, %v3796_v54  ;;  %v12414_v39 = vrot.slane %v9276_v2, 1  ;;  %v2639_v32 = vadd.f32 %v2544_v8, %v2411_v25 }
 0x343   : > { %v12415_v52 = vrot.slane %v9280_v3, 2  ;;  %v2757_v30 = vsel %vm850_vm0, %v2755_v29, %v8647_v51  ;;  %v3059_v37 = vrot.slane %v2991_v62, 1  ;;  %v3204_v42 = vmul.f32 %v12393_v21, %v2371_v63 }
 0x344   : > { %v2545_v9 = vsel %vm664_vm1, %v12414_v39, %v2544_v8  ;;  %v2862_v22 = vadd.f32 %v2757_v30, %v2639_v32  ;;  %v3433_v60 = vmul.f32 %v12395_v12, %v2371_v63  ;;  %v3515_v18 = vmul.f32 %v8681_v5, %v2371_v63 }
 0x345   : > { %v2638_v44 = vadd.f32 %v2545_v9, %v2410_v27  ;;  %v2756_v61 = vsel %vm850_vm0, %v12415_v52, %v2755_v29  ;;  %v12416_v39 = vrot.slane %v9286_v19, 1  ;;  %v3156_v3 = vadd.f32 %v3059_v37, %v2944_v28 }
 0x346   : > { %v3724_v25 = vmul.f32 %v8656_v57, %v2371_v63  ;;  %v7236_v8 = vpop.eup %7235  ;;  %v9449_v9 = vadd.f32 %v2909_v56, %v2862_v22  ;;  %v3278_v29 = vrot.slane %v3204_v42, 2  ;;  %v3467_v62 = vadd.f32 %v3433_v60, %v9180_v13  ;;  %v9469_v22 = vpop.f32.mrb[25].mxu1 }
 0x347   : > { %v9443_v2 = vadd.f32 %v2756_v61, %v2638_v44  ;;  %v3060_v27 = vsel %vm664_vm1, %v12416_v39, %v3059_v37  ;;  %v4143_v52 = vadd.f32 1.0, %v7236_v8  ;;  %v3580_v30 = vrot.slane %v3515_v18, 1 }
 0x348   : > { %v3155_v32 = vadd.f32 %v3060_v27, %v9302_v23  ;;  %v3792_v38 = vrot.slane %v3724_v25, 2  ;;  %v9454_v44 = vsel %vm4374_vm4, %v4386_v45, %v4388_v11  ;;  %v2413_v19 = vmul.f32 %v8612_v43, %v9317_v59 }
 0x349   : > { %12417 = vst [vmem:[#allocation78_spill] sm:$0xff] %v9454_v44  ;;  %v3435_v63 = vmul.f32 %v12395_v12, %v9317_v59  ;;  %v12418_v28 = vrot.slane %v9290_v53, 2  ;;  %v3280_v23 = vsel %vm850_vm0, %v3278_v29, %v8691_v16  ;;  %v4489_v13 = vadd.f32 %v4488_v1, %v9391_v17 }
 0x34a   : > { %v3387_v37 = vadd.f32 %v3280_v23, %v3156_v3  ;;  %v12419_v45 = vrot.slane %v9298_v15, 1  ;;  %v9473_v42 = vmul.f32 %v12384_v31, %v9317_v59  ;;  %v3675_v60 = vadd.f32 %v3580_v30, %v3467_v62 }
 0x34b   : > { %v3279_v56 = vsel %vm850_vm0, %v12418_v28, %v3278_v29  ;;  %v12420_v18 = vrot.slane %v9307_v50, 2  ;;  %v7238_v1 = vpop.eup %7237  ;;  %7239 = vrcp.f32 %v4143_v52  ;;  %v3794_v3 = vsel %vm850_vm0, %v3792_v38, %v8693_v35 }
 0x34c   : > { %v3386_v61 = vadd.f32 %v3279_v56, %v3155_v32  ;;  %v3581_v11 = vsel %vm664_vm1, %v12419_v45, %v3580_v30  ;;  %v3470_v15 = vadd.f32 %v3435_v63, %v3387_v37  ;;  %v4146_v25 = vadd.f32 1.0, %v7238_v1 }
 0x34d   : > { %v3674_v53 = vadd.f32 %v3581_v11, %v9313_v10  ;;  %v3793_v39 = vsel %vm850_vm0, %v12420_v18, %v3792_v38  ;;  %v3898_v32 = vadd.f32 %v3794_v3, %v3675_v60  ;;  %v9484_v29 = vmul.f32 %v8595_v40, %v9409_v55  ;;  %v12424_v60 = vld [vmem:[#allocation71_spill] sm:$0xff] }
 0x34e   : > { %v3469_v27 = vadd.f32 %v9261_v7, %v3386_v61  ;;  %v4490_v10 = vadd.f32 %v4489_v13, %v9399_v58  ;;  %v3206_v50 = vmul.f32 %v12393_v21, %v9317_v59  ;;  %v3678_v52 = vadd.f32 %v3583_v14, %v3470_v15  ;;  %v9500_v59 = vpop.f32.mrb[26].mxu1 }
 0x34f   : > { %v3897_v8 = vadd.f32 %v3793_v39, %v3674_v53  ;;  %7241 = vrcp.f32 %v4146_v25  ;;  %v3798_v7 = vsel %vm850_vm0, %v3796_v54, %v8693_v35  ;;  %v9495_v30 = vadd.f32 %v8808_v34, %v3898_v32  ;;  %v12425_v39 = vld [vmem:[#allocation46_spill] sm:$0xff] }
 0x350   : > { %v3677_v62 = vadd.f32 %v3584_v26, %v3469_v27  ;;  %v12421_v63 = vrot.slane %v9337_v24, 1  ;;  %v2759_v56 = vrot.slane %v9473_v42, 2  ;;  %v3901_v13 = vadd.f32 %v3798_v7, %v3678_v52 }
 0x351   : > { %v9492_v38 = vadd.f32 %v8808_v34, %v3897_v8  ;;  %v6250_v26 = vmul.f32 -1.442695, %v9495_v30  ;;  %v12131_v54 = vrot.slane %v9484_v29, 1  ;;  %v9507_v61 = vmul.f32 %v12384_v31, %v9409_v55  ;;  %v12428_v8 = vld [vmem:[#allocation72_spill] sm:$0xff] }
 0x352   : > { %v2642_v28 = vadd.f32 %v12421_v63, %v2413_v19  ;;  %v3900_v23 = vadd.f32 %v3797_v4, %v3677_v62  ;;  %v3282_v37 = vrot.slane %v3206_v50, 2  ;;  %v9513_v19 = vadd.f32 %v8808_v34, %v3901_v13  ;;  %v12429_v62 = vld [vmem:[#allocation58_spill] sm:$0xff]  ;;  %v9554_v63 = vpop.f32.mrb[27].mxu1 }
 0x353   : > { %v6249_v14 = vmul.f32 -1.442695, %v9492_v38  ;;  %12422 = vst [vmem:[#allocation79_spill] sm:$0xff] %v9507_v61  ;;  %v9516_v4 = vadd.f32 %v4490_v10, %v9454_v44  ;;  %v9520_v45 = vmul.f32 %v8612_v43, %v9409_v55  ;;  %v9524_v11 = vmul.f32 %v12392_v48, %v9409_v55 }
 0x354   : > { %v9510_v24 = vadd.f32 %v8808_v34, %v3900_v23  ;;  %v2278_v42 = vadd.f32 1.0, %v9321_v49  ;;  %v6253_v34 = vmul.f32 -1.442695, %v9513_v19  ;;  %v2641_v18 = vadd.f32 %v9367_v41, %v12424_v60 }
 0x355   : > { %7243 = vpow2.f32 %v6249_v14  ;;  %12423 = vst [vmem:[#allocation80_spill] sm:$0xff] %v9520_v45  ;;  %v2646_v1 = vadd.f32 %v12131_v54, %v12425_v39  ;;  %v12130_v27 = vrot.slane %v9507_v61, 2  ;;  %v9537_v15 = vmul.f32 %v12389_v47, %v9409_v55  ;;  %v7240_v49 = vpop.eup %7239 }
 0x356   : > { %7245 = vpow2.f32 %v6250_v26  ;;  %v6252_v53 = vmul.f32 -1.442695, %v9510_v24  ;;  %v9541_v3 = vmul.f32 %v12393_v21, %v9409_v55  ;;  %v12427_v25 = vrot.slane %v9235_v20, 2 }
 0x357   : > { %12426 = vst [vmem:[#allocation71_spill] sm:$0xff] %v9537_v15  ;;  %7247 = vrcp.f32 %v2278_v42  ;;  %v2946_v32 = vadd.f32 %v12428_v8, %v9443_v2  ;;  %v12430_v52 = vrot.slane %v12429_v62, 2  ;;  %v9558_v23 = vmul.f32 %v8681_v5, %v9409_v55 }
 0x358   : > { %7249 = vpow2.f32 %v6252_v53  ;;  %v2760_v41 = vsel %vm850_vm0, %v12427_v25, %v2759_v56  ;;  %v9562_v20 = vmul.f32 %v8656_v57, %v9409_v55  ;;  %v9569_v42 = vmul.f32 %v7240_v49, %v9362_v0 }
 0x359   : > { %7251 = vpow2.f32 %v6253_v34  ;;  %v9549_v50 = vadd.f32 %v2760_v41, %v2641_v18  ;;  %v3283_v7 = vsel %vm850_vm0, %v12430_v52, %v3282_v37  ;;  %v3158_v2 = vadd.f32 %v9378_v6, %v2946_v32  ;;  %v7242_v26 = vpop.eup %7241  ;;  %v12433_v34 = vld [vmem:[#allocation68_spill] sm:$0xff]  ;;  %v12435_v6 = vld [vmem:[#allocation57_spill] sm:$0xff] }
 0x35a   : > { %v12431_v13 = vmov %v12430_v52  ;;  %v9573_v53 = vmul.f32 %v12395_v12, %v9409_v55  ;;  %7253 = vpow2.f32 %v12433_v34  ;;  %v12434_v60 = vrot.slane %v9345_v36, 1  ;;  %v9594_v36 = vld [vmem:[%s12289_s4] ss:$0 sm:$0xff]  ;;  %v12439_v32 = vld [vmem:[#allocation69_spill] sm:$0xff]  ;;  %s7738_s4 = scalar_lea.vmem %s7737_s3, 32 }
 0x35b   : > { %v3388_v14 = vadd.f32 %v12431_v13, %v9359_v33  ;;  %v3389_v25 = vadd.f32 %v3283_v7, %v3158_v2  ;;  %7255 = vpow2.f32 %v12435_v6  ;;  %v2761_v33 = vsel %vm850_vm0, %v2759_v56, %v8647_v51  ;;  %12436 = vst [vmem:[#allocation58_spill] sm:$0xff] %v9594_v36  ;;  %v12440_v52 = vld [vmem:[#allocation49_spill] sm:$0xff]  ;;  %v12452_v56 = vld [vmem:[#allocation52_spill] sm:$0xff]  ;;  %p7740_p1 = scmp.lt.s32.totalorder %s7738_s4, %s7732_s0 }
 0x35c   : > { %12432 = vst [vmem:[#allocation72_spill] sm:$0xff] %v9573_v53  ;;  %v3159_v18 = vadd.f32 %v12434_v60, %v9449_v9  ;;  %v3284_v0 = vsel %vm850_vm0, %v3282_v37, %v8691_v16  ;;  %v9585_v49 = vmul.f32 %v7242_v26, %v9402_v46  ;;  %v2869_v55 = vadd.f32 %v12130_v27, %v2646_v1  ;;  %v12437_v9 = vld [vmem:[#allocation74_spill] sm:$0xff]  ;;  %v12441_v7 = vld [vmem:[#allocation53_spill] sm:$0xff] }
 0x35d   : > { %v9598_v8 = vadd.f32 %v9594_v36, %v12437_v9  ;;  %7257 = vpow2.f32 %v12439_v32  ;;  %v2948_v2 = vadd.f32 %v12441_v7, %v12440_v52  ;;  %v9607_v13 = vadd.f32 %v2761_v33, %v2642_v28  ;;  %v12442_v26 = vld [vmem:[#allocation70_spill] sm:$0xff]  ;;  %v12446_v52 = vld [vmem:[#allocation76_spill] sm:$0xff]  ;;  %v9629_v32 = vpop.f32.mrb[28].mxu1  ;;  %p7741_p2 = por %p7740_p1, %p7739_p0 }
 0x35e   : > { %v9589_v41 = vadd.f32 %v3284_v0, %v3159_v18  ;;  %7259 = vpow2.f32 %v12442_v26  ;;  %v12443_v18 = vld [vmem:[#allocation59_spill] sm:$0xff]  ;;  %v12444_v0 = vld [vmem:[#allocation56_spill] sm:$0xff]  ;;  %v9615_v46 = vadd.f32 %v12441_v7, %v2869_v55  ;;  %v12447_v33 = vld [vmem:[#allocation62_spill] sm:$0xff] }
 0x35f   : > { %12438 = vst [vmem:[#allocation68_spill] sm:$0xff] %v9598_v8  ;;  %v7244_v1 = vpop.eup %7243  ;;  %v3471_v6 = vadd.f32 %v12443_v18, %v3388_v14  ;;  %7261 = vpow2.f32 %v12444_v0  ;;  %v6228_v9 = vmul.f32 -1.442695, %v9598_v8  ;;  %v12450_v0 = vld [vmem:[#allocation73_spill] sm:$0xff]  ;;  %p7742_p3 = pnand %p7741_p2, %p7735_p13 }
 0x360   : > { %v7246_v34 = vpop.eup %7245  ;;  %v4144_v60 = vadd.f32 1.0, %v7244_v1  ;;  %12445 = vst [vmem:[#allocation57_spill] sm:$0xff] %v9615_v46  ;;  %7263 = vpow2.f32 %v12446_v52  ;;  %v12448_v1 = vld [vmem:[#allocation63_spill] sm:$0xff]  ;;  %v9627_v62 = vadd.f32 %v9594_v36, %v12450_v0  ;;  %v9633_v52 = vadd.f32 %v9594_v36, %v12452_v56 }
 0x361   : > { %v7248_v27 = vpop.eup %7247  ;;  %v4145_v54 = vadd.f32 1.0, %v7246_v34  ;;  %v9623_v14 = vadd.f32 %v9594_v36, %v12448_v1 }
 0x362   : > { %v7250_v28 = vpop.eup %7249  ;;  %7265 = vrcp.f32 %v4144_v60  ;;  %v9619_v26 = vmul.f32 %v7248_v27, %v12447_v33  ;;  %12451 = vst [vmem:[#allocation69_spill] sm:$0xff] %v9627_v62  ;;  %12453 = vst [vmem:[#allocation49_spill] sm:$0xff] %v9633_v52  ;;  %v12454_v60 = vld [vmem:[#allocation54_spill] sm:$0xff]  ;;  %v9639_v33 = vpop.f32.mrb[29].mxu1 }
 0x363   : > { %12449 = vst [vmem:[#allocation74_spill] sm:$0xff] %v9623_v14  ;;  %v7252_v34 = vpop.eup %7251  ;;  %v4147_v55 = vadd.f32 1.0, %v7250_v28  ;;  %7267 = vrcp.f32 %v4145_v54  ;;  %v9637_v27 = vadd.f32 %v9594_v36, %v12454_v60  ;;  %v9659_v60 = vpop.f32.mrb[30].mxu1 }
 0x364   : > { %v4148_v1 = vadd.f32 1.0, %v7252_v34  ;;  %v9643_v0 = vmul.f32 %v8595_v40, %v9619_v26  ;;  %v9647_v37 = vmul.f32 %v12384_v31, %v9619_v26  ;;  %7269 = vpow2.f32 %v6228_v9  ;;  %v7254_v54 = vpop.eup %7253  ;;  %12456 = vst [vmem:[#allocation56_spill] sm:$0xff] %v9659_v60 }
 0x365   : > { %12455 = vst [vmem:[#allocation70_spill] sm:$0xff] %v9637_v27  ;;  %7271 = vrcp.f32 %v4147_v55  ;;  %v2910_v56 = vmul.f32 %v12389_v47, %v9619_v26  ;;  %v9653_v28 = vmul.f32 %v12392_v48, %v9619_v26  ;;  %v9657_v34 = vmul.f32 %v12393_v21, %v9619_v26  ;;  %v7256_v10 = vpop.eup %7255 }
 0x366   : > { %7273 = vrcp.f32 %v4148_v1  ;;  %v12141_v44 = vrot.slane %v9643_v0, 1  ;;  %v3436_v9 = vmul.f32 %v12395_v12, %v9619_v26  ;;  %v9666_v55 = vadd.f32 %v9594_v36, %v9469_v22 }
 0x367   : > { %v9670_v17 = vadd.f32 %v2910_v56, %v9549_v50  ;;  %v12142_v8 = vrot.slane %v9653_v28, 1  ;;  %v9675_v60 = vmul.f32 %v8681_v5, %v9619_v26  ;;  %v7258_v1 = vpop.eup %7257  ;;  %v9684_v22 = vmul.f32 %v8656_v57, %v9619_v26 }
 0x368   : > { %12457 = vst [vmem:[#allocation76_spill] sm:$0xff] %v9666_v55  ;;  %v2643_v46 = vadd.f32 %v12141_v44, %v12425_v39  ;;  %v9680_v15 = vadd.f32 %v3436_v9, %v3389_v25  ;;  %v2281_v58 = vadd.f32 1.0, %v7254_v54  ;;  %v7260_v50 = vpop.eup %7259  ;;  %v12147_v61 = vrot.slane %v9657_v34, 2 }
 0x369   : > { %v3160_v56 = vadd.f32 %v12142_v8, %v2948_v2  ;;  %v12146_v45 = vrot.slane %v9675_v60, 1  ;;  %v2279_v35 = vadd.f32 1.0, %v7256_v10  ;;  %v7262_v53 = vpop.eup %7261  ;;  %v12459_v16 = vrot.slane %v9647_v37, 2 }
 0x36a   : > { %12458 = vst [vmem:[#allocation62_spill] sm:$0xff] %v9680_v15  ;;  %7275 = vrcp.f32 %v2281_v58  ;;  %v9693_v25 = vmul.f32 -1.442695, %v9623_v14  ;;  %v9696_v9 = vmul.f32 -1.442695, %v9627_v62  ;;  %v7264_v54 = vpop.eup %7263  ;;  %v12150_v10 = vrot.slane %v9684_v22, 2 }
 0x36b   : > { %v2866_v44 = vadd.f32 %v12459_v16, %v2643_v46  ;;  %v3391_v2 = vadd.f32 %v12147_v61, %v3160_v56  ;;  %v3679_v8 = vadd.f32 %v12146_v45, %v3471_v6  ;;  %7277 = vrcp.f32 %v2279_v35 }
 0x36c   : > { %v7266_v39 = vpop.eup %7265  ;;  %v2284_v58 = vadd.f32 1.0, %v7258_v1  ;;  %v9705_v46 = vmul.f32 -1.442695, %v9633_v52  ;;  %v9708_v62 = vmul.f32 -1.442695, %v9637_v27  ;;  %v12462_v1 = vrot.slane %v9524_v11, 1 }
 0x36d   : > { %v2951_v16 = vadd.f32 %v12441_v7, %v2866_v44  ;;  %v7268_v14 = vpop.eup %7267  ;;  %v4288_v15 = vmul.f32 %v7266_v39, %v9492_v38  ;;  %v3474_v56 = vadd.f32 %v12443_v18, %v3391_v2  ;;  %v3902_v6 = vadd.f32 %v12150_v10, %v3679_v8  ;;  %v9729_v8 = vld [vmem:[%s12024_s6] ss:$0 sm:$0xff] }
 0x36e   : > { %12460 = vst [vmem:[#allocation63_spill] sm:$0xff] %v9708_v62  ;;  %v9715_v35 = vmul.f32 -1.442695, %v9666_v55  ;;  %v7270_v45 = vpop.eup %7269  ;;  %v4289_v44 = vmul.f32 %v7268_v14, %v9495_v30  ;;  %v2282_v52 = vadd.f32 1.0, %v7260_v50  ;;  %v9722_v27 = vadd.f32 %v9594_v36, %v9500_v59 }
 0x36f   : > { %v3163_v61 = vadd.f32 %v12462_v1, %v2951_v16  ;;  %v7272_v38 = vpop.eup %7271  ;;  %v4391_v39 = vrot.slane %v4288_v15, 7  ;;  %v12464_v2 = vrot.slane %v9558_v23, 1  ;;  %v9732_v30 = vadd.f32 %v9729_v8, %v3902_v6 }
 0x370   : > { %12461 = vst [vmem:[#allocation73_spill] sm:$0xff] %v9715_v35  ;;  %12463 = vst [vmem:[#allocation52_spill] sm:$0xff] %v9722_v27  ;;  %v2285_v14 = vadd.f32 1.0, %v7262_v53  ;;  %v7274_v16 = vpop.eup %7273  ;;  %v4291_v50 = vmul.f32 %v7272_v38, %v9510_v24  ;;  %v4393_v1 = vrot.slane %v4289_v44, 7  ;;  %7279 = vrcp.f32 %v2284_v58 }
 0x371   : > { %v3682_v62 = vadd.f32 %v12464_v2, %v3474_v56  ;;  %v12465_v59 = vrot.slane %v9541_v3, 2  ;;  %v4292_v10 = vmul.f32 %v7274_v16, %v9513_v19  ;;  %v12466_v56 = vrot.slane %v9569_v42, 7 }
 0x372   : > { %v12468_v55 = vrot.slane %v9562_v20, 2  ;;  %v6254_v53 = vmul.f32 -1.442695, %v9732_v30  ;;  %v9747_v35 = vsel %vm4374_vm4, %v4391_v39, %v4393_v1  ;;  %v4396_v24 = vrot.slane %v4291_v50, 7  ;;  %v12476_v50 = vld [vmem:[#allocation55_spill] sm:$0xff] }
 0x373   : > { %v3394_v15 = vadd.f32 %v12465_v59, %v3163_v61  ;;  %v9741_v2 = vsel %vm4374_vm4, %v12466_v56, %v4391_v39  ;;  %12469 = vst [vmem:[#allocation81_spill] sm:$0xff] %v9747_v35  ;;  %v2283_v61 = vadd.f32 1.0, %v7264_v54  ;;  %v4398_v44 = vrot.slane %v4292_v10, 7 }
 0x374   : > { %12467 = vst [vmem:[#allocation54_spill] sm:$0xff] %v9741_v2  ;;  %v3905_v6 = vadd.f32 %v12468_v55, %v3682_v62  ;;  %v4492_v58 = vadd.f32 %v9516_v4, %v9741_v2  ;;  %7281 = vpow2.f32 %v6254_v53  ;;  %v2288_v42 = vadd.f32 1.0, %v7270_v45  ;;  %v7276_v38 = vpop.eup %7275  ;;  %v12474_v45 = vld [vmem:[#allocation40_spill] sm:$0xff] }
 0x375   : > { %v12470_v16 = vrot.slane %v9585_v49, 7  ;;  %7283 = vrcp.f32 %v2282_v52  ;;  %v9761_v55 = vadd.f32 %v9594_v36, %v9554_v63  ;;  %v9765_v4 = vadd.f32 %v9594_v36, %v9629_v32  ;;  %v7278_v54 = vpop.eup %7277 }
 0x376   : > { %v9752_v19 = vadd.f32 %v9729_v8, %v3905_v6  ;;  %v2414_v10 = vmul.f32 %v8612_v43, %v9619_v26  ;;  %v9770_v39 = vmul.f32 %v7276_v38, %v12474_v45  ;;  %v9773_v49 = vsel %vm4374_vm4, %v4396_v24, %v4398_v44 }
 0x377   : > { %v9757_v62 = vsel %vm4374_vm4, %v12470_v16, %v4396_v24  ;;  %12472 = vst [vmem:[#allocation83_spill] sm:$0xff] %v9761_v55  ;;  %12473 = vst [vmem:[#allocation84_spill] sm:$0xff] %v9765_v4  ;;  %7285 = vrcp.f32 %v2285_v14  ;;  %v4493_v52 = vadd.f32 %v4492_v58, %v9747_v35  ;;  %v2375_v1 = vmul.f32 %v7278_v54, %v12476_v50 }
 0x378   : > { %12471 = vst [vmem:[#allocation82_spill] sm:$0xff] %v9757_v62  ;;  %12475 = vst [vmem:[#allocation40_spill] sm:$0xff] %v9773_v49  ;;  %v6257_v63 = vmul.f32 -1.442695, %v9752_v19  ;;  %7287 = vrcp.f32 %v2283_v61  ;;  %v9780_v32 = vmul.f32 %v8595_v40, %v9770_v39  ;;  %v9783_v26 = vadd.f32 %v12443_v18, %v3394_v15 }
 0x379   : > { %7289 = vrcp.f32 %v2288_v42  ;;  %v9786_v59 = vmul.f32 -1.442695, %v9722_v27  ;;  %v9790_v14 = vmul.f32 %v12392_v48, %v9770_v39  ;;  %v9794_v56 = vmul.f32 -1.442695, %v9761_v55 }
 0x37a   : > { %7291 = vpow2.f32 %v9693_v25  ;;  %v9797_v6 = vmul.f32 -1.442695, %v9765_v4  ;;  %v12152_v53 = vrot.slane %v9780_v32, 1  ;;  %v9802_v15 = vmul.f32 %v8681_v5, %v9770_v39  ;;  %v7280_v58 = vpop.eup %7279 }
 0x37b   : > { %12477 = vst [vmem:[#allocation55_spill] sm:$0xff] %v9786_v59  ;;  %12478 = vst [vmem:[#allocation85_spill] sm:$0xff] %v9794_v56  ;;  %v9806_v24 = vmul.f32 %v8656_v57, %v9770_v39  ;;  %7293 = vpow2.f32 %v9696_v9  ;;  %v9810_v25 = vadd.f32 %v4493_v52, %v9757_v62  ;;  %v12155_v61 = vrot.slane %v9790_v14, 1 }
 0x37c   : > { %12479 = vst [vmem:[#allocation86_spill] sm:$0xff] %v9797_v6  ;;  %7295 = vpow2.f32 %v6257_v63  ;;  %v2481_v44 = vmul.f32 %v8595_v40, %v2375_v1  ;;  %v12480_v42 = vrot.slane %v9484_v29, 1  ;;  %v12159_v16 = vrot.slane %v9802_v15, 1 }
 0x37d   : > { %v2415_v54 = vmul.f32 %v8612_v43, %v2375_v1  ;;  %v12481_v45 = vrot.slane %v9524_v11, 1  ;;  %v2688_v50 = vmul.f32 %v12384_v31, %v2375_v1  ;;  %v2911_v29 = vmul.f32 %v12389_v47, %v2375_v1 }
 0x37e   : > { %v9819_v38 = vsel %vm664_vm1, %v12480_v42, %v12152_v53  ;;  %v2550_v63 = vrot.slane %v2481_v44, 1  ;;  %v9833_v42 = vpop.f32.mrb[31].mxu1  ;;  %v7282_v53 = vpop.eup %7281  ;;  %v12483_v9 = vrot.slane %v9558_v23, 1  ;;  %v12484_v35 = vrot.slane %v9806_v24, 2 }
 0x37f   : > { %v9829_v52 = vsel %vm664_vm1, %v12481_v45, %v12155_v61  ;;  %12482 = vst [vmem:[#allocation87_spill] sm:$0xff] %v9833_v42  ;;  %v12485_v11 = vrot.slane %v9562_v20, 2  ;;  %v2995_v44 = vmul.f32 %v12392_v48, %v2375_v1  ;;  %7297 = vpow2.f32 %v9705_v46  ;;  %v9849_v61 = vpop.eup %7283  ;;  %v12500_v42 = vld [vmem:[#allocation61_spill] sm:$0xff] }
 0x380   : > { %v3590_v62 = vsel %vm664_vm1, %v12483_v9, %v12159_v16  ;;  %v4149_v2 = vadd.f32 1.0, %v7282_v53  ;;  %v12486_v4 = vrot.slane %v9643_v0, 1  ;;  %v2645_v55 = vadd.f32 %v2550_v63, %v2415_v54 }
 0x381   : > { %v9845_v45 = vsel %vm850_vm0, %v12485_v11, %v12484_v35  ;;  %v2763_v9 = vrot.slane %v2688_v50, 2  ;;  %v9854_v16 = vpop.eup %7285  ;;  %v2950_v20 = vadd.f32 %v2911_v29, %v9607_v13  ;;  %v3065_v35 = vrot.slane %v2995_v44, 1 }
 0x382   : > { %v2551_v23 = vsel %vm664_vm1, %v12486_v4, %v2550_v63  ;;  %v3208_v11 = vmul.f32 %v12393_v21, %v2375_v1  ;;  %v9858_v6 = vpop.eup %7287  ;;  %v2913_v46 = vmul.f32 %v12389_v47, %v9770_v39  ;;  %v12487_v53 = vrot.slane %v9647_v37, 2 }
 0x383   : > { %v2644_v27 = vadd.f32 %v2551_v23, %v2414_v10  ;;  %v2765_v4 = vsel %vm850_vm0, %v2763_v9, %v8647_v51  ;;  %v3437_v54 = vmul.f32 %v12395_v12, %v2375_v1  ;;  %v9868_v10 = vpop.eup %7289  ;;  %v12488_v50 = vrot.slane %v9653_v28, 1 }
 0x384   : > { %v2764_v0 = vsel %vm850_vm0, %v12487_v53, %v2763_v9  ;;  %v2868_v63 = vadd.f32 %v2765_v4, %v2645_v55  ;;  %v3162_v44 = vadd.f32 %v3065_v35, %v2950_v20  ;;  %v9875_v23 = vpop.eup %7291  ;;  %v3286_v53 = vrot.slane %v3208_v11, 2  ;;  %v12493_v11 = vld [vmem:[#allocation60_spill] sm:$0xff] }
 0x385   : > { %v9870_v13 = vadd.f32 %v2764_v0, %v2644_v27  ;;  %v3066_v29 = vsel %vm664_vm1, %v12488_v50, %v3065_v35  ;;  %12489 = vst [vmem:[#allocation88_spill] sm:$0xff] %v9875_v23  ;;  %v3473_v56 = vadd.f32 %v3437_v54, %v9589_v41  ;;  %v9881_v9 = vadd.f32 %v9594_v36, %v9639_v33  ;;  %v9883_v59 = vpop.eup %7293  ;;  %v12494_v0 = vld [vmem:[#allocation65_spill] sm:$0xff] }
 0x386   : > { %v3161_v37 = vadd.f32 %v3066_v29, %v9670_v17  ;;  %12491 = vst [vmem:[#allocation90_spill] sm:$0xff] %v9883_v59  ;;  %7299 = vrcp.f32 %v4149_v2  ;;  %v9885_v27 = vadd.f32 %v2913_v46, %v2868_v63  ;;  %v3519_v28 = vmul.f32 %v8681_v5, %v2375_v1  ;;  %v7296_v20 = vpop.eup %7295 }
 0x387   : > { %12490 = vst [vmem:[#allocation89_spill] sm:$0xff] %v9881_v9  ;;  %v3728_v55 = vmul.f32 %v8656_v57, %v2375_v1  ;;  %v3439_v17 = vmul.f32 %v12395_v12, %v9770_v39  ;;  %v12492_v35 = vrot.slane %v9657_v34, 2  ;;  %v3288_v33 = vsel %vm850_vm0, %v3286_v53, %v12493_v11 }
 0x388   : > { %v9897_v4 = vmul.f32 %v7280_v58, %v12494_v0  ;;  %v3393_v46 = vadd.f32 %v3288_v33, %v3162_v44  ;;  %v3586_v54 = vrot.slane %v3519_v28, 1  ;;  %v2417_v1 = vmul.f32 %v8612_v43, %v9770_v39  ;;  %v12496_v44 = vld [vmem:[#allocation72_spill] sm:$0xff]  ;;  %v12498_v33 = vld [vmem:[#allocation62_spill] sm:$0xff] }
 0x389   : > { %v3287_v41 = vsel %vm850_vm0, %v12492_v35, %v3286_v53  ;;  %v3800_v63 = vrot.slane %v3728_v55, 2  ;;  %v9903_v50 = vmul.f32 %v12384_v31, %v9770_v39  ;;  %v9907_v34 = vmul.f32 %v12393_v21, %v9770_v39  ;;  %v9913_v58 = vpop.eup %7297 }
 0x38a   : > { %v3392_v2 = vadd.f32 %v3287_v41, %v3161_v37  ;;  %v9911_v29 = vmul.f32 %v8595_v40, %v9897_v4  ;;  %12495 = vst [vmem:[#allocation60_spill] sm:$0xff] %v9913_v58  ;;  %v3476_v53 = vadd.f32 %v3439_v17, %v3393_v46  ;;  %v12497_v28 = vrot.slane %v9675_v60, 1 }
 0x38b   : > { %v3681_v35 = vadd.f32 %v3586_v54, %v3473_v56  ;;  %v4152_v41 = vadd.f32 1.0, %v7296_v20  ;;  %v12499_v39 = vrot.slane %v9684_v22, 2  ;;  %v3802_v36 = vsel %vm850_vm0, %v3800_v63, %v12500_v42 }
 0x38c   : > { %v3475_v37 = vadd.f32 %v12496_v44, %v3392_v2  ;;  %v3587_v55 = vsel %vm664_vm1, %v12497_v28, %v3586_v54  ;;  %v12501_v58 = vrot.slane %v9802_v15, 1  ;;  %v12166_v60 = vrot.slane %v9911_v29, 1  ;;  %v12505_v28 = vld [vmem:[#allocation46_spill] sm:$0xff] }
 0x38d   : > { %v3680_v0 = vadd.f32 %v3587_v55, %v12498_v33  ;;  %v3801_v9 = vsel %vm850_vm0, %v12499_v39, %v3800_v63  ;;  %v3904_v17 = vadd.f32 %v3802_v36, %v3681_v35  ;;  %v12165_v46 = vrot.slane %v9903_v50, 2 }
 0x38e   : > { %v3683_v59 = vadd.f32 %v3590_v62, %v3475_v37  ;;  %v3684_v2 = vadd.f32 %v12501_v58, %v3476_v53  ;;  %v12502_v56 = vrot.slane %v9806_v24, 2  ;;  %v9935_v54 = vmul.f32 %v12384_v31, %v9897_v4 }
 0x38f   : > { %v3903_v22 = vadd.f32 %v3801_v9, %v3680_v0  ;;  %v12168_v62 = vrot.slane %v9907_v34, 2  ;;  %v9940_v36 = vadd.f32 %v9729_v8, %v3904_v17  ;;  %7301 = vrcp.f32 %v4152_v41  ;;  %v12508_v17 = vld [vmem:[#allocation66_spill] sm:$0xff] }
 0x390   : > { %v3806_v20 = vsel %vm850_vm0, %v12502_v56, %v12500_v42  ;;  %12503 = vst [vmem:[#allocation65_spill] sm:$0xff] %v9935_v54  ;;  %v3906_v15 = vadd.f32 %v9845_v45, %v3683_v59  ;;  %v12504_v58 = vrot.slane %v9780_v32, 1  ;;  %v9951_v9 = vadd.f32 %v9810_v25, %v9773_v49  ;;  %v7300_v37 = vpop.eup %7299 }
 0x391   : > { %v3907_v63 = vadd.f32 %v3806_v20, %v3684_v2  ;;  %v9947_v24 = vadd.f32 %v9729_v8, %v3903_v22  ;;  %v6256_v45 = vmul.f32 -1.442695, %v9940_v36  ;;  %v2652_v32 = vadd.f32 %v12166_v60, %v12505_v28  ;;  %v12510_v22 = vld [vmem:[#allocation80_spill] sm:$0xff] }
 0x392   : > { %v9944_v44 = vadd.f32 %v12504_v58, %v2417_v1  ;;  %v9954_v53 = vadd.f32 %v9729_v8, %v3906_v15  ;;  %v9966_v55 = vmul.f32 %v8612_v43, %v9897_v4  ;;  %v12164_v25 = vrot.slane %v9935_v54, 2 }
 0x393   : > { %v9957_v59 = vadd.f32 %v9729_v8, %v3907_v63  ;;  %v6255_v1 = vmul.f32 -1.442695, %v9947_v24  ;;  %v9971_v35 = vmul.f32 %v12389_v47, %v9897_v4  ;;  %7303 = vpow2.f32 %v6256_v45 }
 0x394   : > { %12506 = vst [vmem:[#allocation72_spill] sm:$0xff] %v9966_v55  ;;  %v6258_v41 = vmul.f32 -1.442695, %v9954_v53  ;;  %v9977_v0 = vmul.f32 %v12392_v48, %v9897_v4  ;;  %v9980_v39 = vmul.f32 %v7300_v37, %v9732_v30  ;;  %v9984_v2 = vmul.f32 %v12393_v21, %v9897_v4  ;;  %v12511_v30 = vld [vmem:[#allocation79_spill] sm:$0xff] }
 0x395   : > { %12507 = vst [vmem:[#allocation62_spill] sm:$0xff] %v9971_v35  ;;  %v6259_v33 = vmul.f32 -1.442695, %v9957_v59  ;;  %7305 = vpow2.f32 %v6255_v1  ;;  %v2378_v56 = vmul.f32 %v9849_v61, %v12508_v17  ;;  %v9990_v20 = vadd.f32 %v12164_v25, %v2652_v32  ;;  %v12513_v1 = vld [vmem:[#allocation71_spill] sm:$0xff] }
 0x396   : > { %7307 = vpow2.f32 %v6258_v41  ;;  %v2647_v15 = vadd.f32 %v9819_v38, %v12510_v22  ;;  %v12512_v63 = vrot.slane %v12511_v30, 2  ;;  %v10001_v37 = vmul.f32 %v8681_v5, %v9897_v4 }
 0x397   : > { %12509 = vst [vmem:[#allocation66_spill] sm:$0xff] %v9990_v20  ;;  %7309 = vpow2.f32 %v6259_v33  ;;  %v10004_v61 = vmul.f32 %v8595_v40, %v2378_v56  ;;  %v10007_v45 = vmul.f32 %v12384_v31, %v2378_v56  ;;  %v2914_v38 = vmul.f32 %v12389_v47, %v2378_v56 }
 0x398   : > { %v2768_v58 = vsel %vm850_vm0, %v12512_v63, %v12165_v46  ;;  %v2952_v41 = vadd.f32 %v12513_v1, %v9870_v13  ;;  %v10013_v17 = vmul.f32 %v12392_v48, %v2378_v56  ;;  %v10017_v33 = vmul.f32 %v8656_v57, %v9897_v4 }
 0x399   : > { %v2870_v32 = vadd.f32 %v2768_v58, %v2647_v15  ;;  %v12169_v22 = vrot.slane %v10004_v61, 1  ;;  %v10021_v30 = vmul.f32 %v12393_v21, %v2378_v56  ;;  %v12514_v15 = vrot.slane %v9541_v3, 2  ;;  %v7302_v46 = vpop.eup %7301 }
 0x39a   : > { %v12173_v1 = vrot.slane %v10013_v17, 1  ;;  %v3164_v25 = vadd.f32 %v9829_v52, %v2952_v41  ;;  %v3440_v49 = vmul.f32 %v12395_v12, %v2378_v56  ;;  %v10038_v20 = vmul.f32 %v8681_v5, %v2378_v56  ;;  %v12516_v41 = vld [vmem:[#allocation67_spill] sm:$0xff] }
 0x39b   : > { %v3291_v63 = vsel %vm850_vm0, %v12514_v15, %v12168_v62  ;;  %v10029_v58 = vadd.f32 %v2914_v38, %v2870_v32  ;;  %v2649_v60 = vadd.f32 %v12169_v22, %v12505_v28  ;;  %v10041_v3 = vmul.f32 %v8656_v57, %v2378_v56  ;;  %v12515_v15 = vld [vmem:[#allocation57_spill] sm:$0xff] }
 0x39c   : > { %v3166_v32 = vadd.f32 %v12173_v1, %v12515_v15  ;;  %v12172_v38 = vrot.slane %v10021_v30, 2  ;;  %v3395_v52 = vadd.f32 %v3291_v63, %v3164_v25  ;;  %v10049_v62 = vmul.f32 %v9854_v16, %v12516_v41 }
 0x39d   : > { %v3073_v22 = vrot.slane %v9977_v0, 1  ;;  %v12517_v35 = vrot.slane %v10007_v45, 2  ;;  %v12178_v55 = vrot.slane %v10038_v20, 1  ;;  %v7304_v28 = vpop.eup %7303  ;;  %v3594_v23 = vrot.slane %v10001_v37, 1 }
 0x39e   : > { %v3397_v15 = vadd.f32 %v12172_v38, %v3166_v32  ;;  %v10059_v25 = vadd.f32 %v3440_v49, %v3395_v52  ;;  %v10063_v16 = vmul.f32 %v8595_v40, %v10049_v62  ;;  %v4151_v63 = vadd.f32 1.0, %v7304_v28 }
 0x39f   : > { %v2872_v54 = vadd.f32 %v12517_v35, %v2649_v60  ;;  %v7306_v0 = vpop.eup %7305  ;;  %v3685_v60 = vadd.f32 %v12178_v55, %v9783_v26  ;;  %v12176_v35 = vrot.slane %v10041_v3, 2  ;;  %v3811_v32 = vrot.slane %v10017_v33, 2 }
 0x3a0   : > { %v7308_v37 = vpop.eup %7307  ;;  %v4150_v13 = vadd.f32 1.0, %v7306_v0  ;;  %v3480_v49 = vadd.f32 %v12443_v18, %v3397_v15  ;;  %v12175_v52 = vrot.slane %v10063_v16, 1  ;;  %7311 = vrcp.f32 %v4151_v63 }
 0x3a1   : > { %v2957_v41 = vadd.f32 %v12441_v7, %v2872_v54  ;;  %v7310_v38 = vpop.eup %7309  ;;  %v4153_v1 = vadd.f32 1.0, %v7308_v37  ;;  %v3908_v54 = vadd.f32 %v12176_v35, %v3685_v60  ;;  %v12518_v0 = vrot.slane %v9911_v29, 1  ;;  %v12521_v37 = vld [vmem:[#allocation47_spill] sm:$0xff] }
 0x3a2   : > { %v4154_v7 = vadd.f32 1.0, %v7310_v38  ;;  %7313 = vrcp.f32 %v4150_v13  ;;  %v3688_v26 = vadd.f32 %v3594_v23, %v3480_v49  ;;  %v10085_v15 = vmul.f32 %v7302_v46, %v9752_v19 }
 0x3a3   : > { %v10073_v28 = vadd.f32 %v3073_v22, %v2957_v41  ;;  %v10082_v33 = vsel %vm664_vm1, %v12518_v0, %v12175_v52  ;;  %v4400_v63 = vrot.slane %v9980_v39, 7  ;;  %v10089_v41 = vadd.f32 %v9729_v8, %v3908_v54 }
 0x3a4   : > { %12519 = vst [vmem:[#allocation80_spill] sm:$0xff] %v10085_v15  ;;  %v10093_v38 = vmul.f32 %v9858_v6, %v12521_v37  ;;  %v2418_v13 = vmul.f32 %v8612_v43, %v2378_v56  ;;  %v3911_v60 = vadd.f32 %v3811_v32, %v3688_v26  ;;  %v10098_v29 = vmul.f32 %v12392_v48, %v10049_v62 }
 0x3a5   : > { %12520 = vst [vmem:[#allocation79_spill] sm:$0xff] %v10089_v41  ;;  %v12523_v19 = vrot.slane %v9903_v50, 2  ;;  %7315 = vrcp.f32 %v4153_v1  ;;  %v6260_v39 = vmul.f32 -1.442695, %v10089_v41  ;;  %v10107_v49 = vmul.f32 %v8681_v5, %v10049_v62 }
 0x3a6   : > { %12522 = vst [vmem:[#allocation71_spill] sm:$0xff] %v10098_v29  ;;  %v10111_v6 = vmul.f32 %v8656_v57, %v10049_v62  ;;  %7317 = vrcp.f32 %v4154_v7  ;;  %v10114_v56 = vadd.f32 %v9729_v8, %v3911_v60  ;;  %v2917_v50 = vmul.f32 %v12389_v47, %v10049_v62 }
 0x3a7   : > { %v2769_v46 = vsel %vm850_vm0, %v12523_v19, %v8647_v51  ;;  %v12177_v54 = vrot.slane %v10098_v29, 1  ;;  %7319 = vpow2.f32 %v6260_v39  ;;  %v12181_v1 = vrot.slane %v10107_v49, 1 }
 0x3a8   : > { %12524 = vst [vmem:[#allocation57_spill] sm:$0xff] %v10114_v56  ;;  %v3812_v26 = vrot.slane %v10111_v6, 2  ;;  %v2485_v0 = vmul.f32 %v8595_v40, %v10093_v38  ;;  %v6263_v37 = vmul.f32 -1.442695, %v10114_v56  ;;  %v2419_v60 = vmul.f32 %v8612_v43, %v10093_v38 }
 0x3a9   : > { %v10127_v7 = vsel %vm664_vm1, %v3073_v22, %v12177_v54  ;;  %v2692_v19 = vmul.f32 %v12384_v31, %v10093_v38  ;;  %v10136_v39 = vsel %vm664_vm1, %v3594_v23, %v12181_v1  ;;  %v2871_v35 = vadd.f32 %v2769_v46, %v9944_v44 }
 0x3aa   : > { %12525 = vst [vmem:[#allocation67_spill] sm:$0xff] %v10127_v7  ;;  %v10139_v6 = vsel %vm850_vm0, %v3811_v32, %v3812_v26  ;;  %v2556_v52 = vrot.slane %v2485_v0, 1  ;;  %7321 = vpow2.f32 %v6263_v37  ;;  %v2915_v54 = vmul.f32 %v12389_v47, %v10093_v38  ;;  %v7312_v56 = vpop.eup %7311 }
 0x3ab   : > { %v2771_v22 = vrot.slane %v2692_v19, 2  ;;  %v2999_v55 = vmul.f32 %v12392_v48, %v10093_v38  ;;  %v12526_v18 = vrot.slane %v10004_v61, 1  ;;  %v12527_v32 = vrot.slane %v9790_v14, 1 }
 0x3ac   : > { %v2651_v1 = vadd.f32 %v2556_v52, %v2419_v60  ;;  %v3212_v44 = vmul.f32 %v12393_v21, %v10093_v38  ;;  %v7314_v46 = vpop.eup %7313  ;;  %v4295_v37 = vmul.f32 %v7312_v56, %v9940_v36  ;;  %v12528_v29 = vrot.slane %v10007_v45, 2 }
 0x3ad   : > { %v2557_v23 = vsel %vm664_vm1, %v12526_v18, %v2556_v52  ;;  %v3165_v0 = vadd.f32 %v12527_v32, %v9885_v27  ;;  %v2773_v61 = vsel %vm850_vm0, %v2771_v22, %v8647_v51  ;;  %v4294_v18 = vmul.f32 %v7314_v46, %v9947_v24 }
 0x3ae   : > { %v2650_v19 = vadd.f32 %v2557_v23, %v2418_v13  ;;  %v2772_v41 = vsel %vm850_vm0, %v12528_v29, %v2771_v22  ;;  %v2874_v52 = vadd.f32 %v2773_v61, %v2651_v1  ;;  %v2956_v60 = vadd.f32 %v2915_v54, %v2871_v35 }
 0x3af   : > { %v3071_v14 = vrot.slane %v2999_v55, 1  ;;  %v4403_v32 = vrot.slane %v4295_v37, 7  ;;  %v3442_v7 = vmul.f32 %v12395_v12, %v9897_v4  ;;  %v7316_v13 = vpop.eup %7315  ;;  %v4401_v45 = vrot.slane %v4294_v18, 7 }
 0x3b0   : > { %v10164_v36 = vadd.f32 %v2772_v41, %v2650_v19  ;;  %v2421_v29 = vmul.f32 %v8612_v43, %v10049_v62  ;;  %v10168_v56 = vadd.f32 %v2917_v50, %v2874_v52  ;;  %v12529_v24 = vrot.slane %v10013_v17, 1  ;;  %v7318_v55 = vpop.eup %7317 }
 0x3b1   : > { %v3168_v1 = vadd.f32 %v3071_v14, %v2956_v60  ;;  %v12530_v4 = vrot.slane %v9907_v34, 2  ;;  %v3294_v22 = vrot.slane %v3212_v44, 2  ;;  %v7320_v23 = vpop.eup %7319  ;;  %v10179_v46 = vsel %vm4374_vm4, %v4400_v63, %v4401_v45 }
 0x3b2   : > { %v3072_v35 = vsel %vm664_vm1, %v12529_v24, %v3071_v14  ;;  %12531 = vst [vmem:[#allocation47_spill] sm:$0xff] %v10179_v46  ;;  %v10182_v50 = vsel %vm4374_vm4, %v4401_v45, %v4403_v32  ;;  %v10186_v17 = vmul.f32 %v12384_v31, %v10049_v62  ;;  %v3443_v19 = vmul.f32 %v12395_v12, %v10049_v62  ;;  %v12534_v45 = vld [vmem:[#allocation68_spill] sm:$0xff] }
 0x3b3   : > { %v3167_v54 = vadd.f32 %v3072_v35, %v10029_v58  ;;  %v3292_v41 = vsel %vm850_vm0, %v12530_v4, %v12493_v11  ;;  %12532 = vst [vmem:[#allocation91_spill] sm:$0xff] %v10182_v50  ;;  %v4155_v58 = vadd.f32 1.0, %v7320_v23  ;;  %v12533_v34 = vrot.slane %v10021_v30, 2 }
 0x3b4   : > { %v3396_v37 = vadd.f32 %v3292_v41, %v3165_v0  ;;  %v3296_v63 = vsel %vm850_vm0, %v3294_v22, %v12493_v11  ;;  %v3441_v52 = vmul.f32 %v12395_v12, %v10093_v38  ;;  %v3523_v60 = vmul.f32 %v8681_v5, %v10093_v38  ;;  %v7322_v0 = vpop.eup %7321 }
 0x3b5   : > { %v3295_v44 = vsel %vm850_vm0, %v12533_v34, %v3294_v22  ;;  %v3399_v18 = vadd.f32 %v3296_v63, %v3168_v1  ;;  %v10201_v14 = vmul.f32 %v12393_v21, %v10049_v62  ;;  %v3814_v30 = vsel %vm850_vm0, %v3812_v26, %v12500_v42 }
 0x3b6   : > { %v3398_v61 = vadd.f32 %v3295_v44, %v3167_v54  ;;  %v3732_v32 = vmul.f32 %v8656_v57, %v10093_v38  ;;  %v2384_v24 = vmul.f32 %v9868_v10, %v12534_v45  ;;  %v10210_v35 = vmul.f32 %v7316_v13, %v9954_v53  ;;  %v12547_v45 = vld [vmem:[#allocation46_spill] sm:$0xff] }
 0x3b7   : > { %v3479_v54 = vadd.f32 %v3441_v52, %v3396_v37  ;;  %v3482_v4 = vadd.f32 %v3443_v19, %v3399_v18  ;;  %7323 = vrcp.f32 %v4155_v58  ;;  %v3592_v41 = vrot.slane %v3523_v60, 1 }
 0x3b8   : > { %12535 = vst [vmem:[#allocation68_spill] sm:$0xff] %v10210_v35  ;;  %v3481_v1 = vadd.f32 %v3442_v7, %v3398_v61  ;;  %v3808_v22 = vrot.slane %v3732_v32, 2  ;;  %v10213_v62 = vmul.f32 %v8595_v40, %v2384_v24  ;;  %v10216_v26 = vmul.f32 %v7318_v55, %v9957_v59 }
 0x3b9   : > { %v4158_v23 = vadd.f32 1.0, %v7322_v0  ;;  %v12537_v10 = vrot.slane %v10107_v49, 1  ;;  %v12538_v53 = vrot.slane %v10038_v20, 1  ;;  %v3687_v13 = vadd.f32 %v3592_v41, %v3479_v54 }
 0x3ba   : > { %12536 = vst [vmem:[#allocation92_spill] sm:$0xff] %v10216_v26  ;;  %v3689_v38 = vadd.f32 %v10136_v39, %v3481_v1  ;;  %v12539_v37 = vrot.slane %v10041_v3, 2  ;;  %v10228_v19 = vmul.f32 %v12384_v31, %v2384_v24  ;;  %v3810_v39 = vsel %vm850_vm0, %v3808_v22, %v12500_v42 }
 0x3bb   : > { %v3690_v34 = vadd.f32 %v12537_v10, %v3482_v4  ;;  %v3593_v7 = vsel %vm664_vm1, %v12538_v53, %v3592_v41  ;;  %v12542_v20 = vrot.slane %v10063_v16, 1  ;;  %v2775_v3 = vrot.slane %v10186_v17, 2  ;;  %v12548_v4 = vld [vmem:[#allocation72_spill] sm:$0xff] }
 0x3bc   : > { %v3809_v58 = vsel %vm850_vm0, %v12539_v37, %v3808_v22  ;;  %v3686_v59 = vadd.f32 %v3593_v7, %v10059_v25  ;;  %v10234_v49 = vadd.f32 %v10139_v6, %v3689_v38  ;;  %v3910_v63 = vadd.f32 %v3810_v39, %v3687_v13  ;;  %v12549_v38 = vld [vmem:[#allocation65_spill] sm:$0xff]  ;;  %v12570_v25 = vld [vmem:[#allocation59_spill] sm:$0xff]  ;;  %v12576_v7 = vld [vmem:[#allocation74_spill] sm:$0xff] }
 0x3bd   : > { %v10236_v55 = vadd.f32 %v3814_v30, %v3690_v34  ;;  %v10240_v44 = vadd.f32 %v12542_v20, %v2421_v29  ;;  %v12185_v61 = vrot.slane %v10213_v62, 1  ;;  %v3298_v52 = vrot.slane %v10201_v14, 2  ;;  %v12546_v30 = vld [vmem:[#allocation88_spill] sm:$0xff] }
 0x3be   : > { %12540 = vst [vmem:[#allocation93_spill] sm:$0xff] %v10234_v49  ;;  %v3909_v60 = vadd.f32 %v3809_v58, %v3686_v59  ;;  %v10249_v6 = vadd.f32 %v9951_v9, %v10179_v46  ;;  %v10252_v16 = vadd.f32 %v9729_v8, %v3910_v63  ;;  %v10255_v29 = vmul.f32 %v8612_v43, %v2384_v24 }
 0x3bf   : > { %12541 = vst [vmem:[#allocation94_spill] sm:$0xff] %v10236_v55  ;;  %v10258_v17 = vmul.f32 %v12392_v48, %v2384_v24  ;;  %7325 = vrcp.f32 %v4158_v23  ;;  %v12184_v14 = vrot.slane %v10228_v19, 2  ;;  %v2286_v32 = vadd.f32 1.0, %v12546_v30 }
 0x3c0   : > { %12543 = vst [vmem:[#allocation95_spill] sm:$0xff] %v10249_v6  ;;  %12544 = vst [vmem:[#allocation96_spill] sm:$0xff] %v10252_v16  ;;  %v10261_v0 = vadd.f32 %v9729_v8, %v3909_v60  ;;  %v6262_v9 = vmul.f32 -1.442695, %v10252_v16  ;;  %v2658_v54 = vadd.f32 %v12185_v61, %v12547_v45  ;;  %v10270_v1 = vmul.f32 %v12389_v47, %v2384_v24  ;;  %v10397_v61 = vld [vmem:[%s12025_s7 + $0x58] sm:$0xff]  ;;  %v10424_v6 = vld [vmem:[%s12025_s7 + $0x70] sm:$0xff] }
 0x3c1   : > { %v2653_v41 = vadd.f32 %v10082_v33, %v12548_v4  ;;  %v10275_v22 = vmul.f32 %v12393_v21, %v2384_v24  ;;  %v10278_v23 = vmul.f32 %v12395_v12, %v2384_v24  ;;  %7327 = vrcp.f32 %v2286_v32  ;;  %v7324_v53 = vpop.eup %7323  ;;  %v12551_v33 = vld [vmem:[#allocation62_spill] sm:$0xff]  ;;  %v12555_v4 = vld [vmem:[#allocation67_spill] sm:$0xff]  ;;  %v12582_v16 = vld [vmem:[#allocation69_spill] sm:$0xff] }
 0x3c2   : > { %12545 = vst [vmem:[#allocation97_spill] sm:$0xff] %v10261_v0  ;;  %v12550_v10 = vrot.slane %v12549_v38, 2  ;;  %v10285_v13 = vmul.f32 %v8681_v5, %v2384_v24  ;;  %v2958_v58 = vadd.f32 %v12551_v33, %v10164_v36  ;;  %v6261_v59 = vmul.f32 -1.442695, %v10261_v0  ;;  %v12556_v36 = vld [vmem:[#allocation90_spill] sm:$0xff]  ;;  %v12559_v33 = vld [vmem:[#allocation60_spill] sm:$0xff] }
 0x3c3   : > { %7329 = vpow2.f32 %v6262_v9  ;;  %v12552_v39 = vrot.slane %v9984_v2, 2  ;;  %v2881_v30 = vadd.f32 %v12184_v14, %v2658_v54  ;;  %v10301_v32 = vmul.f32 %v8656_v57, %v2384_v24  ;;  %v12560_v2 = vld [vmem:[#allocation71_spill] sm:$0xff]  ;;  %v4527_v54 = vld [vmem:[%s12025_s7 + $0x8] sm:$0xff] }
 0x3c4   : > { %v2776_v34 = vsel %vm850_vm0, %v12550_v10, %v2775_v3  ;;  %v2289_v38 = vadd.f32 1.0, %v12556_v36  ;;  %v12557_v10 = vld [vmem:[#allocation79_spill] sm:$0xff]  ;;  %v12187_v18 = vmov 0.0|0.0  }
 0x3c5   : > { %v10287_v37 = vadd.f32 %v2776_v34, %v2653_v41  ;;  %v3299_v20 = vsel %vm850_vm0, %v12552_v39, %v3298_v52  ;;  %v12553_v63 = vmov %v12552_v39  ;;  %12554 = vst [vmem:[#allocation88_spill] sm:$0xff] %v10301_v32  ;;  %v3170_v41 = vadd.f32 %v12555_v4, %v2958_v58  ;;  %v4526_v24 = vld [vmem:[%s12025_s7] sm:$0xff]  ;;  %6813 = vmatprep.subr.bf16.mxu1 %v12187_v18  ;;  %v10370_v34 = vld [vmem:[%s12025_s7 + $0x38] sm:$0xff]  ;;  %v10392_v58 = vld [vmem:[%s12025_s7 + $0x50] sm:$0xff] }
 0x3c6   : > { %v3400_v60 = vadd.f32 %v12553_v63, %v10073_v28  ;;  %v10306_v9 = vmul.f32 %v7324_v53, %v12557_v10  ;;  %v2287_v39 = vadd.f32 1.0, %v12559_v33  ;;  %v12561_v28 = vrot.slane %v12560_v2, 1  ;;  %v12562_v10 = vld [vmem:[#allocation56_spill] sm:$0xff]  ;;  %v12563_v33 = vld [vmem:[#allocation58_spill] sm:$0xff] }
 0x3c7   : > { %v10320_v53 = vadd.f32 %v3299_v20, %v3170_v41  ;;  %7331 = vrcp.f32 %v2289_v38  ;;  %v3300_v4 = vsel %vm850_vm0, %v3298_v52, %v12493_v11  ;;  %v10330_v2 = vadd.f32 %v12563_v33, %v12562_v10  ;;  %v4529_v20 = vld [vmem:[%s12025_s7 + $0x18] sm:$0xff]  ;;  %v10346_v38 = vld [vmem:[%s12025_s7 + $0x20] sm:$0xff] }
 0x3c8   : > { %12558 = vst [vmem:[#allocation72_spill] sm:$0xff] %v10306_v9  ;;  %v3171_v63 = vadd.f32 %v12561_v28, %v10168_v56  ;;  %7333 = vpow2.f32 %v6261_v59  ;;  %v2777_v56 = vsel %vm850_vm0, %v2775_v3, %v8647_v51  ;;  %v4528_v28 = vld [vmem:[%s12025_s7 + $0x10] sm:$0xff]  ;;  %v12565_v59 = vld [vmem:[#allocation87_spill] sm:$0xff]  ;;  %v6814_v3 = vpack.c.bf16 %v4527_v54, %v4526_v24 }
 0x3c9   : > { %12564 = vst [vmem:[#allocation65_spill] sm:$0xff] %v10330_v2  ;;  %v10341_v41 = vadd.f32 %v12563_v33, %v12565_v59  ;;  %v10358_v10 = vpop.eup %7325  ;;  %v12568_v24 = vld [vmem:[#allocation66_spill] sm:$0xff]  ;;  %v12569_v54 = vld [vmem:[#allocation53_spill] sm:$0xff]  ;;  %v10364_v27 = vadd.f32 %v12570_v25, %v3400_v60  ;;  %7335 = vrcp.f32 %v2287_v39  ;;  %v10375_v14 = vld [vmem:[%s12025_s7 + $0x40] sm:$0xff]  ;;  %v10383_v60 = vadd.f32 %v2777_v56, %v10240_v44 }
 0x3ca   : > { %v10326_v36 = vadd.f32 %v3300_v4, %v3171_v63  ;;  %v10351_v63 = vld [vmem:[%s12025_s7 + $0x28] sm:$0xff]  ;;  %v10356_v4 = vld [vmem:[%s12025_s7 + $0x30] sm:$0xff]  ;;  %12567 = vst [vmem:[#allocation67_spill] sm:$0xff] %v10358_v10  ;;  %v2960_v59 = vadd.f32 %v12569_v54, %v12568_v24  ;;  %v12571_v39 = vld [vmem:[#allocation63_spill] sm:$0xff]  ;;  %v10387_v33 = vadd.f32 %v12569_v54, %v2881_v30  ;;  %6815 = vmatpush3.bf16.msra.mxu1 %v6814_v3 }
 0x3cb   : > { %12566 = vst [vmem:[#allocation62_spill] sm:$0xff] %v10341_v41  ;;  %v10380_v24 = vld [vmem:[%s12025_s7 + $0x48] sm:$0xff]  ;;  %7337 = vpow2.f32 %v12571_v39  ;;  %v6817_v52 = vpack.c.bf16 %v4529_v20, %v4528_v28  ;;  %v10402_v44 = vld [vmem:[%s12025_s7 + $0x60] sm:$0xff]  ;;  %v7328_v56 = vpop.eup %7327  ;;  %v10407_v20 = vmul.f32 -1.442695, %v10330_v2  ;;  %6816 = vmatprep.subr.bf16.mxu1 %v12187_v18  ;;  %v10429_v18 = vld [vmem:[%s12025_s7 + $0x78] sm:$0xff] }
 0x3cc   : > { %12572 = vst [vmem:[#allocation90_spill] sm:$0xff] %v10387_v33  ;;  %v12573_v30 = vld [vmem:[#allocation73_spill] sm:$0xff]  ;;  %v2382_v46 = vmul.f32 %v7328_v56, %v12576_v7  ;;  %v10417_v10 = vmul.f32 -1.442695, %v10341_v41  ;;  %v12578_v9 = vld [vmem:[#allocation55_spill] sm:$0xff]  ;;  %v6823_v7 = vpack.c.bf16 %v10370_v34, %v10356_v4  ;;  %v12581_v34 = vld [vmem:[#allocation86_spill] sm:$0xff] }
 0x3cd   : > { %7339 = vpow2.f32 %v12573_v30  ;;  %v12574_v3 = vld [vmem:[#allocation89_spill] sm:$0xff]  ;;  %12575 = vst [vmem:[#allocation79_spill] sm:$0xff] %v10407_v20  ;;  %v6820_v30 = vpack.c.bf16 %v10351_v63, %v10346_v38  ;;  %v7330_v50 = vpop.eup %7329  ;;  %v12193_v63 = vmov 0.0  }
 0x3ce   : > { %v6234_v28 = vmul.f32 -1.442695, %v12574_v3  ;;  %v10413_v39 = vld [vmem:[%s12025_s7 + $0x68] sm:$0xff]  ;;  %12577 = vst [vmem:[#allocation60_spill] sm:$0xff] %v10417_v10  ;;  %7341 = vpow2.f32 %v12578_v9  ;;  %6757 = vmatprep.mubr.msk.f32.mxu1 %vm7797_vm5, %v12193_v63  ;;  %v10441_v26 = vmul.f32 %v8595_v40, %v2382_v46  ;;  %v10444_v15 = vmul.f32 %v12384_v31, %v2382_v46  ;;  %6818 = vmatpush3.bf16.msra.mxu1 %v6817_v52 }
 0x3cf   : > { %v12579_v9 = vld [vmem:[#allocation85_spill] sm:$0xff]  ;;  %v2918_v4 = vmul.f32 %v12389_v47, %v2382_v46  ;;  %v10451_v38 = vmul.f32 %v12392_v48, %v2382_v46  ;;  %v10454_v56 = vmul.f32 %v12393_v21, %v2382_v46  ;;  %v12580_v63 = vmov 0.0|0.0  }
 0x3d0   : > { %7343 = vpow2.f32 %v12579_v9  ;;  %6819 = vmatprep.subr.bf16.mxu1 %v12580_v63  ;;  %v4157_v2 = vadd.f32 1.0, %v7330_v50  ;;  %v12201_v52 = vrot.slane %v10441_v26, 1  ;;  %v3444_v9 = vmul.f32 %v12395_v12, %v2382_v46 }
 0x3d1   : > { %v7332_v41 = vpop.eup %7331  ;;  %7345 = vpow2.f32 %v12581_v34  ;;  %v10464_v3 = vadd.f32 %v2918_v4, %v10287_v37  ;;  %v12203_v33 = vrot.slane %v10451_v38, 1  ;;  %v10468_v0 = vmul.f32 %v8681_v5, %v2382_v46 }
 0x3d2   : > { %v7334_v10 = vpop.eup %7333  ;;  %v2655_v50 = vadd.f32 %v12201_v52, %v12547_v45  ;;  %v10474_v35 = vadd.f32 %v3444_v9, %v10320_v53  ;;  %v10477_v34 = vmul.f32 %v8656_v57, %v2382_v46  ;;  %v10480_v20 = vmul.f32 %v7332_v41, %v12582_v16  ;;  %6821 = vmatpush3.bf16.msra.mxu1 %v6820_v30 }
 0x3d3   : > { %v7336_v37 = vpop.eup %7335  ;;  %v3172_v4 = vadd.f32 %v12203_v33, %v2960_v59  ;;  %v12204_v55 = vrot.slane %v10454_v56, 2  ;;  %v12205_v49 = vrot.slane %v10468_v0, 1  ;;  %6822 = vmatprep.subr.bf16.mxu1 %v12580_v63  ;;  %v10488_v53 = vmul.f32 0.0, %v8681_v5 }
 0x3d4   : > { %v4156_v52 = vadd.f32 1.0, %v7334_v10  ;;  %v12584_v45 = vrot.slane %v10444_v15, 2  ;;  %v10494_v41 = vmul.f32 %v8595_v40, %v10480_v20  ;;  %7347 = vpow2.f32 %v6234_v28 }
 0x3d5   : > { %12583 = vst [vmem:[#allocation71_spill] sm:$0xff] %v10488_v53  ;;  %v7338_v9 = vpop.eup %7337  ;;  %v2422_v30 = vmul.f32 %v8612_v43, %v2382_v46  ;;  %v3403_v33 = vadd.f32 %v12204_v55, %v3172_v4  ;;  %v3691_v53 = vadd.f32 %v12205_v49, %v10364_v27  ;;  %v12207_v10 = vrot.slane %v10477_v34, 2 }
 0x3d6   : > { %v2878_v16 = vadd.f32 %v12584_v45, %v2655_v50  ;;  %7349 = vrcp.f32 %v4157_v2  ;;  %v10509_v28 = vmul.f32 %v12392_v48, %v10480_v20  ;;  %6824 = vmatpush3.bf16.msra.mxu1 %v6823_v7  ;;  %v10518_v27 = vmul.f32 %v12384_v31, %v10480_v20  ;;  %v12586_v2 = vld [vmem:[#allocation49_spill] sm:$0xff] }
 0x3d7   : > { %v10496_v59 = vpop.eup %7339  ;;  %v3486_v4 = vadd.f32 %v12570_v25, %v3403_v33  ;;  %v3914_v55 = vadd.f32 %v12207_v10, %v3691_v53  ;;  %6825 = vmatprep.subr.bf16.mxu1 %v12580_v63  ;;  %7351 = vrcp.f32 %v4156_v52  ;;  %v12587_v7 = vrot.slane %v10258_v17, 1 }
 0x3d8   : > { %v2963_v45 = vadd.f32 %v12569_v54, %v2878_v16  ;;  %12585 = vst [vmem:[#allocation56_spill] sm:$0xff] %v10509_v28  ;;  %v10511_v46 = vpop.eup %7341  ;;  %v2383_v16 = vmul.f32 %v7336_v37, %v12586_v2  ;;  %v12588_v33 = vrot.slane %v10494_v41, 1  ;;  %v12589_v54 = vrot.slane %v10213_v62, 1 }
 0x3d9   : > { %v12209_v10 = vrot.slane %v10509_v28, 1  ;;  %v12590_v25 = vrot.slane %v10285_v13, 1  ;;  %v10539_v2 = vadd.f32 %v9729_v8, %v3914_v55  ;;  %v10543_v52 = vmul.f32 %v12393_v21, %v10480_v20 }
 0x3da   : > { %v10522_v49 = vpop.eup %7343  ;;  %v10526_v50 = vadd.f32 %v12587_v7, %v2963_v45  ;;  %v2566_v53 = vsel %vm664_vm1, %v12589_v54, %v12588_v33  ;;  %v10547_v45 = vmul.f32 %v8681_v5, %v10480_v20  ;;  %v2921_v54 = vmul.f32 %v12389_v47, %v10480_v20 }
 0x3db   : > { %v10536_v37 = vadd.f32 %v12590_v25, %v3486_v4  ;;  %12592 = vst [vmem:[#allocation87_spill] sm:$0xff] %v10539_v2  ;;  %v10549_v62 = vpop.eup %7345  ;;  %v12595_v25 = vmov %v12587_v7  ;;  %v10562_v55 = vmul.f32 %v8656_v57, %v10480_v20  ;;  %v2292_v4 = vadd.f32 1.0, %v7338_v9 }
 0x3dc   : > { %12593 = vst [vmem:[#allocation66_spill] sm:$0xff] %v10547_v45  ;;  %12594 = vst [vmem:[#allocation63_spill] sm:$0xff] %v10549_v62  ;;  %v10558_v8 = vsel %vm664_vm1, %v12595_v25, %v12209_v10  ;;  %v12596_v7 = vpack.c.bf16 %v10380_v24, %v10375_v14  ;;  %v6266_v33 = vmul.f32 -1.442695, %v10539_v2  ;;  %v12217_v62 = vrot.slane %v10547_v45, 1 }
 0x3dd   : > { %12591 = vst [vmem:[#allocation58_spill] sm:$0xff] %v10536_v37  ;;  %v2489_v17 = vmul.f32 %v8595_v40, %v2383_v16  ;;  %v3447_v25 = vmul.f32 %v12395_v12, %v10480_v20  ;;  %v12218_v10 = vrot.slane %v10562_v55, 2  ;;  %v2696_v9 = vmul.f32 %v12384_v31, %v2383_v16 }
 0x3de   : > { %6827 = vmatpush3.bf16.msra.mxu1 %v12596_v7  ;;  %v2919_v14 = vmul.f32 %v12389_v47, %v2383_v16  ;;  %v12597_v7 = vrot.slane %v10285_v13, 1  ;;  %v2423_v2 = vmul.f32 %v8612_v43, %v2383_v16  ;;  %v10586_v28 = vpop.eup %7347  ;;  %7353 = vpow2.f32 %v6266_v33 }
 0x3df   : > { %6828 = vmatprep.subr.bf16.mxu1 %v12580_v63  ;;  %v2562_v40 = vrot.slane %v2489_v17, 1  ;;  %v12599_v31 = vrot.slane %v10301_v32, 2  ;;  %v2779_v24 = vrot.slane %v2696_v9, 2  ;;  %v12601_v13 = vpack.c.bf16 %v10397_v61, %v10392_v58 }
 0x3e0   : > { %v10583_v37 = vsel %vm664_vm1, %v12597_v7, %v12217_v62  ;;  %v2962_v45 = vadd.f32 %v2919_v14, %v10383_v60  ;;  %v12602_v7 = vrot.slane %v10441_v26, 1  ;;  %v3003_v33 = vmul.f32 %v12392_v48, %v2383_v16 }
 0x3e1   : > { %12598 = vst [vmem:[#allocation73_spill] sm:$0xff] %v10583_v37  ;;  %v10593_v47 = vsel %vm850_vm0, %v12599_v31, %v12218_v10  ;;  %v2657_v62 = vadd.f32 %v2562_v40, %v2423_v2  ;;  %v3216_v37 = vmul.f32 %v12393_v21, %v2383_v16  ;;  %v7350_v31 = vpop.eup %7349  ;;  %v12603_v9 = vrot.slane %v10444_v15, 2 }
 0x3e2   : > { %12600 = vst [vmem:[#allocation74_spill] sm:$0xff] %v10593_v47  ;;  %6830 = vmatpush3.bf16.msra.mxu1 %v12601_v13  ;;  %v2563_v17 = vsel %vm664_vm1, %v12602_v7, %v2562_v40  ;;  %v2781_v61 = vsel %vm850_vm0, %v2779_v24, %v8647_v51  ;;  %v3445_v26 = vmul.f32 %v12395_v12, %v2383_v16  ;;  %v3077_v14 = vrot.slane %v3003_v33, 1  ;;  %v7352_v13 = vpop.eup %7351 }
 0x3e3   : > { %6831 = vmatprep.subr.bf16.mxu1 %v12580_v63  ;;  %v2656_v10 = vadd.f32 %v2563_v17, %v2422_v30  ;;  %v2780_v60 = vsel %vm850_vm0, %v12603_v9, %v2779_v24  ;;  %v2880_v58 = vadd.f32 %v2781_v61, %v2657_v62  ;;  %v3302_v40 = vrot.slane %v3216_v37, 2 }
 0x3e4   : > { %v3527_v2 = vmul.f32 %v8681_v5, %v2383_v16  ;;  %v3485_v47 = vadd.f32 %v3445_v26, %v10326_v36  ;;  %v3736_v30 = vmul.f32 %v8656_v57, %v2383_v16  ;;  %7355 = vrcp.f32 %v2292_v4 }
 0x3e5   : > { %v2879_v7 = vadd.f32 %v2780_v60, %v2656_v10  ;;  %v12604_v15 = vpack.c.bf16 %v10413_v39, %v10402_v44  ;;  %v2965_v17 = vadd.f32 %v2921_v54, %v2880_v58  ;;  %v12605_v24 = vrot.slane %v10451_v38, 1 }
 0x3e6   : > { %v3174_v33 = vadd.f32 %v3077_v14, %v2962_v45  ;;  %v12606_v37 = vrot.slane %v10454_v56, 2  ;;  %v3304_v10 = vsel %vm850_vm0, %v3302_v40, %v12493_v11  ;;  %v3598_v16 = vrot.slane %v3527_v2, 1 }
 0x3e7   : > { %6833 = vmatpush3.bf16.msra.mxu1 %v12604_v15  ;;  %v3078_v62 = vsel %vm664_vm1, %v12605_v24, %v3077_v14  ;;  %v3816_v44 = vrot.slane %v3736_v30, 2  ;;  %v2290_v54 = vadd.f32 1.0, %v10496_v59  ;;  %v2659_v38 = vadd.f32 %v2566_v53, %v10255_v29 }
 0x3e8   : > { %v3303_v9 = vsel %vm850_vm0, %v12606_v37, %v3302_v40  ;;  %6834 = vmatprep.subr.bf16.mxu1 %v12580_v63  ;;  %v3173_v36 = vadd.f32 %v3078_v62, %v10464_v3  ;;  %v3405_v39 = vadd.f32 %v3304_v10, %v3174_v33  ;;  %v12607_v45 = vrot.slane %v10518_v27, 2  ;;  %v7354_v14 = vpop.eup %7353  ;;  %v12619_v62 = vld [vmem:[#allocation93_spill] sm:$0xff] }
 0x3e9   : > { %v12608_v56 = vrot.slane %v10228_v19, 2  ;;  %v12609_v63 = vrot.slane %v10468_v0, 1  ;;  %v3693_v61 = vadd.f32 %v3598_v16, %v3485_v47  ;;  %v12610_v26 = vrot.slane %v10477_v34, 2 }
 0x3ea   : > { %v3404_v60 = vadd.f32 %v3303_v9, %v3173_v36  ;;  %v12611_v59 = vpack.c.bf16 %v10429_v18, %v10424_v6  ;;  %v10643_v29 = vadd.f32 %v3447_v25, %v3405_v39  ;;  %v3818_v53 = vsel %vm850_vm0, %v3816_v44, %v12500_v42  ;;  %v12622_v9 = vld [vmem:[#allocation56_spill] sm:$0xff] }
 0x3eb   : > { %v2784_v4 = vsel %vm850_vm0, %v12608_v56, %v12607_v45  ;;  %v3599_v3 = vsel %vm664_vm1, %v12609_v63, %v3598_v16  ;;  %v3817_v58 = vsel %vm850_vm0, %v12610_v26, %v3816_v44  ;;  %7357 = vrcp.f32 %v2290_v54  ;;  %v12624_v16 = vld [vmem:[#allocation94_spill] sm:$0xff]  ;;  %v12636_v26 = vld [vmem:[#allocation43_spill] sm:$0xff] }
 0x3ec   : > { %6836 = vmatpush3.bf16.msra.mxu1 %v12611_v59  ;;  %v3692_v19 = vadd.f32 %v3599_v3, %v10474_v35  ;;  %v12612_v0 = vmov 0.0   ;;  %v2425_v47 = vmul.f32 %v8612_v43, %v10480_v20  ;;  %v3487_v34 = vadd.f32 %v10278_v23, %v3404_v60  ;;  %v10666_v23 = vld [vmem:[%s12024_s6] ss:$0 sm:$0xff] }
 0x3ed   : > { %6760 = vmatprep.subr.mxu1 %v12612_v0  ;;  %v3916_v40 = vadd.f32 %v3818_v53, %v3693_v61  ;;  %v2882_v2 = vadd.f32 %v2784_v4, %v2659_v38  ;;  %v2964_v6 = vadd.f32 %v10270_v1, %v2879_v7  ;;  %v12614_v35 = vrot.slane %v10543_v52, 2  ;;  %12617 = vst [vmem:[#allocation85_spill] sm:$0xff] %v10666_v23 }
 0x3ee   : > { %v10652_v18 = vadd.f32 %v3817_v58, %v3692_v19  ;;  %v12615_v25 = vrot.slane %v10275_v22, 2  ;;  %v2293_v1 = vadd.f32 1.0, %v10511_v46  ;;  %v2291_v7 = vadd.f32 1.0, %v10522_v49  ;;  %v7356_v39 = vpop.eup %7355  ;;  %v12626_v46 = vld [vmem:[#allocation96_spill] sm:$0xff]  ;;  %v12638_v19 = vld [vmem:[#allocation63_spill] sm:$0xff] }
 0x3ef   : > { %v10669_v20 = vadd.f32 %v10666_v23, %v3916_v40  ;;  %v10675_v33 = vadd.f32 %v10666_v23, %v12619_v62  ;;  %v12621_v37 = vrot.slane %v10494_v41, 1  ;;  %v12623_v36 = vrot.slane %v12622_v9, 1 }
 0x3f0   : > { %12613 = vst [vmem:[#allocation55_spill] sm:$0xff] %v10652_v18  ;;  %v3307_v30 = vsel %vm850_vm0, %v12615_v25, %v12614_v35  ;;  %v12616_v15 = vmov %v12615_v25  ;;  %v10684_v44 = vadd.f32 %v10666_v23, %v12624_v16  ;;  %v10687_v54 = vmul.f32 %v7350_v31, %v12626_v46  ;;  %v12631_v31 = vld [vmem:[#allocation97_spill] sm:$0xff] }
 0x3f1   : > { %v3406_v24 = vadd.f32 %v12616_v15, %v10526_v50  ;;  %12618 = vst [vmem:[#allocation86_spill] sm:$0xff] %v10669_v20  ;;  %12620 = vst [vmem:[#allocation69_spill] sm:$0xff] %v10675_v33  ;;  %v2660_v22 = vadd.f32 %v12621_v37, %v2425_v47  ;;  %v3176_v50 = vadd.f32 %v10558_v8, %v2964_v6  ;;  %v6268_v49 = vmul.f32 -1.442695, %v10669_v20  ;;  %v12629_v8 = vld [vmem:[#allocation70_spill] sm:$0xff]  ;;  %v12640_v15 = vld [vmem:[#allocation71_spill] sm:$0xff] }
 0x3f2   : > { %v3177_v10 = vadd.f32 %v12623_v36, %v2965_v17  ;;  %12625 = vst [vmem:[#allocation49_spill] sm:$0xff] %v10684_v44  ;;  %12627 = vst [vmem:[#allocation93_spill] sm:$0xff] %v10687_v54  ;;  %7359 = vrcp.f32 %v2293_v1  ;;  %v12628_v41 = vmov %v12614_v35  ;;  %v2388_v45 = vmul.f32 %v7356_v39, %v12629_v8  ;;  %v12643_v37 = vld [vmem:[#allocation76_spill] sm:$0xff]  ;;  %v12645_v36 = vld [vmem:[#allocation73_spill] sm:$0xff] }
 0x3f3   : > { %v3308_v38 = vsel %vm850_vm0, %v12628_v41, %v12493_v11  ;;  %v3407_v56 = vadd.f32 %v3307_v30, %v3176_v50  ;;  %v12630_v17 = vrot.slane %v10518_v27, 2  ;;  %v10702_v63 = vmul.f32 %v7352_v13, %v12631_v31  ;;  %v12637_v27 = vld [vmem:[#allocation45_spill] sm:$0xff] }
 0x3f4   : > { %v10699_v60 = vadd.f32 %v3308_v38, %v3177_v10  ;;  %v10704_v3 = vadd.f32 1.0, %v7354_v14  ;;  %v12634_v52 = vrot.slane %v10562_v55, 2  ;;  %7361 = vrcp.f32 %v2291_v7  ;;  %v12639_v14 = vld [vmem:[#allocation59_spill] sm:$0xff] }
 0x3f5   : > { %v2785_v4 = vsel %vm850_vm0, %v12630_v17, %v8647_v51  ;;  %12632 = vst [vmem:[#allocation56_spill] sm:$0xff] %v10702_v63  ;;  %7363 = vpow2.f32 %v6268_v49  ;;  %v10713_v58 = vmul.f32 %v12636_v26, %v2388_v45  ;;  %v10716_v59 = vmul.f32 %v12637_v27, %v2388_v45  ;;  %v7358_v6 = vpop.eup %7357  ;;  %v12647_v17 = vld [vmem:[#allocation46_spill] sm:$0xff] }
 0x3f6   : > { %12633 = vst [vmem:[#allocation94_spill] sm:$0xff] %v10704_v3  ;;  %v10710_v61 = vsel %vm850_vm0, %v12634_v52, %v12500_v42  ;;  %v2296_v53 = vadd.f32 1.0, %v12638_v19  ;;  %v10720_v13 = vmul.f32 %v12392_v48, %v2388_v45  ;;  %v3489_v47 = vadd.f32 %v12639_v14, %v3406_v24  ;;  %v12642_v24 = vld [vmem:[#allocation50_spill] sm:$0xff] }
 0x3f7   : > { %12635 = vst [vmem:[#allocation96_spill] sm:$0xff] %v10710_v61  ;;  %v10723_v40 = vadd.f32 %v2785_v4, %v2660_v22  ;;  %v2294_v55 = vadd.f32 1.0, %v10586_v28  ;;  %v10727_v35 = vmul.f32 %v8612_v43, %v2388_v45  ;;  %v10730_v25 = vmul.f32 %v12393_v21, %v2388_v45 }
 0x3f8   : > { %v10733_v30 = vmul.f32 %v8681_v5, %v2388_v45  ;;  %v10736_v1 = vrot.slane %v12640_v15, 1  ;;  %v12219_v7 = vrot.slane %v10713_v58, 1  ;;  %v10740_v62 = vmul.f32 %v12642_v24, %v2388_v45 }
 0x3f9   : > { %v10743_v28 = vmul.f32 %v12395_v12, %v2388_v45  ;;  %v2386_v22 = vmul.f32 %v7358_v6, %v12643_v37  ;;  %v10748_v9 = vmul.f32 %v8656_v57, %v2388_v45  ;;  %7365 = vrcp.f32 %v2296_v53 }
 0x3fa   : > { %12641 = vst [vmem:[#allocation70_spill] sm:$0xff] %v10736_v1  ;;  %v10751_v10 = vadd.f32 %v12645_v36, %v3487_v34  ;;  %v2664_v4 = vadd.f32 %v12219_v7, %v12647_v17  ;;  %v12650_v7 = vld [vmem:[#allocation90_spill] sm:$0xff]  ;;  %7367 = vrcp.f32 %v2294_v55 }
 0x3fb   : > { %12644 = vst [vmem:[#allocation97_spill] sm:$0xff] %v10748_v9  ;;  %v10755_v39 = vmul.f32 %v12636_v26, %v2386_v22  ;;  %v10758_v46 = vmul.f32 %v12637_v27, %v2386_v22  ;;  %v2922_v49 = vmul.f32 %v12642_v24, %v2386_v22  ;;  %v10764_v8 = vmul.f32 %v12392_v48, %v2386_v22 }
 0x3fc   : > { %12646 = vst [vmem:[#allocation43_spill] sm:$0xff] %v10751_v10  ;;  %v10767_v34 = vmul.f32 %v12393_v21, %v2386_v22  ;;  %v7360_v45 = vpop.eup %7359  ;;  %v3448_v19 = vmul.f32 %v12395_v12, %v2386_v22  ;;  %v10779_v15 = vmul.f32 %v8681_v5, %v2386_v22  ;;  %v10782_v37 = vmul.f32 %v8656_v57, %v2386_v22 }
 0x3fd   : > { %v2567_v31 = vrot.slane %v10755_v39, 1  ;;  %v10773_v52 = vadd.f32 %v2922_v49, %v2882_v2  ;;  %v3082_v6 = vrot.slane %v10764_v8, 1  ;;  %v2786_v41 = vrot.slane %v10758_v46, 2  ;;  %v12649_v2 = vld [vmem:[#allocation52_spill] sm:$0xff] }
 0x3fe   : > { %12648 = vst [vmem:[#allocation63_spill] sm:$0xff] %v10782_v37  ;;  %v7362_v36 = vpop.eup %7361  ;;  %v10786_v39 = vadd.f32 %v3448_v19, %v3407_v56  ;;  %v2389_v49 = vmul.f32 %v7360_v45, %v12649_v2  ;;  %v12225_v8 = vrot.slane %v10767_v34, 2  ;;  %v12223_v50 = vrot.slane %v10779_v15, 1  ;;  %v12651_v45 = vld [vmem:[#allocation83_spill] sm:$0xff] }
 0x3ff   : > { %v2661_v38 = vadd.f32 %v2567_v31, %v12647_v17  ;;  %v7364_v16 = vpop.eup %7363  ;;  %v3178_v53 = vadd.f32 %v3082_v6, %v12650_v7  ;;  %v2426_v0 = vmul.f32 %v8612_v43, %v2386_v22  ;;  %v12224_v46 = vrot.slane %v10782_v37, 2 }
 0x400   : > { %v2495_v63 = vmul.f32 %v12636_v26, %v2389_v49  ;;  %v10795_v54 = vmul.f32 %v12637_v27, %v2389_v49  ;;  %v3697_v7 = vadd.f32 %v12223_v50, %v3489_v47  ;;  %v2387_v19 = vmul.f32 %v7362_v36, %v12651_v45  ;;  %v12655_v36 = vld [vmem:[#allocation53_spill] sm:$0xff] }
 0x401   : > { %v2884_v20 = vadd.f32 %v2786_v41, %v2661_v38  ;;  %v10799_v56 = vadd.f32 %v12225_v8, %v3178_v53  ;;  %v10805_v55 = vadd.f32 1.0, %v7364_v16  ;;  %v12653_v22 = vrot.slane %v10716_v59, 2 }
 0x402   : > { %v2571_v2 = vrot.slane %v2495_v63, 1  ;;  %v10812_v44 = vmul.f32 %v12392_v48, %v2389_v49  ;;  %v10816_v53 = vadd.f32 %v12224_v46, %v3697_v7  ;;  %v2429_v47 = vmul.f32 %v8612_v43, %v2389_v49 }
 0x403   : > { %12652 = vst [vmem:[#allocation59_spill] sm:$0xff] %v10805_v55  ;;  %v10809_v38 = vadd.f32 %v12653_v22, %v2664_v4  ;;  %v7366_v33 = vpop.eup %7365  ;;  %v2925_v50 = vmul.f32 %v12642_v24, %v2389_v49  ;;  %v10821_v16 = vmul.f32 %v12393_v21, %v2389_v49  ;;  %v10824_v45 = vadd.f32 %v12655_v36, %v2884_v20 }
 0x404   : > { %12654 = vst [vmem:[#allocation71_spill] sm:$0xff] %v10816_v53  ;;  %v2791_v63 = vrot.slane %v10795_v54, 2  ;;  %v10828_v4 = vmul.f32 %v12395_v12, %v2389_v49  ;;  %v10831_v22 = vmul.f32 %v8681_v5, %v2389_v49  ;;  %v10833_v7 = vadd.f32 %v2571_v2, %v2429_v47  ;;  %v7368_v32 = vpop.eup %7367 }
 0x405   : > { %v2493_v8 = vmul.f32 %v12636_v26, %v2387_v19  ;;  %v2700_v53 = vmul.f32 %v12637_v27, %v2387_v19  ;;  %v10839_v23 = vmul.f32 %v8656_v57, %v2389_v49  ;;  %v2427_v20 = vmul.f32 %v8612_v43, %v2387_v19 }
 0x406   : > { %12656 = vst [vmem:[#allocation50_spill] sm:$0xff] %v10833_v7  ;;  %v2923_v54 = vmul.f32 %v12642_v24, %v2387_v19  ;;  %v3007_v18 = vmul.f32 %v12392_v48, %v2387_v19  ;;  %v10846_v7 = vmul.f32 %v8681_v5, %v2387_v19  ;;  %v3449_v49 = vmul.f32 %v12395_v12, %v2387_v19 }
 0x407   : > { %v2568_v3 = vrot.slane %v2493_v8, 1  ;;  %v2787_v47 = vrot.slane %v2700_v53, 2  ;;  %v3220_v55 = vmul.f32 %v12393_v21, %v2387_v19 }
 0x408   : > { %v2968_v61 = vadd.f32 %v2923_v54, %v10723_v40  ;;  %v3083_v10 = vrot.slane %v3007_v18, 1  ;;  %v3491_v1 = vadd.f32 %v3449_v49, %v10699_v60  ;;  %v12236_v18 = vrot.slane %v10846_v7, 1 }
 0x409   : > { %v2569_v43 = vsel %vm664_vm1, %v2567_v31, %v2568_v3  ;;  %v2663_v9 = vadd.f32 %v2568_v3, %v2427_v20  ;;  %v2788_v42 = vsel %vm850_vm0, %v2786_v41, %v2787_v47  ;;  %v2789_v40 = vsel %vm850_vm0, %v2787_v47, %v8647_v51  ;;  %v12657_v31 = vld [vmem:[#allocation84_spill] sm:$0xff]  ;;  %v12658_v41 = vld [vmem:[#allocation89_spill] sm:$0xff] }
 0x40a   : > { %v2662_v8 = vadd.f32 %v2569_v43, %v2426_v0  ;;  %v3084_v53 = vsel %vm664_vm1, %v3082_v6, %v3083_v10  ;;  %v3180_v37 = vadd.f32 %v3083_v10, %v2968_v61  ;;  %v10860_v54 = vmul.f32 %v8656_v57, %v2387_v19  ;;  %v12659_v43 = vld [vmem:[#allocation79_spill] sm:$0xff]  ;;  %v12662_v6 = vld [vmem:[#allocation60_spill] sm:$0xff] }
 0x40b   : > { %v10863_v3 = vmul.f32 %v7366_v33, %v12657_v31  ;;  %v10866_v20 = vmul.f32 %v7368_v32, %v12658_v41  ;;  %7369 = vpow2.f32 %v12659_v43  ;;  %v12660_v0 = vrot.slane %v10713_v58, 1 }
 0x40c   : > { %v12661_v61 = vrot.slane %v10716_v59, 2  ;;  %v10878_v19 = vadd.f32 %v12236_v18, %v3491_v1  ;;  %v2886_v58 = vadd.f32 %v2789_v40, %v2663_v9  ;;  %7371 = vpow2.f32 %v12662_v6 }
 0x40d   : > { %v2572_v60 = vsel %vm664_vm1, %v12660_v0, %v2571_v2  ;;  %v10882_v32 = vmul.f32 %v12392_v48, %v10863_v3  ;;  %v10886_v33 = vmul.f32 %v12393_v21, %v10863_v3  ;;  %v3310_v2 = vrot.slane %v3220_v55, 2 }
 0x40e   : > { %v2792_v10 = vsel %vm850_vm0, %v12661_v61, %v2791_v63  ;;  %v10890_v59 = vmul.f32 %v8681_v5, %v10863_v3  ;;  %v10894_v47 = vmul.f32 %v8656_v57, %v10863_v3  ;;  %v10900_v31 = vmul.f32 %v12636_v26, %v10866_v20 }
 0x40f   : > { %v10904_v9 = vmul.f32 %v12637_v27, %v10866_v20  ;;  %v10911_v43 = vmul.f32 %v12392_v48, %v10866_v20  ;;  %v2926_v61 = vmul.f32 %v12642_v24, %v10866_v20  ;;  %v2665_v1 = vadd.f32 %v2572_v60, %v10727_v35 }
 0x410   : > { %v12238_v0 = vrot.slane %v10900_v31, 1  ;;  %v2885_v40 = vadd.f32 %v2788_v42, %v2662_v8  ;;  %v2971_v55 = vadd.f32 %v2925_v50, %v2886_v58  ;;  %v10925_v49 = vsel %vm850_vm0, %v2791_v63, %v8647_v51 }
 0x411   : > { %v12242_v46 = vrot.slane %v10904_v9, 2  ;;  %v2888_v27 = vadd.f32 %v2792_v10, %v2665_v1  ;;  %v2972_v6 = vadd.f32 %v12655_v36, %v10809_v38  ;;  %v12663_v60 = vrot.slane %v10812_v44, 1 }
 0x412   : > { %v2667_v41 = vadd.f32 %v12238_v0, %v12647_v17  ;;  %v2970_v35 = vadd.f32 %v10740_v62, %v2885_v40  ;;  %v12664_v18 = vrot.slane %v10720_v13, 1  ;;  %v3179_v50 = vadd.f32 %v3084_v53, %v10773_v52 }
 0x413   : > { %v10941_v10 = vadd.f32 %v2926_v61, %v2888_v27  ;;  %v12666_v38 = vmov %v12663_v60  ;;  %v12667_v58 = vrot.slane %v10911_v43, 1  ;;  %v10949_v52 = vmul.f32 %v12393_v21, %v10866_v20 }
 0x414   : > { %v3087_v42 = vsel %vm664_vm1, %v12664_v18, %v12663_v60  ;;  %v12665_v17 = vmov %v12664_v18  ;;  %v2890_v63 = vadd.f32 %v12242_v46, %v2667_v41  ;;  %v3183_v62 = vadd.f32 %v12666_v38, %v2971_v55 }
 0x415   : > { %v3181_v8 = vadd.f32 %v12665_v17, %v10824_v45  ;;  %v3184_v1 = vadd.f32 %v12667_v58, %v2972_v6  ;;  %v7370_v40 = vpop.eup %7369  ;;  %v3182_v0 = vadd.f32 %v3087_v42, %v2970_v35  ;;  %v12668_v13 = vrot.slane %v10767_v34, 2 }
 0x416   : > { %v3312_v27 = vsel %vm850_vm0, %v3310_v2, %v12493_v11  ;;  %v2297_v53 = vadd.f32 1.0, %v7370_v40  ;;  %v2975_v44 = vadd.f32 %v12655_v36, %v2890_v63  ;;  %v12669_v18 = vrot.slane %v10821_v16, 2 }
 0x417   : > { %v3311_v45 = vsel %vm850_vm0, %v12668_v13, %v3310_v2  ;;  %v12670_v55 = vrot.slane %v10730_v25, 2  ;;  %v12241_v34 = vrot.slane %v10949_v52, 2  ;;  %v3411_v60 = vadd.f32 %v3312_v27, %v3180_v37  ;;  %v7372_v25 = vpop.eup %7371 }
 0x418   : > { %v12671_v61 = vmov %v12669_v18  ;;  %v3410_v35 = vadd.f32 %v3311_v45, %v3179_v50  ;;  %7373 = vrcp.f32 %v2297_v53  ;;  %v12673_v36 = vrot.slane %v10882_v32, 1 }
 0x419   : > { %v3315_v41 = vsel %vm850_vm0, %v12670_v55, %v12669_v18  ;;  %v3316_v6 = vsel %vm850_vm0, %v12671_v61, %v12493_v11  ;;  %v12672_v2 = vmov %v12670_v55  ;;  %v3415_v58 = vadd.f32 %v12241_v34, %v3184_v1  ;;  %v12679_v61 = vld [vmem:[#allocation66_spill] sm:$0xff] }
 0x41a   : > { %v3412_v42 = vadd.f32 %v12672_v2, %v3181_v8  ;;  %v3187_v17 = vadd.f32 %v12673_v36, %v2975_v44  ;;  %v3413_v63 = vadd.f32 %v3315_v41, %v3182_v0  ;;  %v10971_v38 = vadd.f32 %v3316_v6, %v3183_v62 }
 0x41b   : > { %v3452_v16 = vmul.f32 %v12395_v12, %v10866_v20  ;;  %v3492_v50 = vadd.f32 %v12639_v14, %v10799_v56  ;;  %v3493_v37 = vadd.f32 %v10743_v28, %v3410_v35  ;;  %v12674_v8 = vrot.slane %v10886_v33, 2 }
 0x41c   : > { %v3494_v13 = vadd.f32 %v10828_v4, %v3411_v60  ;;  %v3495_v0 = vadd.f32 %v12639_v14, %v3412_v42  ;;  %v10986_v62 = vmul.f32 %v8681_v5, %v10866_v20  ;;  %v2295_v1 = vadd.f32 1.0, %v7372_v25 }
 0x41d   : > { %v3418_v40 = vadd.f32 %v12674_v8, %v3187_v17  ;;  %v10988_v45 = vadd.f32 %v3452_v16, %v3413_v63  ;;  %v3498_v27 = vadd.f32 %v12639_v14, %v3415_v58  ;;  %v12675_v56 = vrot.slane %v10846_v7, 1  ;;  %v12684_v16 = vld [vmem:[#allocation70_spill] sm:$0xff] }
 0x41e   : > { %v12676_v28 = vrot.slane %v10779_v15, 1  ;;  %v12677_v4 = vrot.slane %v10831_v22, 1  ;;  %v12678_v18 = vrot.slane %v10733_v30, 1  ;;  %v12240_v41 = vrot.slane %v10986_v62, 1  ;;  %v12686_v30 = vld [vmem:[#allocation63_spill] sm:$0xff]  ;;  %v12688_v22 = vld [vmem:[#allocation61_spill] sm:$0xff] }
 0x41f   : > { %v3501_v44 = vadd.f32 %v12639_v14, %v3418_v40  ;;  %v12680_v6 = vrot.slane %v12679_v61, 1  ;;  %7375 = vrcp.f32 %v2295_v1  ;;  %v12683_v63 = vrot.slane %v10890_v59, 1  ;;  %v12698_v61 = vld [vmem:[#allocation74_spill] sm:$0xff] }
 0x420   : > { %v3605_v53 = vsel %vm664_vm1, %v12676_v28, %v12675_v56  ;;  %v3608_v55 = vsel %vm664_vm1, %v12678_v18, %v12677_v4  ;;  %v12681_v15 = vmov %v12678_v18  ;;  %v12682_v42 = vmov %v12677_v4 }
 0x421   : > { %v3696_v35 = vadd.f32 %v12680_v6, %v10643_v29  ;;  %v3698_v7 = vadd.f32 %v3605_v53, %v10786_v39  ;;  %v3700_v60 = vadd.f32 %v12681_v15, %v3492_v50  ;;  %v3701_v2 = vadd.f32 %v3608_v55, %v3493_v37  ;;  %v12694_v53 = vld [vmem:[#allocation58_spill] sm:$0xff]  ;;  %v12697_v55 = vld [vmem:[#allocation43_spill] sm:$0xff]  ;;  %v12699_v6 = vld [vmem:[#allocation96_spill] sm:$0xff] }
 0x422   : > { %v3702_v36 = vadd.f32 %v12682_v42, %v3494_v13  ;;  %v3703_v17 = vadd.f32 %v12240_v41, %v3495_v0  ;;  %v3706_v58 = vadd.f32 %v12683_v63, %v3498_v27  ;;  %v3709_v25 = vadd.f32 %v12684_v16, %v3501_v44  ;;  %v12691_v0 = vld [vmem:[#allocation97_spill] sm:$0xff]  ;;  %v12695_v44 = vld [vmem:[#allocation88_spill] sm:$0xff] }
 0x423   : > { %v11018_v29 = vmul.f32 %v8656_v57, %v10866_v20  ;;  %v12685_v39 = vrot.slane %v10860_v54, 2  ;;  %v12687_v50 = vrot.slane %v12686_v30, 2  ;;  %v12690_v13 = vrot.slane %v10839_v23, 2  ;;  %v7374_v23 = vpop.eup %7373 }
 0x424   : > { %v12692_v1 = vrot.slane %v12691_v0, 2  ;;  %v12696_v4 = vrot.slane %v12695_v44, 2  ;;  %v3918_v54 = vadd.f32 %v12698_v61, %v12697_v55  ;;  %v3919_v15 = vadd.f32 %v12699_v6, %v3696_v35  ;;  %v12704_v35 = vld [vmem:[#allocation59_spill] sm:$0xff] }
 0x425   : > { %v3825_v37 = vsel %vm850_vm0, %v12687_v50, %v12685_v39  ;;  %v12689_v8 = vmov %v12685_v39  ;;  %v12693_v56 = vmov %v12690_v13  ;;  %v12239_v42 = vrot.slane %v11018_v29, 2 }
 0x426   : > { %v3826_v40 = vsel %vm850_vm0, %v12689_v8, %v12688_v22  ;;  %v3829_v27 = vsel %vm850_vm0, %v12692_v1, %v12690_v13  ;;  %v3830_v28 = vsel %vm850_vm0, %v12693_v56, %v12688_v22  ;;  %v3917_v18 = vadd.f32 %v12696_v4, %v12694_v53  ;;  %v12701_v8 = vld [vmem:[#allocation94_spill] sm:$0xff]  ;;  %v12710_v4 = vld [vmem:[#allocation85_spill] sm:$0xff] }
 0x427   : > { %v3921_v63 = vadd.f32 %v3825_v37, %v3698_v7  ;;  %v3922_v39 = vadd.f32 %v3826_v40, %v10878_v19  ;;  %v12700_v30 = vmov %v12692_v1  ;;  %7377 = vrcp.f32 %v12701_v8  ;;  %v12705_v19 = vld [vmem:[#allocation65_spill] sm:$0xff]  ;;  %v12707_v40 = vld [vmem:[#allocation50_spill] sm:$0xff]  ;;  %v12711_v8 = vld [vmem:[#allocation71_spill] sm:$0xff] }
 0x428   : > { %v3923_v50 = vadd.f32 %v12700_v30, %v3700_v60  ;;  %v11049_v13 = vadd.f32 %v3829_v27, %v3701_v2  ;;  %v11051_v1 = vadd.f32 %v3830_v28, %v3702_v36  ;;  %v12702_v56 = vrot.slane %v10894_v47, 2  ;;  %v12706_v36 = vld [vmem:[#allocation44_spill] sm:$0xff] }
 0x429   : > { %7379 = vrcp.f32 %v12704_v35  ;;  %v11060_v7 = vmul.f32 %v12642_v24, %v10863_v3  ;;  %v2393_v37 = vmul.f32 %v7374_v23, %v12705_v19  ;;  %v11065_v60 = vadd.f32 %v12239_v42, %v3703_v17  ;;  %v12709_v17 = vld [vmem:[#allocation55_spill] sm:$0xff]  ;;  %v7376_v6 = vpop.eup %7375 }
 0x42a   : > { %v11055_v53 = vadd.f32 %v12702_v56, %v3706_v58  ;;  %v11069_v2 = vmul.f32 %v12395_v12, %v10863_v3  ;;  %v2430_v58 = vmul.f32 %v12706_v36, %v10866_v20  ;;  %v2889_v0 = vadd.f32 %v10925_v49, %v12707_v40 }
 0x42b   : > { %v11076_v27 = vadd.f32 %v12688_v22, %v3709_v25  ;;  %v11079_v28 = vmul.f32 %v12392_v48, %v2393_v37  ;;  %v11082_v44 = vmul.f32 %v12393_v21, %v2393_v37  ;;  %v11086_v55 = vadd.f32 %v12710_v4, %v12709_v17 }
 0x42c   : > { %12703 = vst [vmem:[#allocation76_spill] sm:$0xff] %v11055_v53  ;;  %v11089_v3 = vadd.f32 %v12710_v4, %v3917_v18  ;;  %v11092_v20 = vmul.f32 %v8681_v5, %v2393_v37  ;;  %v11095_v49 = vmul.f32 %v8656_v57, %v2393_v37  ;;  %v11098_v25 = vadd.f32 %v12710_v4, %v3918_v54 }
 0x42d   : > { %12708 = vst [vmem:[#allocation73_spill] sm:$0xff] %v11076_v27  ;;  %v11101_v61 = vadd.f32 %v12710_v4, %v3919_v15  ;;  %v3092_v30 = vrot.slane %v11079_v28, 1  ;;  %v3322_v23 = vrot.slane %v11082_v44, 2  ;;  %v11107_v18 = vadd.f32 %v12710_v4, %v12711_v8  ;;  %v12712_v15 = vld [vmem:[#allocation62_spill] sm:$0xff] }
 0x42e   : > { %v11110_v56 = vadd.f32 %v12710_v4, %v3921_v63  ;;  %v2929_v35 = vmul.f32 %v12642_v24, %v2393_v37  ;;  %v3613_v54 = vrot.slane %v11092_v20, 1  ;;  %v3836_v19 = vrot.slane %v11095_v49, 2 }
 0x42f   : > { %v2391_v40 = vmul.f32 %v7376_v6, %v12712_v15  ;;  %v12713_v17 = vrot.slane %v10882_v32, 1  ;;  %v12714_v44 = vrot.slane %v10886_v33, 2  ;;  %v3455_v42 = vmul.f32 %v12395_v12, %v2393_v37 }
 0x430   : > { %v11124_v63 = vadd.f32 %v12710_v4, %v3922_v39  ;;  %v12715_v41 = vrot.slane %v10890_v59, 1  ;;  %v12716_v49 = vrot.slane %v10894_v47, 2  ;;  %v11134_v15 = vadd.f32 %v12710_v4, %v3923_v50 }
 0x431   : > { %v3093_v28 = vsel %vm664_vm1, %v12713_v17, %v3092_v30  ;;  %v3323_v8 = vsel %vm850_vm0, %v12714_v44, %v3322_v23  ;;  %v2431_v32 = vmul.f32 %v12706_v36, %v2391_v40  ;;  %v2497_v33 = vmul.f32 %v12636_v26, %v2391_v40  ;;  %v12717_v17 = vld [vmem:[#allocation45_spill] sm:$0xff]  ;;  %v11140_v59 = vpop.eup %7377 }
 0x432   : > { %v3614_v20 = vsel %vm664_vm1, %v12715_v41, %v3613_v54  ;;  %v3837_v6 = vsel %vm850_vm0, %v12716_v49, %v3836_v19  ;;  %v2704_v37 = vmul.f32 %v12717_v17, %v2391_v40  ;;  %v2927_v39 = vmul.f32 %v12642_v24, %v2391_v40  ;;  %12718 = vst [vmem:[#allocation46_spill] sm:$0xff] %v11140_v59 }
 0x433   : > { %v3224_v44 = vmul.f32 %v12393_v21, %v2391_v40  ;;  %v3011_v41 = vmul.f32 %v12392_v48, %v2391_v40  ;;  %v3453_v47 = vmul.f32 %v12395_v12, %v2391_v40  ;;  %v3535_v49 = vmul.f32 %v8681_v5, %v2391_v40  ;;  %v11146_v50 = vpop.eup %7379 }
 0x434   : > { %v3744_v36 = vmul.f32 %v8656_v57, %v2391_v40  ;;  %v2574_v34 = vrot.slane %v2497_v33, 1  ;;  %v2795_v26 = vrot.slane %v2704_v37, 2  ;;  %v2974_v17 = vadd.f32 %v2927_v39, %v2889_v0 }
 0x435   : > { %v3318_v46 = vrot.slane %v3224_v44, 2  ;;  %v3089_v27 = vrot.slane %v3011_v41, 1  ;;  %v3497_v24 = vadd.f32 %v3453_v47, %v10971_v38  ;;  %v3610_v21 = vrot.slane %v3535_v49, 1 }
 0x436   : > { %v3832_v53 = vrot.slane %v3744_v36, 2  ;;  %v12719_v59 = vrot.slane %v10900_v31, 1  ;;  %v2669_v12 = vadd.f32 %v2574_v34, %v2431_v32  ;;  %v12720_v5 = vrot.slane %v10904_v9, 2 }
 0x437   : > { %v2797_v40 = vsel %vm850_vm0, %v2795_v26, %v8647_v51  ;;  %v12721_v0 = vrot.slane %v10911_v43, 1  ;;  %v3186_v38 = vadd.f32 %v3089_v27, %v2974_v17  ;;  %v12722_v39 = vrot.slane %v10949_v52, 2 }
 0x438   : > { %v2575_v48 = vsel %vm664_vm1, %v12719_v59, %v2574_v34  ;;  %v2796_v57 = vsel %vm850_vm0, %v12720_v5, %v2795_v26  ;;  %v2892_v44 = vadd.f32 %v2797_v40, %v2669_v12  ;;  %v3320_v9 = vsel %vm850_vm0, %v3318_v46, %v12493_v11 }
 0x439   : > { %v2668_v33 = vadd.f32 %v2575_v48, %v2430_v58  ;;  %v3090_v37 = vsel %vm664_vm1, %v12721_v0, %v3089_v27  ;;  %v3319_v31 = vsel %vm850_vm0, %v12722_v39, %v3318_v46  ;;  %v12723_v32 = vrot.slane %v10986_v62, 1 }
 0x43a   : > { %v3185_v34 = vadd.f32 %v3090_v37, %v10941_v10  ;;  %v3417_v59 = vadd.f32 %v3320_v9, %v3186_v38  ;;  %v3705_v41 = vadd.f32 %v3610_v21, %v3497_v24  ;;  %v2977_v27 = vadd.f32 %v2929_v35, %v2892_v44  ;;  %v12725_v35 = vld [vmem:[#allocation69_spill] sm:$0xff]  ;;  %v12728_v9 = vld [vmem:[#allocation76_spill] sm:$0xff] }
 0x43b   : > { %v3611_v51 = vsel %vm664_vm1, %v12723_v32, %v3610_v21  ;;  %v2891_v58 = vadd.f32 %v2796_v57, %v2668_v33  ;;  %v12724_v52 = vrot.slane %v11018_v29, 2  ;;  %v3834_v10 = vsel %vm850_vm0, %v3832_v53, %v12688_v22  ;;  %v12727_v44 = vld [vmem:[#allocation93_spill] sm:$0xff] }
 0x43c   : > { %v3704_v43 = vadd.f32 %v3611_v51, %v10988_v45  ;;  %v3416_v47 = vadd.f32 %v3319_v31, %v3185_v34  ;;  %v3500_v36 = vadd.f32 %v3455_v42, %v3417_v59  ;;  %v3928_v26 = vadd.f32 %v3834_v10, %v3705_v41 }
 0x43d   : > { %v3833_v49 = vsel %vm850_vm0, %v12724_v52, %v3832_v53  ;;  %v2976_v46 = vadd.f32 %v11060_v7, %v2891_v58  ;;  %v3189_v17 = vadd.f32 %v3092_v30, %v2977_v27  ;;  %v11179_v45 = vadd.f32 %v12710_v4, %v11049_v13  ;;  %v12726_v30 = vld [vmem:[#allocation49_spill] sm:$0xff]  ;;  %v12729_v58 = vld [vmem:[#allocation56_spill] sm:$0xff] }
 0x43e   : > { %v3927_v62 = vadd.f32 %v3833_v49, %v3704_v43  ;;  %v3499_v48 = vadd.f32 %v11069_v2, %v3416_v47  ;;  %v6264_v24 = vmul.f32 -1.442695, %v12725_v35  ;;  %v3324_v29 = vsel %vm850_vm0, %v3322_v23, %v12493_v11  ;;  %v12730_v47 = vld [vmem:[#allocation73_spill] sm:$0xff] }
 0x43f   : > { %v3838_v53 = vsel %vm850_vm0, %v3836_v19, %v12688_v22  ;;  %v3188_v21 = vadd.f32 %v3093_v28, %v2976_v46  ;;  %v3708_v7 = vadd.f32 %v3613_v54, %v3500_v36  ;;  %v3420_v42 = vadd.f32 %v3324_v29, %v3189_v17  ;;  %v12731_v17 = vld [vmem:[#allocation68_spill] sm:$0xff] }
 0x440   : > { %v3707_v12 = vadd.f32 %v3614_v20, %v3499_v48  ;;  %7381 = vpow2.f32 %v6264_v24  ;;  %v6265_v5 = vmul.f32 -1.442695, %v12726_v30  ;;  %v6267_v13 = vmul.f32 -1.442695, %v11086_v55  ;;  %v12733_v24 = vld [vmem:[#allocation80_spill] sm:$0xff] }
 0x441   : > { %v3419_v2 = vadd.f32 %v3323_v8, %v3188_v21  ;;  %v3931_v57 = vadd.f32 %v3838_v53, %v3708_v7  ;;  %v6269_v40 = vmul.f32 -1.442695, %v11089_v3  ;;  %v3503_v33 = vadd.f32 %v12639_v14, %v3420_v42  ;;  %v12735_v21 = vld [vmem:[#allocation92_spill] sm:$0xff] }
 0x442   : > { %v3930_v0 = vadd.f32 %v3837_v6, %v3707_v12  ;;  %7383 = vpow2.f32 %v6265_v5  ;;  %v6270_v11 = vmul.f32 -1.442695, %v11098_v25  ;;  %v11194_v54 = vadd.f32 %v12710_v4, %v11051_v1 }
 0x443   : > { %v3502_v23 = vadd.f32 %v12639_v14, %v3419_v2  ;;  %7385 = vpow2.f32 %v6267_v13  ;;  %v6271_v19 = vmul.f32 -1.442695, %v11101_v61  ;;  %v3711_v28 = vadd.f32 %v12684_v16, %v3503_v33  ;;  %v12738_v2 = vld [vmem:[#allocation72_spill] sm:$0xff] }
 0x444   : > { %v11200_v8 = vadd.f32 %v12710_v4, %v11065_v60  ;;  %7387 = vpow2.f32 %v6269_v40  ;;  %v6272_v20 = vmul.f32 -1.442695, %v11107_v18  ;;  %v6273_v14 = vmul.f32 -1.442695, %v11110_v56 }
 0x445   : > { %v3710_v6 = vadd.f32 %v12684_v16, %v3502_v23  ;;  %7389 = vpow2.f32 %v6270_v11  ;;  %v6274_v1 = vmul.f32 -1.442695, %v11124_v63  ;;  %v11207_v37 = vadd.f32 %v12710_v4, %v3927_v62 }
 0x446   : > { %v11210_v38 = vadd.f32 %v12710_v4, %v3928_v26  ;;  %7391 = vpow2.f32 %v6271_v19  ;;  %v6275_v60 = vmul.f32 -1.442695, %v11134_v15  ;;  %v3934_v31 = vadd.f32 %v12688_v22, %v3711_v28  ;;  %v12740_v28 = vld [vmem:[#allocation91_spill] sm:$0xff] }
 0x447   : > { %v3933_v39 = vadd.f32 %v12688_v22, %v3710_v6  ;;  %7393 = vpow2.f32 %v6272_v20  ;;  %v6276_v16 = vmul.f32 -1.442695, %v11179_v45  ;;  %v4413_v34 = vrot.slane %v12727_v44, 7  ;;  %v12741_v20 = vld [vmem:[#allocation95_spill] sm:$0xff] }
 0x448   : > { %v11219_v32 = vadd.f32 %v12710_v4, %v12728_v9  ;;  %7395 = vpow2.f32 %v6273_v14  ;;  %v6277_v51 = vmul.f32 -1.442695, %v11194_v54  ;;  %v4411_v59 = vrot.slane %v12729_v58, 7 }
 0x449   : > { %v11224_v43 = vadd.f32 %v12710_v4, %v3930_v0  ;;  %7397 = vpow2.f32 %v6274_v1  ;;  %v6278_v22 = vmul.f32 -1.442695, %v11200_v8  ;;  %v11228_v27 = vadd.f32 %v12710_v4, %v3931_v57 }
 0x44a   : > { %v7382_v41 = vpop.eup %7381  ;;  %v11232_v52 = vadd.f32 %v12710_v4, %v12730_v47  ;;  %7399 = vpow2.f32 %v6275_v60  ;;  %v6279_v49 = vmul.f32 -1.442695, %v11207_v37  ;;  %v11236_v10 = vadd.f32 %v12710_v4, %v3933_v39 }
 0x44b   : > { %v11239_v46 = vadd.f32 %v12710_v4, %v3934_v31  ;;  %7401 = vpow2.f32 %v6276_v16  ;;  %v6280_v36 = vmul.f32 -1.442695, %v11210_v38  ;;  %v6281_v26 = vmul.f32 -1.442695, %v11219_v32 }
 0x44c   : > { %v7384_v62 = vpop.eup %7383  ;;  %7403 = vpow2.f32 %v6277_v51  ;;  %v12732_v48 = vrot.slane %v12731_v17, 7  ;;  %v12734_v29 = vrot.slane %v12733_v24, 7  ;;  %v12736_v7 = vrot.slane %v12735_v21, 7 }
 0x44d   : > { %v7386_v12 = vpop.eup %7385  ;;  %7405 = vpow2.f32 %v6278_v22  ;;  %v6282_v5 = vmul.f32 -1.442695, %v11224_v43  ;;  %v12739_v57 = vrot.slane %v12738_v2, 7  ;;  %v11264_v40 = vsel %vm4374_vm4, %v4411_v59, %v4413_v34  ;;  %v12744_v2 = vld [vmem:[#allocation57_spill] sm:$0xff] }
 0x44e   : > { %v11248_v53 = vsel %vm4374_vm4, %v12734_v29, %v12732_v48  ;;  %v12737_v42 = vmov %v12732_v48  ;;  %v7388_v33 = vpop.eup %7387  ;;  %7407 = vpow2.f32 %v6279_v49  ;;  %v6283_v0 = vmul.f32 -1.442695, %v11228_v27 }
 0x44f   : > { %v11255_v4 = vsel %vm4374_vm4, %v12737_v42, %v12736_v7  ;;  %v11261_v13 = vsel %vm4374_vm4, %v12739_v57, %v4411_v59  ;;  %v7390_v11 = vpop.eup %7389  ;;  %7409 = vpow2.f32 %v6280_v36  ;;  %v6284_v23 = vmul.f32 -1.442695, %v11232_v52  ;;  %v12742_v7 = vld [vmem:[#allocation87_spill] sm:$0xff]  ;;  %v12743_v42 = vld [vmem:[#allocation46_spill] sm:$0xff] }
 0x450   : > { %v7392_v19 = vpop.eup %7391  ;;  %v4497_v6 = vadd.f32 %v12741_v20, %v12740_v28  ;;  %7411 = vpow2.f32 %v6281_v26  ;;  %v6285_v14 = vmul.f32 -1.442695, %v11236_v10  ;;  %v6286_v60 = vmul.f32 -1.442695, %v11239_v46  ;;  %v12745_v57 = vld [vmem:[#allocation67_spill] sm:$0xff] }
 0x451   : > { %v7394_v1 = vpop.eup %7393  ;;  %7413 = vpow2.f32 %v6282_v5  ;;  %v4159_v31 = vadd.f32 1.0, %v7382_v41  ;;  %v4160_v44 = vadd.f32 1.0, %v7384_v62  ;;  %v4162_v9 = vadd.f32 1.0, %v7386_v12 }
 0x452   : > { %v7396_v39 = vpop.eup %7395  ;;  %7415 = vpow2.f32 %v6283_v0  ;;  %v4498_v51 = vadd.f32 %v4497_v6, %v11248_v53  ;;  %v4164_v59 = vadd.f32 1.0, %v7388_v33  ;;  %v4165_v47 = vadd.f32 1.0, %v7390_v11 }
 0x453   : > { %v7398_v16 = vpop.eup %7397  ;;  %7417 = vpow2.f32 %v6284_v23  ;;  %v4166_v36 = vadd.f32 1.0, %v7392_v19  ;;  %v4167_v17 = vadd.f32 1.0, %v7394_v1  ;;  %v4168_v48 = vadd.f32 1.0, %v7396_v39  ;;  %v12746_v23 = vld [vmem:[#allocation86_spill] sm:$0xff] }
 0x454   : > { %v7400_v34 = vpop.eup %7399  ;;  %7419 = vpow2.f32 %v6285_v14  ;;  %v4499_v41 = vadd.f32 %v4498_v51, %v11255_v4  ;;  %v4169_v29 = vadd.f32 1.0, %v7398_v16  ;;  %v4305_v12 = vmul.f32 %v12743_v42, %v12742_v7 }
 0x455   : > { %v7402_v58 = vpop.eup %7401  ;;  %7421 = vpow2.f32 %v6286_v60  ;;  %v4170_v5 = vadd.f32 1.0, %v7400_v34  ;;  %v4302_v33 = vmul.f32 %v12745_v57, %v12744_v2  ;;  %v4307_v19 = vmul.f32 %v11146_v50, %v12746_v23 }
 0x456   : > { %v7404_v22 = vpop.eup %7403  ;;  %7423 = vrcp.f32 %v4159_v31  ;;  %v4171_v11 = vadd.f32 1.0, %v7402_v58  ;;  %v4500_v20 = vadd.f32 %v4499_v41, %v11261_v13 }
 0x457   : > { %v7406_v49 = vpop.eup %7405  ;;  %7425 = vrcp.f32 %v4160_v44  ;;  %v4172_v14 = vadd.f32 1.0, %v7404_v22  ;;  %v4415_v16 = vrot.slane %v4302_v33, 7  ;;  %v4420_v44 = vrot.slane %v4305_v12, 7 }
 0x458   : > { %v7408_v26 = vpop.eup %7407  ;;  %7427 = vrcp.f32 %v4162_v9  ;;  %v4173_v60 = vadd.f32 1.0, %v7406_v49  ;;  %v4423_v51 = vrot.slane %v4307_v19, 7  ;;  %v4501_v58 = vadd.f32 %v4500_v20, %v11264_v40 }
 0x459   : > { %v7410_v62 = vpop.eup %7409  ;;  %7429 = vrcp.f32 %v4164_v59  ;;  %v4174_v31 = vadd.f32 1.0, %v7408_v26 }
 0x45a   : > { %v7412_v24 = vpop.eup %7411  ;;  %7431 = vrcp.f32 %v4165_v47  ;;  %v4175_v9 = vadd.f32 1.0, %v7410_v62 }
 0x45b   : > { %v7414_v21 = vpop.eup %7413  ;;  %7433 = vrcp.f32 %v4166_v36  ;;  %v4176_v59 = vadd.f32 1.0, %v7412_v24 }
 0x45c   : > { %v7416_v0 = vpop.eup %7415  ;;  %7435 = vrcp.f32 %v4167_v17  ;;  %v4177_v47 = vadd.f32 1.0, %v7414_v21 }
 0x45d   : > { %v7418_v6 = vpop.eup %7417  ;;  %7437 = vrcp.f32 %v4168_v48  ;;  %v4178_v49 = vadd.f32 1.0, %v7416_v0 }
 0x45e   : > { %v7420_v1 = vpop.eup %7419  ;;  %7439 = vrcp.f32 %v4169_v29  ;;  %v4179_v17 = vadd.f32 1.0, %v7418_v6 }
 0x45f   : > { %v7422_v39 = vpop.eup %7421  ;;  %7441 = vrcp.f32 %v4170_v5  ;;  %v4180_v48 = vadd.f32 1.0, %v7420_v1 }
 0x460   : > { %v7424_v34 = vpop.eup %7423  ;;  %7443 = vrcp.f32 %v4171_v11  ;;  %v4181_v42 = vadd.f32 1.0, %v7422_v39 }
 0x461   : > { %v7426_v50 = vpop.eup %7425  ;;  %7445 = vrcp.f32 %v4172_v14  ;;  %v4303_v22 = vmul.f32 %v7424_v34, %v12725_v35 }
 0x462   : > { %v7428_v36 = vpop.eup %7427  ;;  %7447 = vrcp.f32 %v4173_v60  ;;  %v4304_v26 = vmul.f32 %v7426_v50, %v12726_v30 }
 0x463   : > { %v7430_v41 = vpop.eup %7429  ;;  %7449 = vrcp.f32 %v4174_v31  ;;  %v4306_v62 = vmul.f32 %v7428_v36, %v11086_v55  ;;  %v4416_v29 = vrot.slane %v4303_v22, 7 }
 0x464   : > { %v7432_v7 = vpop.eup %7431  ;;  %7451 = vrcp.f32 %v4175_v9  ;;  %v4308_v24 = vmul.f32 %v7430_v41, %v11089_v3  ;;  %v4418_v21 = vrot.slane %v4304_v26, 7 }
 0x465   : > { %v7434_v12 = vpop.eup %7433  ;;  %7453 = vrcp.f32 %v4176_v59  ;;  %v4309_v35 = vmul.f32 %v7432_v7, %v11098_v25  ;;  %v11288_v5 = vsel %vm4374_vm4, %v4415_v16, %v4416_v29  ;;  %v4421_v30 = vrot.slane %v4306_v62, 7 }
 0x466   : > { %v7436_v2 = vpop.eup %7435  ;;  %7455 = vrcp.f32 %v4177_v47  ;;  %v4310_v57 = vmul.f32 %v7434_v12, %v11101_v61  ;;  %v11292_v55 = vsel %vm4374_vm4, %v4416_v29, %v4418_v21  ;;  %v4425_v33 = vrot.slane %v4308_v24, 7 }
 0x467   : > { %v7438_v0 = vpop.eup %7437  ;;  %7457 = vrcp.f32 %v4178_v49  ;;  %v4311_v3 = vmul.f32 %v7436_v2, %v11107_v18  ;;  %v11296_v11 = vsel %vm4374_vm4, %v4420_v44, %v4421_v30  ;;  %v11299_v25 = vsel %vm4374_vm4, %v4421_v30, %v4423_v51 }
 0x468   : > { %v7440_v23 = vpop.eup %7439  ;;  %7459 = vrcp.f32 %v4179_v17  ;;  %v4312_v19 = vmul.f32 %v7438_v0, %v11110_v56  ;;  %v4426_v20 = vrot.slane %v4309_v35, 7  ;;  %v4428_v61 = vrot.slane %v4310_v57, 7 }
 0x469   : > { %v7442_v6 = vpop.eup %7441  ;;  %7461 = vrcp.f32 %v4180_v48  ;;  %v4313_v14 = vmul.f32 %v7440_v23, %v11124_v63  ;;  %v4430_v1 = vrot.slane %v4311_v3, 7  ;;  %v4502_v60 = vadd.f32 %v4501_v58, %v11288_v5 }
 0x46a   : > { %v7444_v18 = vpop.eup %7443  ;;  %7463 = vrcp.f32 %v4181_v42  ;;  %v4314_v39 = vmul.f32 %v7442_v6, %v11134_v15  ;;  %v11306_v31 = vsel %vm4374_vm4, %v4425_v33, %v4426_v20  ;;  %v11309_v16 = vsel %vm4374_vm4, %v4426_v20, %v4428_v61 }
 0x46b   : > { %v7446_v56 = vpop.eup %7445  ;;  %v4315_v44 = vmul.f32 %v7444_v18, %v11179_v45  ;;  %v4431_v34 = vrot.slane %v4312_v19, 7  ;;  %v4433_v9 = vrot.slane %v4313_v14, 7  ;;  %v4503_v63 = vadd.f32 %v4502_v60, %v11292_v55 }
 0x46c   : > { %v7448_v51 = vpop.eup %7447  ;;  %v4316_v58 = vmul.f32 %v7446_v56, %v11194_v54  ;;  %v4435_v50 = vrot.slane %v4314_v39, 7 }
 0x46d   : > { %v7450_v59 = vpop.eup %7449  ;;  %v4317_v15 = vmul.f32 %v7448_v51, %v11200_v8  ;;  %v11316_v47 = vsel %vm4374_vm4, %v4430_v1, %v4431_v34  ;;  %v11319_v22 = vsel %vm4374_vm4, %v4431_v34, %v4433_v9  ;;  %v4436_v36 = vrot.slane %v4315_v44, 7 }
 0x46e   : > { %v7452_v49 = vpop.eup %7451  ;;  %v4318_v45 = vmul.f32 %v7450_v59, %v11207_v37  ;;  %v4438_v17 = vrot.slane %v4316_v58, 7  ;;  %v4504_v26 = vadd.f32 %v4503_v63, %v11296_v11 }
 0x46f   : > { %v7454_v41 = vpop.eup %7453  ;;  %v4319_v54 = vmul.f32 %v7452_v49, %v11210_v38  ;;  %v11325_v48 = vsel %vm4374_vm4, %v4435_v50, %v4436_v36  ;;  %v4440_v8 = vrot.slane %v4317_v15, 7 }
 0x470   : > { %v7456_v62 = vpop.eup %7455  ;;  %v4320_v29 = vmul.f32 %v7454_v41, %v11219_v32  ;;  %v11329_v7 = vsel %vm4374_vm4, %v4436_v36, %v4438_v17  ;;  %v4441_v42 = vrot.slane %v4318_v45, 7  ;;  %v4505_v24 = vadd.f32 %v4504_v26, %v11299_v25  ;;  %v4620_v41 = vld [vmem:[%s12027_s9] sm:$0xff] }
 0x471   : > { %v7458_v37 = vpop.eup %7457  ;;  %v4321_v21 = vmul.f32 %v7456_v62, %v11224_v43  ;;  %v4443_v12 = vrot.slane %v4319_v54, 7  ;;  %v12747_v26 = vmov 0.0   ;;  %v4542_v54 = vld [vmem:[%s12026_s8] sm:$0x1] }
 0x472   : > { %v7460_v35 = vpop.eup %7459  ;;  %v4322_v38 = vmul.f32 %v7458_v37, %v11228_v27  ;;  %v11335_v30 = vsel %vm4374_vm4, %v4440_v8, %v4441_v42  ;;  %v4506_v2 = vadd.f32 %v4505_v24, %v11306_v31  ;;  %v4445_v0 = vrot.slane %v4320_v29, 7 }
 0x473   : > { %v7462_v57 = vpop.eup %7461  ;;  %v4323_v32 = vmul.f32 %v7460_v35, %v11232_v52  ;;  %v11340_v33 = vsel %vm4374_vm4, %v4441_v42, %v4443_v12  ;;  %v4446_v3 = vrot.slane %v4321_v21, 7  ;;  %v6987_v35 = vld [vmem:[%s12029_s11] sm:$0xff]  }
 0x474   : > { %v7464_v23 = vpop.eup %7463  ;;  %v4324_v43 = vmul.f32 %v7462_v57, %v11236_v10  ;;  %v4448_v19 = vrot.slane %v4322_v38, 7  ;;  %v4507_v20 = vadd.f32 %v4506_v2, %v11309_v16  ;;  %v6988_v38 = vld [vmem:[%s12029_s11 + $0x8] sm:$0xff]   ;;  %v6989_v2 = vld [vmem:[%s12029_s11 + $0x10] sm:$0xff]   ;;  %v6990_v57 = vld [vmem:[%s12029_s11 + $0x18] sm:$0xff]  }
 0x475   : > { %v4325_v27 = vmul.f32 %v7464_v23, %v11239_v46  ;;  %v11346_v61 = vsel %vm4374_vm4, %v4445_v0, %v4446_v3  ;;  %v4450_v52 = vrot.slane %v4323_v32, 7  ;;  %v6991_v32 = vld [vmem:[%s12029_s11 + $0x20] sm:$0xff]   ;;  %v6992_v0 = vld [vmem:[%s12029_s11 + $0x28] sm:$0xff]   ;;  %v6994_v23 = vld [vmem:[%s12029_s11 + $0x38] sm:$0xff]  }
 0x476   : > { %v11349_v6 = vsel %vm4374_vm4, %v4446_v3, %v4448_v19  ;;  %v4451_v14 = vrot.slane %v4324_v43, 7  ;;  %v4508_v1 = vadd.f32 %v4507_v20, %v11316_v47  ;;  %v6993_v3 = vld [vmem:[%s12029_s11 + $0x30] sm:$0xff]   ;;  %v6997_v43 = vld [vmem:[%s12031_s13 + $0x4] ss:$8 sps:$4 sm:$0xff]   ;;  %v4621_v19 = vld [vmem:[%s12028_s10] sm:$0x1] }
 0x477   : > { %v4453_v60 = vrot.slane %v4325_v27, 7 }
 0x478   : > { %v11353_v18 = vsel %vm4374_vm4, %v4450_v52, %v4451_v14  ;;  %v4509_v10 = vadd.f32 %v4508_v1, %v11319_v22 }
 0x479   : > { %v11357_v39 = vsel %vm4374_vm4, %v4451_v14, %v4453_v60 }
 0x47a   : > { %v4510_v46 = vadd.f32 %v4509_v10, %v11325_v48 }
 0x47c   : > { %v4511_v56 = vadd.f32 %v4510_v46, %v11329_v7  ;;  %v12748_v46 = vld [vmem:[#allocation42_spill] sm:$0xff] }
 0x47e   : > { %v4512_v44 = vadd.f32 %v4511_v56, %v11335_v30 }
 0x480   : > { %v4513_v34 = vadd.f32 %v4512_v44, %v11340_v33  ;;  %v12749_v44 = vld [vmem:[#allocation64_spill] sm:$0xff] }
 0x482   : > { %v4514_v9 = vadd.f32 %v4513_v34, %v11346_v61 }
 0x484   : > { %v4515_v63 = vadd.f32 %v4514_v9, %v11349_v6  ;;  %v12750_v9 = vld [vmem:[#allocation75_spill] sm:$0xff] }
 0x486   : > { %v4516_v51 = vadd.f32 %v4515_v63, %v11353_v18 }
 0x488   : > { %v4517_v58 = vadd.f32 %v4516_v51, %v11357_v39  ;;  %v12751_v51 = vld [vmem:[#allocation48_spill] sm:$0xff] }
 0x48a   : > { %v4518_v50 = vrot.slane %v4517_v58, 4 }
 0x48c   : > { %v4519_v59 = vadd.f32 %v4518_v50, %v4517_v58  ;;  %v12752_v50 = vld [vmem:[#allocation51_spill] sm:$0xff] }
 0x48e   : > { %v4520_v15 = vrot.slane %v4519_v59, 2 }
 0x490   : > { %v4521_v36 = vadd.f32 %v4520_v15, %v4519_v59  ;;  %v12753_v15 = vld [vmem:[#allocation77_spill] sm:$0xff] }
 0x492   : > { %v4522_v49 = vrot.slane %v4521_v36, 1 }
 0x494   : > { %v4523_v45 = vadd.f32 %v4522_v49, %v4521_v36  ;;  %v12754_v49 = vld [vmem:[#allocation78_spill] sm:$0xff] }
 0x496   : > { %v4525_v17 = vmul.f32 0.00390625, %v4523_v45 }
 0x498   : > { %6758 = vmatmul.mubr.f32.vlgmr.msra.gmra.mrb[32].mxu1 %v4525_v17 }
 0x499   : > { %6762 = vmatprep.mubr.msk.f32.mxu1 %vm7797_vm5, %v12747_v26  ;;  %6761 = vmatpush3.msra.mxu1 %v4620_v41  ;;  %v6995_v41 = vld [vmem:[%s12031_s13] ss:$8 sps:$4 sm:$0xff]  }
 0x49a   : > { %6765 = vmatprep.subr.bf16.mxu1 %v6987_v35 }
 0x56b   : > { %v4609_v8 = vpop.f32.mrb[32].mxu1 }
 0x56c   : > { %v4610_v62 = vadd.f32 %v4609_v8, %v4542_v54  ;;  %v6759_v29 = vpop.f32.mrb[33].mxu1  ;;  %v7000_v8 = vld [vmem:[%s12031_s13 + $0x14] ss:$8 sps:$4 sm:$0xff]  }
 0x56e   : > { %v6287_v42 = vmul.f32 -1.442695, %v4610_v62 }
 0x570   : > { %7465 = vpow2.f32 %v6287_v42  ;;  %v12756_v42 = vld [vmem:[#allocation81_spill] sm:$0xff] }
 0x57a   : > { %v7466_v24 = vpop.eup %7465 }
 0x57b   : > { %v4616_v37 = vadd.f32 1.0, %v7466_v24 }
 0x57d   : > { %7467 = vrcp.f32 %v4616_v37  ;;  %v6998_v37 = vld [vmem:[%s12031_s13 + $0x10] ss:$8 sps:$4 sm:$0xff]  }
 0x587   : > { %v7468_v21 = vpop.eup %7467 }
 0x588   : > { %v4619_v12 = vmul.f32 %v7468_v21, %v4610_v62  ;;  %v12755_v62 = vld [vmem:[#allocation54_spill] sm:$0xff] }
 0x589   : > { %v12757_v21 = vld [vmem:[#allocation82_spill] sm:$0xff] }
 0x58a   : > { %6763 = vmatmul.mubr.msk.f32.vlgmr.msra.gmra.mrb[34].mxu1 %vm4622_vm6, %v4619_v12 }
 0x58b   : > { %6766 = vmatpush3.bf16.msra.mxu1 %v6987_v35  ;;  %v12758_v35 = vld [vmem:[#allocation40_spill] sm:$0xff] }
 0x58c   : > { %6767 = vmatprep.subr.bf16.mxu1 %v6988_v38 }
 0x58f   : > { %6768 = vmatpush3.bf16.msra.mxu1 %v6988_v38 }
 0x590   : > { %6769 = vmatprep.subr.bf16.mxu1 %v6989_v2 }
 0x593   : > { %6770 = vmatpush3.bf16.msra.mxu1 %v6989_v2 }
 0x594   : > { %6771 = vmatprep.subr.bf16.mxu1 %v6990_v57 }
 0x597   : > { %6772 = vmatpush3.bf16.msra.mxu1 %v6990_v57 }
 0x598   : > { %6773 = vmatprep.subr.bf16.mxu1 %v6991_v32 }
 0x59b   : > { %6774 = vmatpush3.bf16.msra.mxu1 %v6991_v32  ;;  %v12759_v32 = vld [vmem:[#allocation47_spill] sm:$0xff] }
 0x59c   : > { %6775 = vmatprep.subr.bf16.mxu1 %v6992_v0 }
 0x59f   : > { %6776 = vmatpush3.bf16.msra.mxu1 %v6992_v0 }
 0x5a0   : > { %6777 = vmatprep.subr.bf16.mxu1 %v6993_v3 }
 0x5a3   : > { %6778 = vmatpush3.bf16.msra.mxu1 %v6993_v3 }
 0x5a4   : > { %6779 = vmatprep.subr.bf16.mxu1 %v6994_v23 }
 0x5a7   : > { %6780 = vmatpush3.bf16.msra.mxu1 %v6994_v23 }
 0x5a8   : > { %5118 = vmatprep.subr.bf16.mxu1 %v6997_v43 }
 0x65d   : > { %v4692_v20 = vpop.f32.mrb[34].mxu1 }
 0x65e   : > { %v4693_v27 = vadd.f32 %v4692_v20, %v4621_v19  ;;  %v6764_v52 = vpop.f32.mrb[35].mxu1 }
 0x660   : > { %v6289_v14 = vmul.f32 -1.442695, %v4693_v27 }
 0x662   : > { %7469 = vpow2.f32 %v6289_v14 }
 0x66c   : > { %v7470_v1 = vpop.eup %7469 }
 0x66d   : > { %v4699_v60 = vadd.f32 1.0, %v7470_v1 }
 0x66f   : > { %7471 = vrcp.f32 %v4699_v60 }
 0x679   : > { %v7472_v10 = vpop.eup %7471 }
 0x67a   : > { %v11406_v56 = vrot.slane %v7472_v10, %v12748_v46 }
 0x67c   : > { %v4706_v34 = vmul.f32 %v11406_v56, %v12749_v44  ;;  %v4707_v63 = vmul.f32 %v11406_v56, %v12750_v9  ;;  %v4708_v58 = vmul.f32 %v11406_v56, %v12751_v51  ;;  %v4709_v59 = vmul.f32 %v11406_v56, %v12752_v50 }
 0x67d   : > { %v4710_v36 = vmul.f32 %v11406_v56, %v12753_v15  ;;  %v4711_v45 = vmul.f32 %v11406_v56, %v12754_v49  ;;  %v4712_v29 = vmul.f32 %v11406_v56, %v12755_v62  ;;  %v4713_v24 = vmul.f32 %v11406_v56, %v12756_v42 }
 0x67e   : > { %v4738_v17 = vpack.c.bf16 %v4707_v63, %v4706_v34  ;;  %v4739_v26 = vpack.c.bf16 %v4709_v59, %v4708_v58  ;;  %v4714_v12 = vmul.f32 %v11406_v56, %v12757_v21  ;;  %v4715_v38 = vmul.f32 %v11406_v56, %v12758_v35 }
 0x67f   : > { %v4740_v54 = vpack.c.bf16 %v4711_v45, %v4710_v36  ;;  %v4741_v2 = vpack.c.bf16 %v4713_v24, %v4712_v29  ;;  %v4716_v0 = vmul.f32 %v11406_v56, %v12759_v32  ;;  %v4717_v3 = vmul.f32 %v11406_v56, %v12740_v28  ;;  %v12760_v36 = vld [vmem:[#allocation9_spill] sm:$0xff]  ;;  %v12761_v45 = vld [vmem:[#allocation8_spill] sm:$0xff] }
 0x680   : > { %6781 = vmatprep.mubr.bf16.mxu1 %v4738_v17  ;;  %v4742_v57 = vpack.c.bf16 %v4715_v38, %v4714_v12  ;;  %v4718_v23 = vmul.f32 %v11406_v56, %v11248_v53  ;;  %v4719_v43 = vmul.f32 %v11406_v56, %v11255_v4  ;;  %v4720_v27 = vmul.f32 %v11406_v56, %v11261_v13 }
 0x681   : > { %6782 = vmatmul.mubr.bf16.vlgmr.msra.gmra.mrb[36].mxu1 %v4739_v26  ;;  %v4743_v19 = vpack.c.bf16 %v4717_v3, %v4716_v0  ;;  %v4721_v52 = vmul.f32 %v11406_v56, %v11264_v40  ;;  %v4722_v14 = vmul.f32 %v11406_v56, %v11288_v5  ;;  %v4723_v28 = vmul.f32 %v11406_v56, %v11292_v55  ;;  %v12762_v26 = vld [vmem:[#allocation10_spill] sm:$0xff]  ;;  %v12765_v0 = vld [vmem:[#allocation13_spill] sm:$0xff] }
 0x682   : > { %6785 = vmatprep.mubr.bf16.mxu1 %v4740_v54  ;;  %5119 = vmatpush1.bf16.msra.mxu1 %v6995_v41  ;;  %v4744_v20 = vpack.c.bf16 %v4719_v43, %v4718_v23  ;;  %v4724_v4 = vmul.f32 %v11406_v56, %v11296_v11  ;;  %v4725_v60 = vmul.f32 %v11406_v56, %v11299_v25  ;;  %v7799_v58 = vmov 0   ;;  %v12763_v54 = vld [vmem:[#allocation11_spill] sm:$0xff]  ;;  %v12766_v23 = vld [vmem:[#allocation14_spill] sm:$0xff] }
 0x683   : > { %5120 = vmatprep.subr.bf16.mxu1 %v7000_v8  ;;  %v4745_v53 = vpack.c.bf16 %v4721_v52, %v4720_v27  ;;  %v4746_v1 = vpack.c.bf16 %v4723_v28, %v4722_v14  ;;  %v4726_v13 = vmul.f32 %v11406_v56, %v11306_v31  ;;  %v4727_v40 = vmul.f32 %v11406_v56, %v11309_v16 }
 0x684   : > { %v4747_v5 = vpack.c.bf16 %v4725_v60, %v4724_v4  ;;  %v4728_v55 = vmul.f32 %v11406_v56, %v11316_v47  ;;  %v4729_v44 = vmul.f32 %v11406_v56, %v11319_v22  ;;  %v4730_v11 = vmul.f32 %v11406_v56, %v11325_v48 }
 0x685   : > { %v4748_v10 = vpack.c.bf16 %v4727_v40, %v4726_v13  ;;  %v4731_v25 = vmul.f32 %v11406_v56, %v11329_v7  ;;  %v4732_v16 = vmul.f32 %v11406_v56, %v11335_v30  ;;  %v4733_v9 = vmul.f32 %v11406_v56, %v11340_v33  ;;  %v11485_v33 = vld [vmem:[%s12030_s12] ss:$0 sm:$0xff] }
 0x686   : > { %5121 = vmatpush1.bf16.msra.mxu1 %v6998_v37  ;;  %v4749_v31 = vpack.c.bf16 %v4729_v44, %v4728_v55  ;;  %v4734_v47 = vmul.f32 %v11406_v56, %v11346_v61  ;;  %v4735_v22 = vmul.f32 %v11406_v56, %v11349_v6  ;;  %v4736_v7 = vmul.f32 %v11406_v56, %v11353_v18  ;;  %v12769_v55 = vld [vmem:[#allocation17_spill] sm:$0xff] }
 0x687   : > { %v4750_v34 = vpack.c.bf16 %v4731_v25, %v4730_v11  ;;  %v4751_v48 = vpack.c.bf16 %v4733_v9, %v4732_v16  ;;  %v4737_v51 = vmul.f32 %v11406_v56, %v11357_v39  ;;  %v12770_v11 = vld [vmem:[#allocation18_spill] sm:$0xff] }
 0x688   : > { %v4752_v63 = vpack.c.bf16 %v4735_v22, %v4734_v47 }
 0x689   : > { %6786 = vmatmul.mubr.bf16.gmra.mrb[40].mxu1 %v4741_v2  ;;  %v4753_v30 = vpack.c.bf16 %v4737_v51, %v4736_v7 }
 0x68a   : > { %6789 = vmatprep.mubr.bf16.mxu1 %v4742_v57  ;;  %v12764_v57 = vld [vmem:[#allocation12_spill] sm:$0xff] }
 0x691   : > { %6790 = vmatmul.mubr.bf16.gmra.mrb[44].mxu1 %v4743_v19  ;;  %v12767_v19 = vld [vmem:[#allocation15_spill] sm:$0xff] }
 0x692   : > { %6793 = vmatprep.mubr.bf16.mxu1 %v4744_v20 }
 0x699   : > { %6794 = vmatmul.mubr.bf16.gmra.mrb[48].mxu1 %v4745_v53 }
 0x69a   : > { %6797 = vmatprep.mubr.bf16.mxu1 %v4746_v1 }
 0x6a1   : > { %6798 = vmatmul.mubr.bf16.gmra.mrb[52].mxu1 %v4747_v5  ;;  %v12768_v5 = vld [vmem:[#allocation16_spill] sm:$0xff] }
 0x6a2   : > { %6801 = vmatprep.mubr.bf16.mxu1 %v4748_v10 }
 0x6a9   : > { %6802 = vmatmul.mubr.bf16.gmra.mrb[56].mxu1 %v4749_v31  ;;  %v12771_v31 = vld [vmem:[#allocation19_spill] sm:$0xff] }
 0x6aa   : > { %6805 = vmatprep.mubr.bf16.mxu1 %v4750_v34 }
 0x6b1   : > { %6806 = vmatmul.mubr.bf16.gmra.mrb[60].mxu1 %v4751_v48 }
 0x6b2   : > { %6809 = vmatprep.mubr.bf16.mxu1 %v4752_v63 }
 0x6b9   : > { %6810 = vmatmul.mubr.bf16.gmra.mrb[64].mxu1 %v4753_v30 }
 0x6ba   : > { %5150 = vmatprep.mubr.bf16.mxu1 %v7799_v58 }
 0x754   : > { %v6783_v61 = vpop.f32.mrb[36].mxu1 }
 0x755   : > { %v4868_v6 = vadd.f32 %v6783_v61, %v11485_v33  ;;  %v4859_v50 = vpop.f32.mrb[37].mxu1 }
 0x756   : > { %v4860_v59 = vadd.f32 %v11485_v33, %v4859_v50  ;;  %v6784_v18 = vpop.f32.mrb[38].mxu1 }
 0x757   : > { %v4871_v15 = vadd.f32 %v6784_v18, %v11485_v33  ;;  %v4862_v39 = vpop.f32.mrb[39].mxu1  ;;  %v4988_v49 = vadd.f32 %v4868_v6, %v12760_v36  ;;  %v12772_v6 = vld [vmem:[#allocation20_spill] sm:$0xff] }
 0x758   : > { %v4863_v56 = vadd.f32 %v11485_v33, %v4862_v39  ;;  %v4986_v41 = vadd.f32 %v4860_v59, %v12762_v26  ;;  %v12773_v59 = vld [vmem:[#allocation21_spill] sm:$0xff] }
 0x759   : > { %v4989_v17 = vadd.f32 %v4871_v15, %v12761_v45  ;;  %v12774_v15 = vld [vmem:[#allocation22_spill] sm:$0xff] }
 0x75a   : > { %v4987_v8 = vadd.f32 %v4863_v56, %v12763_v54  ;;  %v12775_v56 = vld [vmem:[#allocation23_spill] sm:$0xff] }
 0x75b   : > { %v5019_v62 = vpack.c.bf16 %v4989_v17, %v4988_v49 }
 0x75c   : > { %v5018_v29 = vpack.c.bf16 %v4987_v8, %v4986_v41  ;;  %v6787_v42 = vpop.f32.mrb[40].mxu1 }
 0x75d   : > { %v4884_v24 = vadd.f32 %v6787_v42, %v11485_v33  ;;  %v4875_v37 = vpop.f32.mrb[41].mxu1 }
 0x75e   : > { %v4876_v21 = vadd.f32 %v11485_v33, %v4875_v37  ;;  %v6788_v12 = vpop.f32.mrb[42].mxu1  ;;  %6303 = vmatmul.mubr.msk.bf16.vlgmr.msra.gmra.mrb[68].mxu1 %vm1960_vm3, %v5018_v29 }
 0x75f   : > { %v4887_v35 = vadd.f32 %v6788_v12, %v11485_v33  ;;  %v4878_v38 = vpop.f32.mrb[43].mxu1  ;;  %5160 = vmatprep.mubr.bf16.mxu1 %v7799_v58  ;;  %v4992_v32 = vadd.f32 %v4884_v24, %v12764_v57  ;;  %v12776_v24 = vld [vmem:[#allocation27_spill] sm:$0xff] }
 0x760   : > { %v4879_v2 = vadd.f32 %v11485_v33, %v4878_v38  ;;  %v4990_v43 = vadd.f32 %v4876_v21, %v12766_v23  ;;  %v12777_v21 = vld [vmem:[#allocation24_spill] sm:$0xff] }
 0x761   : > { %v4993_v3 = vadd.f32 %v4887_v35, %v12765_v0  ;;  %v12778_v35 = vld [vmem:[#allocation25_spill] sm:$0xff] }
 0x762   : > { %v4991_v20 = vadd.f32 %v4879_v2, %v12767_v19  ;;  %v12779_v2 = vld [vmem:[#allocation26_spill] sm:$0xff] }
 0x763   : > { %v5021_v27 = vpack.c.bf16 %v4993_v3, %v4992_v32 }
 0x764   : > { %v5020_v52 = vpack.c.bf16 %v4991_v20, %v4990_v43  ;;  %v6791_v14 = vpop.f32.mrb[44].mxu1 }
 0x765   : > { %v4900_v28 = vadd.f32 %v6791_v14, %v11485_v33  ;;  %v4891_v53 = vpop.f32.mrb[45].mxu1 }
 0x766   : > { %v4892_v1 = vadd.f32 %v11485_v33, %v4891_v53  ;;  %v6792_v4 = vpop.f32.mrb[46].mxu1  ;;  %6304 = vmatmul.mubr.msk.bf16.gmra.mrb[72].mxu1 %vm1960_vm3, %v5019_v62 }
 0x767   : > { %v4903_v60 = vadd.f32 %v6792_v4, %v11485_v33  ;;  %v4894_v13 = vpop.f32.mrb[47].mxu1  ;;  %5170 = vmatprep.mubr.bf16.mxu1 %v7799_v58  ;;  %v4996_v10 = vadd.f32 %v4900_v28, %v12768_v5  ;;  %v12780_v28 = vld [vmem:[#allocation31_spill] sm:$0xff] }
 0x768   : > { %v4895_v40 = vadd.f32 %v11485_v33, %v4894_v13  ;;  %v4994_v25 = vadd.f32 %v4892_v1, %v12770_v11  ;;  %v12781_v1 = vld [vmem:[#allocation28_spill] sm:$0xff] }
 0x769   : > { %v4997_v44 = vadd.f32 %v4903_v60, %v12769_v55  ;;  %v12782_v60 = vld [vmem:[#allocation29_spill] sm:$0xff] }
 0x76a   : > { %v4995_v34 = vadd.f32 %v4895_v40, %v12771_v31  ;;  %v12783_v40 = vld [vmem:[#allocation30_spill] sm:$0xff] }
 0x76b   : > { %v5023_v16 = vpack.c.bf16 %v4997_v44, %v4996_v10 }
 0x76c   : > { %v5022_v9 = vpack.c.bf16 %v4995_v34, %v4994_v25  ;;  %v6795_v47 = vpop.f32.mrb[48].mxu1 }
 0x76d   : > { %v4916_v22 = vadd.f32 %v6795_v47, %v11485_v33  ;;  %v4907_v48 = vpop.f32.mrb[49].mxu1 }
 0x76e   : > { %v4908_v63 = vadd.f32 %v11485_v33, %v4907_v48  ;;  %v6796_v7 = vpop.f32.mrb[50].mxu1  ;;  %6305 = vmatmul.mubr.msk.bf16.gmra.mrb[76].mxu1 %vm1960_vm3, %v5020_v52  ;;  %v12784_v48 = vld [vmem:[#allocation35_spill] sm:$0xff] }
 0x76f   : > { %v4919_v51 = vadd.f32 %v6796_v7, %v11485_v33  ;;  %v4910_v30 = vpop.f32.mrb[51].mxu1  ;;  %5180 = vmatprep.mubr.bf16.mxu1 %v7799_v58  ;;  %v11522_v50 = vadd.f32 %v4916_v22, %v12772_v6  ;;  %v12785_v7 = vld [vmem:[#allocation32_spill] sm:$0xff]  ;;  %v12787_v6 = vld [vmem:[#allocation34_spill] sm:$0xff] }
 0x770   : > { %v4911_v61 = vadd.f32 %v11485_v33, %v4910_v30  ;;  %v4998_v39 = vadd.f32 %v4908_v63, %v12774_v15  ;;  %v12786_v30 = vld [vmem:[#allocation33_spill] sm:$0xff] }
 0x771   : > { %v11525_v18 = vadd.f32 %v4919_v51, %v12773_v59 }
 0x772   : > { %v4999_v36 = vadd.f32 %v4911_v61, %v12775_v56 }
 0x773   : > { %v5025_v49 = vpack.c.bf16 %v11525_v18, %v11522_v50  ;;  %v12792_v18 = vld [vmem:[#allocation41_spill] sm:$0xff] }
 0x774   : > { %v5024_v45 = vpack.c.bf16 %v4999_v36, %v4998_v39  ;;  %v6799_v17 = vpop.f32.mrb[52].mxu1 }
 0x775   : > { %v4932_v26 = vadd.f32 %v6799_v17, %v11485_v33  ;;  %v4923_v41 = vpop.f32.mrb[53].mxu1 }
 0x776   : > { %v4924_v54 = vadd.f32 %v11485_v33, %v4923_v41  ;;  %v6800_v8 = vpop.f32.mrb[54].mxu1  ;;  %6306 = vmatmul.mubr.msk.bf16.gmra.mrb[80].mxu1 %vm1960_vm3, %v5021_v27 }
 0x777   : > { %v4935_v62 = vadd.f32 %v6800_v8, %v11485_v33  ;;  %v4926_v29 = vpop.f32.mrb[55].mxu1  ;;  %5190 = vmatprep.mubr.bf16.mxu1 %v7799_v58  ;;  %v5004_v37 = vadd.f32 %v4932_v26, %v12776_v24 }
 0x778   : > { %v4927_v42 = vadd.f32 %v11485_v33, %v4926_v29  ;;  %v5002_v38 = vadd.f32 %v4924_v54, %v12778_v35 }
 0x779   : > { %v5005_v12 = vadd.f32 %v4935_v62, %v12777_v21  ;;  %v12788_v62 = vld [vmem:[#allocation39_spill] sm:$0xff] }
 0x77a   : > { %v5003_v57 = vadd.f32 %v4927_v42, %v12779_v2  ;;  %v12789_v42 = vld [vmem:[#allocation36_spill] sm:$0xff] }
 0x77b   : > { %v5027_v32 = vpack.c.bf16 %v5005_v12, %v5004_v37  ;;  %v12790_v37 = vld [vmem:[#allocation37_spill] sm:$0xff]  ;;  %v12791_v12 = vld [vmem:[#allocation38_spill] sm:$0xff] }
 0x77c   : > { %v5026_v0 = vpack.c.bf16 %v5003_v57, %v5002_v38  ;;  %v6803_v3 = vpop.f32.mrb[56].mxu1 }
 0x77d   : > { %v4948_v23 = vadd.f32 %v6803_v3, %v11485_v33  ;;  %v4939_v43 = vpop.f32.mrb[57].mxu1 }
 0x77e   : > { %v4940_v19 = vadd.f32 %v11485_v33, %v4939_v43  ;;  %v6804_v20 = vpop.f32.mrb[58].mxu1  ;;  %6307 = vmatmul.mubr.msk.bf16.gmra.mrb[84].mxu1 %vm1960_vm3, %v5022_v9 }
 0x77f   : > { %v4951_v27 = vadd.f32 %v6804_v20, %v11485_v33  ;;  %v4942_v52 = vpop.f32.mrb[59].mxu1  ;;  %5200 = vmatprep.mubr.bf16.mxu1 %v7799_v58  ;;  %v5008_v53 = vadd.f32 %v4948_v23, %v12780_v28 }
 0x780   : > { %v4943_v14 = vadd.f32 %v11485_v33, %v4942_v52  ;;  %v5006_v13 = vadd.f32 %v4940_v19, %v12782_v60 }
 0x781   : > { %v5009_v4 = vadd.f32 %v4951_v27, %v12781_v1 }
 0x782   : > { %v5007_v5 = vadd.f32 %v4943_v14, %v12783_v40 }
 0x783   : > { %v5029_v10 = vpack.c.bf16 %v5009_v4, %v5008_v53 }
 0x784   : > { %v5028_v55 = vpack.c.bf16 %v5007_v5, %v5006_v13  ;;  %v6807_v44 = vpop.f32.mrb[60].mxu1 }
 0x785   : > { %v4964_v11 = vadd.f32 %v6807_v44, %v11485_v33  ;;  %v4955_v25 = vpop.f32.mrb[61].mxu1 }
 0x786   : > { %v4956_v31 = vadd.f32 %v11485_v33, %v4955_v25  ;;  %v6808_v34 = vpop.f32.mrb[62].mxu1  ;;  %6308 = vmatmul.mubr.msk.bf16.gmra.mrb[88].mxu1 %vm1960_vm3, %v5023_v16  ;;  %v7002_v25 = vld [vmem:[%s12033_s15] sm:$0xff]  }
 0x787   : > { %v4967_v9 = vadd.f32 %v6808_v34, %v11485_v33  ;;  %v4958_v47 = vpop.f32.mrb[63].mxu1  ;;  %5210 = vmatprep.mubr.bf16.mxu1 %v7799_v58  ;;  %v5012_v63 = vadd.f32 %v4964_v11, %v12784_v48  ;;  %v7001_v11 = vld [vmem:[%s12033_s15 + $0x40] sm:$0xff]  }
 0x788   : > { %v4959_v22 = vadd.f32 %v11485_v33, %v4958_v47  ;;  %v5010_v61 = vadd.f32 %v4956_v31, %v12786_v30  ;;  %6531 = vmatprep.subr.bf16.mxu0 %v7001_v11 }
 0x789   : > { %v5013_v51 = vadd.f32 %v4967_v9, %v12785_v7  ;;  %6532 = vmatpush3.bf16.msra.mxu0 %v7002_v25 }
 0x78a   : > { %v5011_v59 = vadd.f32 %v4959_v22, %v12787_v6 }
 0x78b   : > { %v5031_v15 = vpack.c.bf16 %v5013_v51, %v5012_v63 }
 0x78c   : > { %v5030_v39 = vpack.c.bf16 %v5011_v59, %v5010_v61  ;;  %v6811_v56 = vpop.f32.mrb[64].mxu1 }
 0x78d   : > { %v4980_v16 = vadd.f32 %v6811_v56, %v11485_v33  ;;  %v4971_v36 = vpop.f32.mrb[65].mxu1 }
 0x78e   : > { %v4972_v17 = vadd.f32 %v11485_v33, %v4971_v36  ;;  %v6812_v26 = vpop.f32.mrb[66].mxu1  ;;  %6309 = vmatmul.mubr.msk.bf16.gmra.mrb[92].mxu1 %vm1960_vm3, %v5024_v45 }
 0x78f   : > { %v4983_v41 = vadd.f32 %v6812_v26, %v11485_v33  ;;  %v4974_v54 = vpop.f32.mrb[67].mxu1  ;;  %5220 = vmatprep.mubr.bf16.mxu1 %v7799_v58  ;;  %v5016_v29 = vadd.f32 %v4980_v16, %v12788_v62  ;;  %v7003_v62 = vld [vmem:[%s12033_s15 + $0x48] sm:$0xff]  }
 0x790   : > { %v4975_v8 = vadd.f32 %v11485_v33, %v4974_v54  ;;  %v5014_v21 = vadd.f32 %v4972_v17, %v12790_v37  ;;  %v5038_v33 = vld [vmem:[%s12032_s14] sm:$0x3]  ;;  %6533 = vmatprep.subr.bf16.mxu0 %v7003_v62 }
 0x791   : > { %v5017_v24 = vadd.f32 %v4983_v41, %v12789_v42  ;;  %v11595_v50 = vrot.slane %v5038_v33, %v12748_v46 }
 0x792   : > { %v5015_v35 = vadd.f32 %v4975_v8, %v12791_v12 }
 0x793   : > { %v5033_v38 = vpack.c.bf16 %v5017_v24, %v5016_v29  ;;  %v7004_v29 = vld [vmem:[%s12033_s15 + $0x8] sm:$0xff]  }
 0x794   : > { %v5032_v2 = vpack.c.bf16 %v5015_v35, %v5014_v21  ;;  %6534 = vmatpush3.bf16.msra.mxu0 %v7004_v29 }
 0x796   : > { %6310 = vmatmul.mubr.msk.bf16.gmra.mrb[96].mxu1 %vm1960_vm3, %v5025_v49  ;;  %v11598_v49 = vrot.slane %v5038_v33, %v12792_v18 }
 0x797   : > { %5230 = vmatprep.mubr.bf16.mxu1 %v7799_v58 }
 0x79e   : > { %6311 = vmatmul.mubr.msk.bf16.gmra.mrb[100].mxu1 %vm1960_vm3, %v5026_v0 }
 0x79f   : > { %5240 = vmatprep.mubr.bf16.mxu1 %v7799_v58 }
 0x7a6   : > { %6312 = vmatmul.mubr.msk.bf16.gmra.mrb[104].mxu1 %vm1960_vm3, %v5027_v32 }
 0x7a7   : > { %5250 = vmatprep.mubr.bf16.mxu1 %v7799_v58 }
 0x7ae   : > { %6313 = vmatmul.mubr.msk.bf16.gmra.mrb[108].mxu1 %vm1960_vm3, %v5028_v55 }
 0x7af   : > { %5260 = vmatprep.mubr.bf16.mxu1 %v7799_v58 }
 0x7b6   : > { %6314 = vmatmul.mubr.msk.bf16.gmra.mrb[112].mxu1 %vm1960_vm3, %v5029_v10 }
 0x7b7   : > { %5270 = vmatprep.mubr.bf16.mxu1 %v7799_v58 }
 0x7be   : > { %6315 = vmatmul.mubr.msk.bf16.gmra.mrb[116].mxu1 %vm1960_vm3, %v5030_v39 }
 0x7bf   : > { %5280 = vmatprep.mubr.bf16.mxu1 %v7799_v58 }
 0x7c6   : > { %6316 = vmatmul.mubr.msk.bf16.gmra.mrb[120].mxu1 %vm1960_vm3, %v5031_v15 }
 0x7c7   : > { %5290 = vmatprep.mubr.bf16.mxu1 %v7799_v58 }
 0x7ce   : > { %6317 = vmatmul.mubr.msk.bf16.gmra.mrb[124].mxu1 %vm1960_vm3, %v5032_v2 }
 0x7cf   : > { %5300 = vmatprep.mubr.bf16.mxu1 %v7799_v58 }
 0x7d6   : > { %6318 = vmatmul.mubr.msk.bf16.gmra.mrb[128].mxu1 %vm1960_vm3, %v5033_v38 }
 0x831   : > { %v5152_v45 = vpop.f32.mrb[68].mxu1 }
 0x832   : > { %v11601_v57 = vadd.f32 %v5152_v45, %v11595_v50  ;;  %v5154_v32 = vpop.f32.mrb[69].mxu1 }
 0x833   : > { %v11604_v0 = vadd.f32 %v5154_v32, %v11598_v49  ;;  %v5156_v58 = vpop.f32.mrb[70].mxu1 }
 0x834   : > { %v6319_v3 = vmul.f32 -1.442695, %v11601_v57  ;;  %v11608_v23 = vadd.f32 %v5156_v58, %v11595_v50  ;;  %v5158_v43 = vpop.f32.mrb[71].mxu1 }
 0x835   : > { %v6320_v46 = vmul.f32 -1.442695, %v11604_v0  ;;  %v11612_v19 = vadd.f32 %v5158_v43, %v11598_v49 }
 0x836   : > { %7473 = vpow2.f32 %v6319_v3  ;;  %v6321_v20 = vmul.f32 -1.442695, %v11608_v23 }
 0x837   : > { %7475 = vpow2.f32 %v6320_v46  ;;  %v6322_v27 = vmul.f32 -1.442695, %v11612_v19 }
 0x838   : > { %7477 = vpow2.f32 %v6321_v20 }
 0x839   : > { %7479 = vpow2.f32 %v6322_v27  ;;  %v5162_v52 = vpop.f32.mrb[72].mxu1 }
 0x83a   : > { %v11617_v14 = vadd.f32 %v5162_v52, %v11595_v50  ;;  %v5164_v28 = vpop.f32.mrb[73].mxu1 }
 0x83b   : > { %v11620_v53 = vadd.f32 %v5164_v28, %v11598_v49  ;;  %v5166_v1 = vpop.f32.mrb[74].mxu1  ;;  %v7005_v28 = vld [vmem:[%s12033_s15 + $0x50] sm:$0xff]  }
 0x83c   : > { %v6323_v4 = vmul.f32 -1.442695, %v11617_v14  ;;  %v11624_v60 = vadd.f32 %v5166_v1, %v11595_v50  ;;  %v5168_v13 = vpop.f32.mrb[75].mxu1  ;;  %6535 = vmatprep.subr.bf16.mxu0 %v7005_v28 }
 0x83d   : > { %v6324_v40 = vmul.f32 -1.442695, %v11620_v53  ;;  %v11628_v5 = vadd.f32 %v5168_v13, %v11598_v49 }
 0x83e   : > { %7481 = vpow2.f32 %v6323_v4  ;;  %v6325_v10 = vmul.f32 -1.442695, %v11624_v60 }
 0x83f   : > { %7483 = vpow2.f32 %v6324_v40  ;;  %v6326_v55 = vmul.f32 -1.442695, %v11628_v5  ;;  %v7006_v40 = vld [vmem:[%s12033_s15 + $0x10] sm:$0xff]  }
 0x840   : > { %v7474_v44 = vpop.eup %7473  ;;  %7485 = vpow2.f32 %v6325_v10  ;;  %6536 = vmatpush3.bf16.msra.mxu0 %v7006_v40 }
 0x841   : > { %v7476_v31 = vpop.eup %7475  ;;  %v5503_v34 = vadd.f32 1.0, %v7474_v44  ;;  %7487 = vpow2.f32 %v6326_v55  ;;  %v5172_v9 = vpop.f32.mrb[76].mxu1 }
 0x842   : > { %v7478_v47 = vpop.eup %7477  ;;  %v5504_v22 = vadd.f32 1.0, %v7476_v31  ;;  %v11639_v48 = vadd.f32 %v5172_v9, %v11595_v50  ;;  %v5174_v63 = vpop.f32.mrb[77].mxu1 }
 0x843   : > { %v7480_v7 = vpop.eup %7479  ;;  %7489 = vrcp.f32 %v5503_v34  ;;  %v5505_v51 = vadd.f32 1.0, %v7478_v47  ;;  %v11642_v30 = vadd.f32 %v5174_v63, %v11598_v49  ;;  %v5176_v61 = vpop.f32.mrb[78].mxu1 }
 0x844   : > { %7491 = vrcp.f32 %v5504_v22  ;;  %v5506_v6 = vadd.f32 1.0, %v7480_v7  ;;  %v6327_v59 = vmul.f32 -1.442695, %v11639_v48  ;;  %v11646_v15 = vadd.f32 %v5176_v61, %v11595_v50  ;;  %v5178_v39 = vpop.f32.mrb[79].mxu1 }
 0x845   : > { %7493 = vrcp.f32 %v5505_v51  ;;  %v6328_v56 = vmul.f32 -1.442695, %v11642_v30  ;;  %v11650_v16 = vadd.f32 %v5178_v39, %v11598_v49  ;;  %v7008_v39 = vld [vmem:[%s12033_s15 + $0x18] sm:$0xff]  }
 0x846   : > { %7495 = vrcp.f32 %v5506_v6  ;;  %v6329_v36 = vmul.f32 -1.442695, %v11646_v15 }
 0x847   : > { %7497 = vpow2.f32 %v6327_v59  ;;  %v6330_v17 = vmul.f32 -1.442695, %v11650_v16 }
 0x848   : > { %v7482_v26 = vpop.eup %7481  ;;  %7499 = vpow2.f32 %v6328_v56 }
 0x849   : > { %v7484_v41 = vpop.eup %7483  ;;  %v5507_v54 = vadd.f32 1.0, %v7482_v26  ;;  %7501 = vpow2.f32 %v6329_v36  ;;  %v5182_v8 = vpop.f32.mrb[80].mxu1 }
 0x84a   : > { %v7486_v42 = vpop.eup %7485  ;;  %v5508_v24 = vadd.f32 1.0, %v7484_v41  ;;  %7503 = vpow2.f32 %v6330_v17  ;;  %v11661_v37 = vadd.f32 %v5182_v8, %v11595_v50  ;;  %v5184_v21 = vpop.f32.mrb[81].mxu1 }
 0x84b   : > { %v7488_v12 = vpop.eup %7487  ;;  %7505 = vrcp.f32 %v5507_v54  ;;  %v5509_v35 = vadd.f32 1.0, %v7486_v42  ;;  %v11664_v38 = vadd.f32 %v5184_v21, %v11598_v49  ;;  %v5186_v2 = vpop.f32.mrb[82].mxu1 }
 0x84c   : > { %7507 = vrcp.f32 %v5508_v24  ;;  %v5510_v33 = vadd.f32 1.0, %v7488_v12  ;;  %v6331_v18 = vmul.f32 -1.442695, %v11661_v37  ;;  %v11668_v45 = vadd.f32 %v5186_v2, %v11595_v50  ;;  %v5188_v32 = vpop.f32.mrb[83].mxu1  ;;  %v7009_v24 = vld [vmem:[%s12033_s15 + $0x60] sm:$0xff]  }
 0x84d   : > { %v7490_v58 = vpop.eup %7489  ;;  %7509 = vrcp.f32 %v5509_v35  ;;  %v6332_v3 = vmul.f32 -1.442695, %v11664_v38  ;;  %v11672_v43 = vadd.f32 %v5188_v32, %v11598_v49 }
 0x84e   : > { %v7492_v46 = vpop.eup %7491  ;;  %7511 = vrcp.f32 %v5510_v33  ;;  %v6333_v20 = vmul.f32 -1.442695, %v11668_v45  ;;  %v5695_v4 = vmul.f32 %v7490_v58, %v11601_v57 }
 0x84f   : > { %v7494_v27 = vpop.eup %7493  ;;  %7513 = vpow2.f32 %v6331_v18  ;;  %v6334_v52 = vmul.f32 -1.442695, %v11672_v43  ;;  %v5696_v55 = vmul.f32 %v7492_v46, %v11604_v0 }
 0x850   : > { %v7496_v1 = vpop.eup %7495  ;;  %v5697_v13 = vmul.f32 %v7494_v27, %v11608_v23  ;;  %7515 = vpow2.f32 %v6332_v3 }
 0x851   : > { %v7498_v10 = vpop.eup %7497  ;;  %v5698_v44 = vmul.f32 %v7496_v1, %v11612_v19  ;;  %7517 = vpow2.f32 %v6333_v20  ;;  %v5192_v11 = vpop.f32.mrb[84].mxu1  ;;  %v7007_v19 = vld [vmem:[%s12033_s15 + $0x58] sm:$0xff]   ;;  %v7011_v1 = vld [vmem:[%s12033_s15 + $0x68] sm:$0xff]  }
 0x852   : > { %v7500_v25 = vpop.eup %7499  ;;  %v5759_v31 = vadd.f32 %v5697_v13, %v5695_v4  ;;  %v5511_v34 = vadd.f32 1.0, %v7498_v10  ;;  %7519 = vpow2.f32 %v6334_v52  ;;  %v11687_v57 = vadd.f32 %v5192_v11, %v11595_v50  ;;  %v5194_v23 = vpop.f32.mrb[85].mxu1  ;;  %6537 = vmatprep.subr.bf16.mxu0 %v7007_v19 }
 0x853   : > { %v7502_v9 = vpop.eup %7501  ;;  %v5796_v47 = vadd.f32 %v5698_v44, %v5696_v55  ;;  %v5512_v22 = vadd.f32 1.0, %v7500_v25  ;;  %v11690_v63 = vadd.f32 %v5194_v23, %v11598_v49  ;;  %v5196_v0 = vpop.f32.mrb[86].mxu1  ;;  %6538 = vmatpush3.bf16.msra.mxu0 %v7008_v39  ;;  %v7012_v44 = vld [vmem:[%s12033_s15 + $0x28] sm:$0xff]  }
 0x854   : > { %v7504_v7 = vpop.eup %7503  ;;  %7521 = vrcp.f32 %v5511_v34  ;;  %v5513_v51 = vadd.f32 1.0, %v7502_v9  ;;  %v6335_v61 = vmul.f32 -1.442695, %v11687_v57  ;;  %v11697_v6 = vadd.f32 %v5196_v0, %v11595_v50  ;;  %v5198_v59 = vpop.f32.mrb[87].mxu1  ;;  %6539 = vmatprep.subr.bf16.mxu0 %v7009_v24  ;;  %v7013_v0 = vld [vmem:[%s12033_s15 + $0x70] sm:$0xff]  }
 0x855   : > { %v7506_v56 = vpop.eup %7505  ;;  %7523 = vrcp.f32 %v5512_v22  ;;  %v5514_v36 = vadd.f32 1.0, %v7504_v7  ;;  %v6336_v17 = vmul.f32 -1.442695, %v11690_v63  ;;  %v11704_v26 = vadd.f32 %v5198_v59, %v11598_v49 }
 0x856   : > { %v7508_v41 = vpop.eup %7507  ;;  %v5699_v54 = vmul.f32 %v7506_v56, %v11617_v14  ;;  %7525 = vrcp.f32 %v5513_v51  ;;  %v6337_v8 = vmul.f32 -1.442695, %v11697_v6  ;;  %v7010_v14 = vld [vmem:[%s12033_s15 + $0x20] sm:$0xff]   ;;  %v7014_v51 = vld [vmem:[%s12033_s15 + $0x30] sm:$0xff]  }
 0x857   : > { %v7510_v62 = vpop.eup %7509  ;;  %v5700_v29 = vmul.f32 %v7508_v41, %v11620_v53  ;;  %7527 = vrcp.f32 %v5514_v36  ;;  %v6338_v42 = vmul.f32 -1.442695, %v11704_v26  ;;  %6540 = vmatpush3.bf16.msra.mxu0 %v7010_v14 }
 0x858   : > { %v7512_v21 = vpop.eup %7511  ;;  %v5760_v12 = vadd.f32 %v5759_v31, %v5699_v54  ;;  %v5701_v35 = vmul.f32 %v7510_v62, %v11624_v60  ;;  %7529 = vpow2.f32 %v6335_v61  ;;  %6541 = vmatprep.subr.bf16.mxu0 %v7011_v1  ;;  %v7015_v61 = vld [vmem:[%s12033_s15 + $0x78] sm:$0xff]  }
 0x859   : > { %v7514_v2 = vpop.eup %7513  ;;  %v5797_v33 = vadd.f32 %v5796_v47, %v5700_v29  ;;  %v5702_v53 = vmul.f32 %v7512_v21, %v11628_v5  ;;  %7531 = vpow2.f32 %v6336_v17  ;;  %v5202_v18 = vpop.f32.mrb[88].mxu1 }
 0x85a   : > { %v7516_v32 = vpop.eup %7515  ;;  %v5761_v58 = vadd.f32 %v5760_v12, %v5701_v35  ;;  %v5515_v3 = vadd.f32 1.0, %v7514_v2  ;;  %7533 = vpow2.f32 %v6337_v8  ;;  %v11719_v46 = vadd.f32 %v5202_v18, %v11595_v50  ;;  %v5204_v60 = vpop.f32.mrb[89].mxu1  ;;  %v7016_v8 = vld [vmem:[%s12033_s15 + $0x38] sm:$0xff]  }
 0x85b   : > { %v7518_v20 = vpop.eup %7517  ;;  %v5798_v27 = vadd.f32 %v5797_v33, %v5702_v53  ;;  %v5516_v52 = vadd.f32 1.0, %v7516_v32  ;;  %7535 = vpow2.f32 %v6338_v42  ;;  %v11722_v28 = vadd.f32 %v5204_v60, %v11598_v49  ;;  %v5206_v5 = vpop.f32.mrb[90].mxu1  ;;  %6542 = vmatpush3.bf16.msra.mxu0 %v7012_v44 }
 0x85c   : > { %v7520_v4 = vpop.eup %7519  ;;  %7537 = vrcp.f32 %v5515_v3  ;;  %v5517_v13 = vadd.f32 1.0, %v7518_v20  ;;  %v6339_v40 = vmul.f32 -1.442695, %v11719_v46  ;;  %v11729_v10 = vadd.f32 %v5206_v5, %v11595_v50  ;;  %v5208_v55 = vpop.f32.mrb[91].mxu1  ;;  %6543 = vmatprep.subr.bf16.mxu0 %v7013_v0 }
 0x85d   : > { %7539 = vrcp.f32 %v5516_v52  ;;  %v5518_v11 = vadd.f32 1.0, %v7520_v4  ;;  %v6340_v25 = vmul.f32 -1.442695, %v11722_v28  ;;  %v11736_v31 = vadd.f32 %v5208_v55, %v11598_v49 }
 0x85e   : > { %v7522_v34 = vpop.eup %7521  ;;  %7541 = vrcp.f32 %v5517_v13  ;;  %v6341_v23 = vmul.f32 -1.442695, %v11729_v10 }
 0x85f   : > { %v7524_v9 = vpop.eup %7523  ;;  %v5703_v47 = vmul.f32 %v7522_v34, %v11639_v48  ;;  %7543 = vrcp.f32 %v5518_v11  ;;  %v6342_v22 = vmul.f32 -1.442695, %v11736_v31  ;;  %6544 = vmatpush3.bf16.msra.mxu0 %v7014_v51 }
 0x860   : > { %v7526_v19 = vpop.eup %7525  ;;  %v5704_v7 = vmul.f32 %v7524_v9, %v11642_v30  ;;  %7545 = vpow2.f32 %v6339_v40  ;;  %6545 = vmatprep.subr.bf16.mxu0 %v7015_v61 }
 0x861   : > { %v7528_v48 = vpop.eup %7527  ;;  %v5762_v59 = vadd.f32 %v5761_v58, %v5703_v47  ;;  %v5705_v39 = vmul.f32 %v7526_v19, %v11646_v15  ;;  %7547 = vpow2.f32 %v6340_v25  ;;  %v5212_v56 = vpop.f32.mrb[92].mxu1 }
 0x862   : > { %v7530_v36 = vpop.eup %7529  ;;  %v5799_v17 = vadd.f32 %v5798_v27, %v5704_v7  ;;  %v5706_v30 = vmul.f32 %v7528_v48, %v11650_v16  ;;  %7549 = vpow2.f32 %v6341_v23  ;;  %v11754_v41 = vadd.f32 %v5212_v56, %v11595_v50  ;;  %v5214_v54 = vpop.f32.mrb[93].mxu1 }
 0x863   : > { %v7532_v62 = vpop.eup %7531  ;;  %v5763_v29 = vadd.f32 %v5762_v59, %v5705_v39  ;;  %v5519_v15 = vadd.f32 1.0, %v7530_v36  ;;  %7551 = vpow2.f32 %v6342_v22  ;;  %v11760_v42 = vadd.f32 %v5214_v54, %v11598_v49  ;;  %v5216_v24 = vpop.f32.mrb[94].mxu1  ;;  %6546 = vmatpush3.bf16.msra.mxu0 %v7016_v8 }
 0x864   : > { %v7534_v16 = vpop.eup %7533  ;;  %v5800_v21 = vadd.f32 %v5799_v17, %v5706_v30  ;;  %v5520_v12 = vadd.f32 1.0, %v7532_v62  ;;  %v11763_v35 = vadd.f32 %v5216_v24, %v11595_v50  ;;  %v5218_v14 = vpop.f32.mrb[95].mxu1  ;;  %v6343_v53 = vmul.f32 -1.442695, %v11754_v41 }
 0x865   : > { %v7536_v2 = vpop.eup %7535  ;;  %7553 = vrcp.f32 %v5519_v15  ;;  %v5521_v33 = vadd.f32 1.0, %v7534_v16  ;;  %v11767_v18 = vadd.f32 %v5218_v14, %v11598_v49  ;;  %v6344_v3 = vmul.f32 -1.442695, %v11760_v42 }
 0x866   : > { %v7538_v32 = vpop.eup %7537  ;;  %7555 = vrcp.f32 %v5520_v12  ;;  %v5522_v58 = vadd.f32 1.0, %v7536_v2  ;;  %v6345_v27 = vmul.f32 -1.442695, %v11763_v35 }
 0x867   : > { %v7540_v60 = vpop.eup %7539  ;;  %v5707_v20 = vmul.f32 %v7538_v32, %v11661_v37  ;;  %7557 = vrcp.f32 %v5521_v33  ;;  %v6346_v1 = vmul.f32 -1.442695, %v11767_v18 }
 0x868   : > { %v7542_v52 = vpop.eup %7541  ;;  %v5708_v5 = vmul.f32 %v7540_v60, %v11664_v38  ;;  %7559 = vrcp.f32 %v5522_v58 }
 0x869   : > { %v7544_v4 = vpop.eup %7543  ;;  %v5764_v13 = vadd.f32 %v5763_v29, %v5707_v20  ;;  %v5709_v40 = vmul.f32 %v7542_v52, %v11668_v45  ;;  %7561 = vpow2.f32 %v6343_v53  ;;  %v5222_v55 = vpop.f32.mrb[96].mxu1 }
 0x86a   : > { %v7546_v44 = vpop.eup %7545  ;;  %v5801_v11 = vadd.f32 %v5800_v21, %v5708_v5  ;;  %v5710_v25 = vmul.f32 %v7544_v4, %v11672_v43  ;;  %7563 = vpow2.f32 %v6344_v3  ;;  %v11777_v37 = vadd.f32 %v5222_v55, %v11595_v50  ;;  %v5224_v34 = vpop.f32.mrb[97].mxu1 }
 0x86b   : > { %v7548_v23 = vpop.eup %7547  ;;  %v5765_v38 = vadd.f32 %v5764_v13, %v5709_v40  ;;  %v5523_v9 = vadd.f32 1.0, %v7546_v44  ;;  %7565 = vpow2.f32 %v6345_v27  ;;  %v11780_v47 = vadd.f32 %v5224_v34, %v11598_v49  ;;  %v5226_v22 = vpop.f32.mrb[98].mxu1 }
 0x86c   : > { %v7550_v45 = vpop.eup %7549  ;;  %v5802_v0 = vadd.f32 %v5801_v11, %v5710_v25  ;;  %v5524_v19 = vadd.f32 1.0, %v7548_v23  ;;  %7567 = vpow2.f32 %v6346_v1  ;;  %v5228_v7 = vpop.f32.mrb[99].mxu1  ;;  %v6347_v61 = vmul.f32 -1.442695, %v11777_v37 }
 0x86d   : > { %v7552_v51 = vpop.eup %7551  ;;  %7569 = vrcp.f32 %v5523_v9  ;;  %v5525_v43 = vadd.f32 1.0, %v7550_v45  ;;  %v11784_v48 = vadd.f32 %v5226_v22, %v11595_v50  ;;  %v6348_v39 = vmul.f32 -1.442695, %v11780_v47 }
 0x86e   : > { %7571 = vrcp.f32 %v5524_v19  ;;  %v5526_v59 = vadd.f32 1.0, %v7552_v51  ;;  %v11788_v56 = vadd.f32 %v5228_v7, %v11598_v49 }
 0x86f   : > { %v7554_v36 = vpop.eup %7553  ;;  %7573 = vrcp.f32 %v5525_v43  ;;  %v6349_v17 = vmul.f32 -1.442695, %v11784_v48 }
 0x870   : > { %v7556_v30 = vpop.eup %7555  ;;  %v5711_v54 = vmul.f32 %v7554_v36, %v11687_v57  ;;  %7575 = vrcp.f32 %v5526_v59  ;;  %v6350_v8 = vmul.f32 -1.442695, %v11788_v56 }
 0x871   : > { %v7558_v62 = vpop.eup %7557  ;;  %v5712_v29 = vmul.f32 %v7556_v30, %v11690_v63  ;;  %7577 = vpow2.f32 %v6347_v61  ;;  %v5232_v15 = vpop.f32.mrb[100].mxu1 }
 0x872   : > { %v7560_v24 = vpop.eup %7559  ;;  %v5766_v16 = vadd.f32 %v5765_v38, %v5711_v54  ;;  %v5713_v21 = vmul.f32 %v7558_v62, %v11697_v6  ;;  %7579 = vpow2.f32 %v6348_v39  ;;  %v11796_v12 = vadd.f32 %v5232_v15, %v11595_v50  ;;  %v5234_v14 = vpop.f32.mrb[101].mxu1 }
 0x873   : > { %v7562_v2 = vpop.eup %7561  ;;  %v5803_v33 = vadd.f32 %v5802_v0, %v5712_v29  ;;  %v5714_v57 = vmul.f32 %v7560_v24, %v11704_v26  ;;  %7581 = vpow2.f32 %v6349_v17  ;;  %v11800_v53 = vadd.f32 %v5234_v14, %v11598_v49  ;;  %v5236_v63 = vpop.f32.mrb[102].mxu1 }
 0x874   : > { %v7564_v32 = vpop.eup %7563  ;;  %v5767_v58 = vadd.f32 %v5766_v16, %v5713_v21  ;;  %v5527_v3 = vadd.f32 1.0, %v7562_v2  ;;  %7583 = vpow2.f32 %v6350_v8  ;;  %v5238_v60 = vpop.f32.mrb[103].mxu1  ;;  %v11803_v52 = vadd.f32 %v5236_v63, %v11595_v50 }
 0x875   : > { %v7566_v6 = vpop.eup %7565  ;;  %v5804_v20 = vadd.f32 %v5803_v33, %v5714_v57  ;;  %v5528_v27 = vadd.f32 1.0, %v7564_v32  ;;  %v6351_v26 = vmul.f32 -1.442695, %v11796_v12  ;;  %v11807_v4 = vadd.f32 %v5238_v60, %v11598_v49 }
 0x876   : > { %v7568_v5 = vpop.eup %7567  ;;  %7585 = vrcp.f32 %v5527_v3  ;;  %v5529_v1 = vadd.f32 1.0, %v7566_v6  ;;  %v6352_v55 = vmul.f32 -1.442695, %v11800_v53  ;;  %v6353_v25 = vmul.f32 -1.442695, %v11803_v52 }
 0x877   : > { %v7570_v13 = vpop.eup %7569  ;;  %7587 = vrcp.f32 %v5528_v27  ;;  %v5530_v40 = vadd.f32 1.0, %v7568_v5  ;;  %v6354_v38 = vmul.f32 -1.442695, %v11807_v4 }
 0x878   : > { %v7572_v44 = vpop.eup %7571  ;;  %v5715_v11 = vmul.f32 %v7570_v13, %v11719_v46  ;;  %7589 = vrcp.f32 %v5529_v1 }
 0x879   : > { %v7574_v34 = vpop.eup %7573  ;;  %v5716_v23 = vmul.f32 %v7572_v44, %v11722_v28  ;;  %7591 = vrcp.f32 %v5530_v40  ;;  %v5242_v9 = vpop.f32.mrb[104].mxu1 }
 0x87a   : > { %v7576_v22 = vpop.eup %7575  ;;  %v5768_v45 = vadd.f32 %v5767_v58, %v5715_v11  ;;  %v5717_v0 = vmul.f32 %v7574_v34, %v11729_v10  ;;  %7593 = vpow2.f32 %v6351_v26  ;;  %v11816_v19 = vadd.f32 %v5242_v9, %v11595_v50  ;;  %v5244_v7 = vpop.f32.mrb[105].mxu1 }
 0x87b   : > { %v7578_v46 = vpop.eup %7577  ;;  %v5805_v51 = vadd.f32 %v5804_v20, %v5716_v23  ;;  %v5718_v43 = vmul.f32 %v7576_v22, %v11736_v31  ;;  %7595 = vpow2.f32 %v6352_v55  ;;  %v11820_v28 = vadd.f32 %v5244_v7, %v11598_v49  ;;  %v5246_v61 = vpop.f32.mrb[106].mxu1 }
 0x87c   : > { %v7580_v59 = vpop.eup %7579  ;;  %v5769_v39 = vadd.f32 %v5768_v45, %v5717_v0  ;;  %v5531_v36 = vadd.f32 1.0, %v7578_v46  ;;  %7597 = vpow2.f32 %v6353_v25  ;;  %v5248_v17 = vpop.f32.mrb[107].mxu1  ;;  %v6355_v8 = vmul.f32 -1.442695, %v11816_v19 }
 0x87d   : > { %v7582_v10 = vpop.eup %7581  ;;  %v5806_v30 = vadd.f32 %v5805_v51, %v5718_v43  ;;  %v5532_v54 = vadd.f32 1.0, %v7580_v59  ;;  %7599 = vpow2.f32 %v6354_v38  ;;  %v11824_v31 = vadd.f32 %v5246_v61, %v11595_v50 }
 0x87e   : > { %v7584_v62 = vpop.eup %7583  ;;  %7601 = vrcp.f32 %v5531_v36  ;;  %v5533_v29 = vadd.f32 1.0, %v7582_v10  ;;  %v11827_v15 = vadd.f32 %v5248_v17, %v11598_v49  ;;  %v6356_v16 = vmul.f32 -1.442695, %v11820_v28 }
 0x87f   : > { %7603 = vrcp.f32 %v5532_v54  ;;  %v5534_v24 = vadd.f32 1.0, %v7584_v62  ;;  %v6357_v14 = vmul.f32 -1.442695, %v11824_v31 }
 0x880   : > { %v7586_v21 = vpop.eup %7585  ;;  %7605 = vrcp.f32 %v5533_v29  ;;  %v6358_v57 = vmul.f32 -1.442695, %v11827_v15 }
 0x881   : > { %v7588_v2 = vpop.eup %7587  ;;  %v5719_v33 = vmul.f32 %v7586_v21, %v11754_v41  ;;  %7607 = vrcp.f32 %v5534_v24  ;;  %v5252_v63 = vpop.f32.mrb[108].mxu1 }
 0x882   : > { %v7590_v32 = vpop.eup %7589  ;;  %v5720_v58 = vmul.f32 %v7588_v2, %v11760_v42  ;;  %7609 = vpow2.f32 %v6355_v8  ;;  %v11835_v3 = vadd.f32 %v5252_v63, %v11595_v50  ;;  %v5254_v60 = vpop.f32.mrb[109].mxu1 }
 0x883   : > { %v7592_v6 = vpop.eup %7591  ;;  %v5770_v20 = vadd.f32 %v5769_v39, %v5719_v33  ;;  %v5721_v27 = vmul.f32 %v7590_v32, %v11763_v35  ;;  %7611 = vpow2.f32 %v6356_v16  ;;  %v11839_v5 = vadd.f32 %v5254_v60, %v11598_v49  ;;  %v5256_v41 = vpop.f32.mrb[110].mxu1 }
 0x884   : > { %v7594_v1 = vpop.eup %7593  ;;  %v5807_v26 = vadd.f32 %v5806_v30, %v5720_v58  ;;  %v5722_v13 = vmul.f32 %v7592_v6, %v11767_v18  ;;  %7613 = vpow2.f32 %v6357_v14  ;;  %v6359_v42 = vmul.f32 -1.442695, %v11835_v3  ;;  %v5258_v40 = vpop.f32.mrb[111].mxu1 }
 0x885   : > { %v7596_v55 = vpop.eup %7595  ;;  %v5771_v44 = vadd.f32 %v5770_v20, %v5721_v27  ;;  %v5535_v11 = vadd.f32 1.0, %v7594_v1  ;;  %7615 = vpow2.f32 %v6358_v57  ;;  %v11844_v23 = vadd.f32 %v5256_v41, %v11595_v50 }
 0x886   : > { %v7598_v25 = vpop.eup %7597  ;;  %v5808_v34 = vadd.f32 %v5807_v26, %v5722_v13  ;;  %v5536_v35 = vadd.f32 1.0, %v7596_v55  ;;  %7617 = vpow2.f32 %v6359_v42  ;;  %v6360_v18 = vmul.f32 -1.442695, %v11839_v5 }
 0x887   : > { %v7600_v38 = vpop.eup %7599  ;;  %7619 = vrcp.f32 %v5535_v11  ;;  %v5537_v9 = vadd.f32 1.0, %v7598_v25  ;;  %v11848_v22 = vadd.f32 %v5258_v40, %v11598_v49  ;;  %v6361_v7 = vmul.f32 -1.442695, %v11844_v23 }
 0x888   : > { %v7602_v45 = vpop.eup %7601  ;;  %7621 = vrcp.f32 %v5536_v35  ;;  %v5538_v0 = vadd.f32 1.0, %v7600_v38 }
 0x889   : > { %v7604_v46 = vpop.eup %7603  ;;  %v5723_v51 = vmul.f32 %v7602_v45, %v11777_v37  ;;  %7623 = vrcp.f32 %v5537_v9  ;;  %v6362_v43 = vmul.f32 -1.442695, %v11848_v22  ;;  %v5262_v61 = vpop.f32.mrb[112].mxu1 }
 0x88a   : > { %v7606_v59 = vpop.eup %7605  ;;  %v5724_v39 = vmul.f32 %v7604_v46, %v11780_v47  ;;  %7625 = vrcp.f32 %v5538_v0  ;;  %v11855_v36 = vadd.f32 %v5262_v61, %v11595_v50  ;;  %v5264_v17 = vpop.f32.mrb[113].mxu1 }
 0x88b   : > { %v7608_v10 = vpop.eup %7607  ;;  %v5772_v30 = vadd.f32 %v5771_v44, %v5723_v51  ;;  %v5725_v54 = vmul.f32 %v7606_v59, %v11784_v48  ;;  %7627 = vpow2.f32 %v6360_v18  ;;  %v11859_v8 = vadd.f32 %v5264_v17, %v11598_v49  ;;  %v5266_v37 = vpop.f32.mrb[114].mxu1 }
 0x88c   : > { %v7610_v62 = vpop.eup %7609  ;;  %v5809_v29 = vadd.f32 %v5808_v34, %v5724_v39  ;;  %v5726_v24 = vmul.f32 %v7608_v10, %v11788_v56  ;;  %7629 = vpow2.f32 %v6361_v7  ;;  %v6363_v47 = vmul.f32 -1.442695, %v11855_v36  ;;  %v5268_v16 = vpop.f32.mrb[115].mxu1 }
 0x88d   : > { %v7612_v21 = vpop.eup %7611  ;;  %v5773_v14 = vadd.f32 %v5772_v30, %v5725_v54  ;;  %v5539_v2 = vadd.f32 1.0, %v7610_v62  ;;  %7631 = vpow2.f32 %v6362_v43  ;;  %v11864_v63 = vadd.f32 %v5266_v37, %v11595_v50 }
 0x88e   : > { %v7614_v33 = vpop.eup %7613  ;;  %v5810_v57 = vadd.f32 %v5809_v29, %v5726_v24  ;;  %v5540_v48 = vadd.f32 1.0, %v7612_v21  ;;  %7633 = vpow2.f32 %v6363_v47  ;;  %v11867_v56 = vadd.f32 %v5268_v16, %v11598_v49 }
 0x88f   : > { %v7616_v32 = vpop.eup %7615  ;;  %7635 = vrcp.f32 %v5539_v2  ;;  %v5541_v58 = vadd.f32 1.0, %v7614_v33  ;;  %v6364_v20 = vmul.f32 -1.442695, %v11859_v8  ;;  %v6365_v1 = vmul.f32 -1.442695, %v11864_v63 }
 0x890   : > { %v7618_v60 = vpop.eup %7617  ;;  %7637 = vrcp.f32 %v5540_v48  ;;  %v5542_v6 = vadd.f32 1.0, %v7616_v32  ;;  %v6366_v40 = vmul.f32 -1.442695, %v11867_v56 }
 0x891   : > { %v7620_v27 = vpop.eup %7619  ;;  %7639 = vrcp.f32 %v5541_v58  ;;  %v5543_v41 = vadd.f32 1.0, %v7618_v60  ;;  %v5272_v26 = vpop.f32.mrb[116].mxu1 }
 0x892   : > { %v7622_v13 = vpop.eup %7621  ;;  %v5727_v42 = vmul.f32 %v7620_v27, %v11796_v12  ;;  %7641 = vrcp.f32 %v5542_v6  ;;  %v11874_v55 = vadd.f32 %v5272_v26, %v11595_v50  ;;  %v5274_v44 = vpop.f32.mrb[117].mxu1 }
 0x893   : > { %v7624_v11 = vpop.eup %7623  ;;  %v5728_v25 = vmul.f32 %v7622_v13, %v11800_v53  ;;  %7643 = vrcp.f32 %v5543_v41  ;;  %v11878_v34 = vadd.f32 %v5274_v44, %v11598_v49  ;;  %v5276_v35 = vpop.f32.mrb[118].mxu1 }
 0x894   : > { %v7626_v38 = vpop.eup %7625  ;;  %v5774_v9 = vadd.f32 %v5773_v14, %v5727_v42  ;;  %v5729_v18 = vmul.f32 %v7624_v11, %v11803_v52  ;;  %7645 = vpow2.f32 %v6364_v20  ;;  %v6367_v12 = vmul.f32 -1.442695, %v11874_v55  ;;  %v5278_v45 = vpop.f32.mrb[119].mxu1 }
 0x895   : > { %v7628_v0 = vpop.eup %7627  ;;  %v5811_v7 = vadd.f32 %v5810_v57, %v5728_v25  ;;  %v5730_v46 = vmul.f32 %v7626_v38, %v11807_v4  ;;  %7647 = vpow2.f32 %v6365_v1  ;;  %v11884_v61 = vadd.f32 %v5276_v35, %v11595_v50 }
 0x896   : > { %v7630_v51 = vpop.eup %7629  ;;  %v5775_v53 = vadd.f32 %v5774_v9, %v5729_v18  ;;  %v5544_v43 = vadd.f32 1.0, %v7628_v0  ;;  %7649 = vpow2.f32 %v6366_v40  ;;  %v11887_v52 = vadd.f32 %v5278_v45, %v11598_v49 }
 0x897   : > { %v7632_v59 = vpop.eup %7631  ;;  %v5812_v39 = vadd.f32 %v5811_v7, %v5730_v46  ;;  %v5545_v17 = vadd.f32 1.0, %v7630_v51  ;;  %7651 = vpow2.f32 %v6367_v12  ;;  %v6368_v4 = vmul.f32 -1.442695, %v11878_v34 }
 0x898   : > { %v7634_v10 = vpop.eup %7633  ;;  %7653 = vrcp.f32 %v5544_v43  ;;  %v5546_v30 = vadd.f32 1.0, %v7632_v59  ;;  %v6369_v62 = vmul.f32 -1.442695, %v11884_v61  ;;  %v6370_v16 = vmul.f32 -1.442695, %v11887_v52 }
 0x899   : > { %v7636_v54 = vpop.eup %7635  ;;  %7655 = vrcp.f32 %v5545_v17  ;;  %v5547_v37 = vadd.f32 1.0, %v7634_v10  ;;  %v5282_v29 = vpop.f32.mrb[120].mxu1 }
 0x89a   : > { %v7638_v24 = vpop.eup %7637  ;;  %v5731_v47 = vmul.f32 %v7636_v54, %v11816_v19  ;;  %7657 = vrcp.f32 %v5546_v30  ;;  %v11894_v21 = vadd.f32 %v5282_v29, %v11595_v50  ;;  %v5284_v14 = vpop.f32.mrb[121].mxu1 }
 0x89b   : > { %v7640_v2 = vpop.eup %7639  ;;  %v5732_v33 = vmul.f32 %v7638_v24, %v11820_v28  ;;  %7659 = vrcp.f32 %v5547_v37  ;;  %v11898_v57 = vadd.f32 %v5284_v14, %v11598_v49  ;;  %v5286_v48 = vpop.f32.mrb[122].mxu1 }
 0x89c   : > { %v7642_v32 = vpop.eup %7641  ;;  %v5776_v58 = vadd.f32 %v5775_v53, %v5731_v47  ;;  %v5733_v60 = vmul.f32 %v7640_v2, %v11824_v31  ;;  %7661 = vpow2.f32 %v6368_v4  ;;  %v6371_v19 = vmul.f32 -1.442695, %v11894_v21  ;;  %v5288_v6 = vpop.f32.mrb[123].mxu1 }
 0x89d   : > { %v7644_v20 = vpop.eup %7643  ;;  %v5813_v27 = vadd.f32 %v5812_v39, %v5732_v33  ;;  %v5734_v41 = vmul.f32 %v7642_v32, %v11827_v15  ;;  %7663 = vpow2.f32 %v6369_v62  ;;  %v6372_v28 = vmul.f32 -1.442695, %v11898_v57 }
 0x89e   : > { %v7646_v1 = vpop.eup %7645  ;;  %v5777_v26 = vadd.f32 %v5776_v58, %v5733_v60  ;;  %v5735_v13 = vmul.f32 %v7644_v20, %v11835_v3  ;;  %7665 = vpow2.f32 %v6370_v16  ;;  %v11906_v42 = vadd.f32 %v5286_v48, %v11595_v50 }
 0x89f   : > { %v7648_v31 = vpop.eup %7647  ;;  %v5814_v40 = vadd.f32 %v5813_v27, %v5734_v41  ;;  %v5548_v44 = vadd.f32 1.0, %v7646_v1  ;;  %7667 = vpow2.f32 %v6371_v19  ;;  %v11909_v11 = vadd.f32 %v5288_v6, %v11598_v49 }
 0x8a0   : > { %v7650_v25 = vpop.eup %7649  ;;  %v5778_v15 = vadd.f32 %v5777_v26, %v5735_v13  ;;  %v5549_v35 = vadd.f32 1.0, %v7648_v31  ;;  %7669 = vpow2.f32 %v6372_v28  ;;  %v6373_v3 = vmul.f32 -1.442695, %v11906_v42 }
 0x8a1   : > { %v7652_v38 = vpop.eup %7651  ;;  %7671 = vrcp.f32 %v5548_v44  ;;  %v5550_v9 = vadd.f32 1.0, %v7650_v25  ;;  %v5292_v18 = vpop.f32.mrb[124].mxu1  ;;  %v6374_v0 = vmul.f32 -1.442695, %v11909_v11 }
 0x8a2   : > { %v7654_v12 = vpop.eup %7653  ;;  %7673 = vrcp.f32 %v5549_v35  ;;  %v5551_v45 = vadd.f32 1.0, %v7652_v38  ;;  %v11914_v7 = vadd.f32 %v5292_v18, %v11595_v50  ;;  %v5294_v46 = vpop.f32.mrb[125].mxu1 }
 0x8a3   : > { %v7656_v51 = vpop.eup %7655  ;;  %v5736_v53 = vmul.f32 %v7654_v12, %v11839_v5  ;;  %7675 = vrcp.f32 %v5550_v9  ;;  %v11918_v43 = vadd.f32 %v5294_v46, %v11598_v49  ;;  %v5296_v59 = vpop.f32.mrb[126].mxu1 }
 0x8a4   : > { %v7658_v39 = vpop.eup %7657  ;;  %v5737_v17 = vmul.f32 %v7656_v51, %v11844_v23  ;;  %7677 = vrcp.f32 %v5551_v45  ;;  %v6375_v10 = vmul.f32 -1.442695, %v11914_v7  ;;  %v5298_v30 = vpop.f32.mrb[127].mxu1  ;;  %v11926_v47 = vadd.f32 %v5296_v59, %v11595_v50 }
 0x8a5   : > { %v7660_v4 = vpop.eup %7659  ;;  %v5815_v54 = vadd.f32 %v5814_v40, %v5736_v53  ;;  %v5738_v37 = vmul.f32 %v7658_v39, %v11848_v22  ;;  %7679 = vpow2.f32 %v6373_v3  ;;  %v6376_v62 = vmul.f32 -1.442695, %v11918_v43 }
 0x8a6   : > { %v7662_v5 = vpop.eup %7661  ;;  %v5779_v29 = vadd.f32 %v5778_v15, %v5737_v17  ;;  %v5739_v24 = vmul.f32 %v7660_v4, %v11855_v36  ;;  %7681 = vpow2.f32 %v6374_v0  ;;  %v11929_v2 = vadd.f32 %v5298_v30, %v11598_v49 }
 0x8a7   : > { %v7664_v23 = vpop.eup %7663  ;;  %v5816_v16 = vadd.f32 %v5815_v54, %v5738_v37  ;;  %v5552_v14 = vadd.f32 1.0, %v7662_v5  ;;  %7683 = vpow2.f32 %v6375_v10  ;;  %v6377_v6 = vmul.f32 -1.442695, %v11926_v47 }
 0x8a8   : > { %v7666_v33 = vpop.eup %7665  ;;  %v5780_v22 = vadd.f32 %v5779_v29, %v5739_v24  ;;  %v5553_v48 = vadd.f32 1.0, %v7664_v23  ;;  %7685 = vpow2.f32 %v6376_v62  ;;  %v6378_v1 = vmul.f32 -1.442695, %v11929_v2 }
 0x8a9   : > { %v7668_v32 = vpop.eup %7667  ;;  %7687 = vrcp.f32 %v5552_v14  ;;  %v5554_v58 = vadd.f32 1.0, %v7666_v33  ;;  %v5302_v60 = vpop.f32.mrb[128].mxu1 }
 0x8aa   : > { %v7670_v36 = vpop.eup %7669  ;;  %7689 = vrcp.f32 %v5553_v48  ;;  %v5555_v19 = vadd.f32 1.0, %v7668_v32  ;;  %v11933_v20 = vadd.f32 %v5302_v60, %v11595_v50  ;;  %v5304_v27 = vpop.f32.mrb[129].mxu1 }
 0x8ab   : > { %v7672_v41 = vpop.eup %7671  ;;  %7691 = vrcp.f32 %v5554_v58  ;;  %v5556_v28 = vadd.f32 1.0, %v7670_v36  ;;  %v11937_v26 = vadd.f32 %v5304_v27, %v11598_v49  ;;  %v5306_v13 = vpop.f32.mrb[130].mxu1 }
 0x8ac   : > { %v7674_v31 = vpop.eup %7673  ;;  %v5740_v40 = vmul.f32 %v7672_v41, %v11859_v8  ;;  %7693 = vrcp.f32 %v5555_v19  ;;  %v6379_v44 = vmul.f32 -1.442695, %v11933_v20  ;;  %v5308_v25 = vpop.f32.mrb[131].mxu1  ;;  %v11945_v12 = vadd.f32 %v5306_v13, %v11595_v50 }
 0x8ad   : > { %v7676_v15 = vpop.eup %7675  ;;  %v5741_v35 = vmul.f32 %v7674_v31, %v11864_v63  ;;  %7695 = vrcp.f32 %v5556_v28  ;;  %v6380_v38 = vmul.f32 -1.442695, %v11937_v26  ;;  %v11949_v46 = vadd.f32 %v5308_v25, %v11598_v49 }
 0x8ae   : > { %v7678_v9 = vpop.eup %7677  ;;  %v5817_v3 = vadd.f32 %v5816_v16, %v5740_v40  ;;  %v5742_v18 = vmul.f32 %v7676_v15, %v11867_v56  ;;  %7697 = vpow2.f32 %v6377_v6  ;;  %v6381_v10 = vmul.f32 -1.442695, %v11945_v12 }
 0x8af   : > { %v7680_v45 = vpop.eup %7679  ;;  %v5781_v8 = vadd.f32 %v5780_v22, %v5741_v35  ;;  %v5743_v0 = vmul.f32 %v7678_v9, %v11874_v55  ;;  %7699 = vpow2.f32 %v6378_v1  ;;  %v6382_v4 = vmul.f32 -1.442695, %v11949_v46 }
 0x8b0   : > { %v7682_v63 = vpop.eup %7681  ;;  %v5818_v51 = vadd.f32 %v5817_v3, %v5742_v18  ;;  %v5557_v53 = vadd.f32 1.0, %v7680_v45  ;;  %7701 = vpow2.f32 %v6379_v44 }
 0x8b1   : > { %v7684_v59 = vpop.eup %7683  ;;  %v5782_v39 = vadd.f32 %v5781_v8, %v5743_v0  ;;  %v5558_v17 = vadd.f32 1.0, %v7682_v63  ;;  %7703 = vpow2.f32 %v6380_v38 }
 0x8b2   : > { %v7686_v56 = vpop.eup %7685  ;;  %7705 = vrcp.f32 %v5557_v53  ;;  %v5559_v50 = vadd.f32 1.0, %v7684_v59 }
 0x8b3   : > { %v7688_v30 = vpop.eup %7687  ;;  %7707 = vrcp.f32 %v5558_v17  ;;  %v5560_v55 = vadd.f32 1.0, %v7686_v56 }
 0x8b4   : > { %v7690_v49 = vpop.eup %7689  ;;  %v5744_v54 = vmul.f32 %v7688_v30, %v11878_v34  ;;  %7709 = vrcp.f32 %v5559_v50 }
 0x8b5   : > { %v7692_v37 = vpop.eup %7691  ;;  %v5745_v62 = vmul.f32 %v7690_v49, %v11884_v61  ;;  %7711 = vrcp.f32 %v5560_v55 }
 0x8b6   : > { %v7694_v5 = vpop.eup %7693  ;;  %v5819_v29 = vadd.f32 %v5818_v51, %v5744_v54  ;;  %v5746_v24 = vmul.f32 %v7692_v37, %v11887_v52  ;;  %7713 = vpow2.f32 %v6381_v10 }
 0x8b7   : > { %v7696_v23 = vpop.eup %7695  ;;  %v5783_v16 = vadd.f32 %v5782_v39, %v5745_v62  ;;  %v5747_v14 = vmul.f32 %v7694_v5, %v11894_v21  ;;  %7715 = vpow2.f32 %v6382_v4 }
 0x8b8   : > { %v7698_v33 = vpop.eup %7697  ;;  %v5820_v22 = vadd.f32 %v5819_v29, %v5746_v24  ;;  %v5748_v48 = vmul.f32 %v7696_v23, %v11898_v57 }
 0x8b9   : > { %v7700_v34 = vpop.eup %7699  ;;  %v5784_v32 = vadd.f32 %v5783_v16, %v5747_v14  ;;  %v5561_v58 = vadd.f32 1.0, %v7698_v33  ;;  %v5869_v14 = vld [vmem:[%s12034_s16] sm:$0x1] }
 0x8ba   : > { %v7702_v60 = vpop.eup %7701  ;;  %v5821_v61 = vadd.f32 %v5820_v22, %v5748_v48  ;;  %v5562_v36 = vadd.f32 1.0, %v7700_v34 }
 0x8bb   : > { %v7704_v19 = vpop.eup %7703  ;;  %7717 = vrcp.f32 %v5561_v58  ;;  %v5563_v6 = vadd.f32 1.0, %v7702_v60 }
 0x8bc   : > { %v7706_v52 = vpop.eup %7705  ;;  %7719 = vrcp.f32 %v5562_v36  ;;  %v5564_v27 = vadd.f32 1.0, %v7704_v19 }
 0x8bd   : > { %v7708_v41 = vpop.eup %7707  ;;  %v5749_v21 = vmul.f32 %v7706_v52, %v11906_v42  ;;  %7721 = vrcp.f32 %v5563_v6 }
 0x8be   : > { %v7710_v28 = vpop.eup %7709  ;;  %v5750_v1 = vmul.f32 %v7708_v41, %v11909_v11  ;;  %7723 = vrcp.f32 %v5564_v27 }
 0x8bf   : > { %v7712_v57 = vpop.eup %7711  ;;  %v5785_v13 = vadd.f32 %v5784_v32, %v5749_v21  ;;  %v5751_v31 = vmul.f32 %v7710_v28, %v11914_v7 }
 0x8c0   : > { %v7714_v40 = vpop.eup %7713  ;;  %v5822_v44 = vadd.f32 %v5821_v61, %v5750_v1  ;;  %v5752_v25 = vmul.f32 %v7712_v57, %v11918_v43 }
 0x8c1   : > { %v7716_v15 = vpop.eup %7715  ;;  %v5786_v35 = vadd.f32 %v5785_v13, %v5751_v31  ;;  %v5565_v38 = vadd.f32 1.0, %v7714_v40 }
 0x8c2   : > { %v5823_v9 = vadd.f32 %v5822_v44, %v5752_v25  ;;  %v5566_v3 = vadd.f32 1.0, %v7716_v15 }
 0x8c3   : > { %7725 = vrcp.f32 %v5565_v38 }
 0x8c4   : > { %7727 = vrcp.f32 %v5566_v3 }
 0x8c5   : > { %v7718_v42 = vpop.eup %7717 }
 0x8c6   : > { %v7720_v18 = vpop.eup %7719  ;;  %v5753_v11 = vmul.f32 %v7718_v42, %v11926_v47 }
 0x8c7   : > { %v7722_v45 = vpop.eup %7721  ;;  %v5754_v8 = vmul.f32 %v7720_v18, %v11929_v2 }
 0x8c8   : > { %v7724_v0 = vpop.eup %7723  ;;  %v5787_v7 = vadd.f32 %v5786_v35, %v5753_v11  ;;  %v5755_v63 = vmul.f32 %v7722_v45, %v11933_v20 }
 0x8c9   : > { %v5824_v51 = vadd.f32 %v5823_v9, %v5754_v8  ;;  %v5756_v43 = vmul.f32 %v7724_v0, %v11937_v26 }
 0x8ca   : > { %v5788_v53 = vadd.f32 %v5787_v7, %v5755_v63 }
 0x8cb   : > { %v5825_v59 = vadd.f32 %v5824_v51, %v5756_v43 }
 0x8cd   : > { %v7726_v39 = vpop.eup %7725 }
 0x8ce   : > { %v7728_v17 = vpop.eup %7727  ;;  %v5757_v56 = vmul.f32 %v7726_v39, %v11945_v12 }
 0x8cf   : > { %v5758_v50 = vmul.f32 %v7728_v17, %v11949_v46 }
 0x8d0   : > { %v5789_v10 = vadd.f32 %v5788_v53, %v5757_v56 }
 0x8d1   : > { %v5826_v47 = vadd.f32 %v5825_v59, %v5758_v50 }
 0x8d2   : > { %v5790_v30 = vrot.slane %v5789_v10, 4 }
 0x8d3   : > { %v5827_v55 = vrot.slane %v5826_v47, 4 }
 0x8d4   : > { %v5791_v2 = vadd.f32 %v5790_v30, %v5789_v10 }
 0x8d5   : > { %v5828_v4 = vadd.f32 %v5827_v55, %v5826_v47 }
 0x8d6   : > { %v5792_v49 = vrot.slane %v5791_v2, 2 }
 0x8d7   : > { %v5829_v20 = vrot.slane %v5828_v4, 2 }
 0x8d8   : > { %v5793_v54 = vadd.f32 %v5792_v49, %v5791_v2 }
 0x8d9   : > { %v5830_v26 = vadd.f32 %v5829_v20, %v5828_v4 }
 0x8da   : > { %v5794_v37 = vrot.slane %v5793_v54, 1 }
 0x8db   : > { %v5831_v62 = vrot.slane %v5830_v26, 1 }
 0x8dc   : > { %v5795_v5 = vadd.f32 %v5794_v37, %v5793_v54 }
 0x8dd   : > { %v5832_v29 = vadd.f32 %v5831_v62, %v5830_v26 }
 0x8de   : > { %v5833_v24 = vmul.f32 0.00390625, %v5795_v5 }
 0x8df   : > { %v5834_v12 = vmul.f32 0.00390625, %v5832_v29 }
 0x8e0   : > { %v5835_v46 = vpack.c.bf16 %v5833_v24, %v5833_v24 }
 0x8e1   : > { %v5836_v23 = vpack.c.bf16 %v5834_v12, %v5834_v12 }
 0x8e3   : > { %5998 = vmatprep.mubr.bf16.mxu0 %v5836_v23 }
 0x8e4   : > { %5999 = vmatmul.mubr.bf16.vlgmr.msra.gmra.mrb[32].mxu0 %v5835_v46 }
 0x9b7   : > { %v6547_v16 = vpop.f32.mrb[32].mxu0 }
 0x9b8   : > { %v6548_v33 = vpop.f32.mrb[33].mxu0 }
 0x9b9   : > { %v6549_v22 = vadd.f32 %v6548_v33, %v6547_v16  ;;  %v6550_v48 = vpop.f32.mrb[34].mxu0 }
 0x9ba   : > { %v6551_v34 = vpop.f32.mrb[35].mxu0 }
 0x9bb   : > { %v6001_v32 = vadd.f32 %v6549_v22, %v5869_v14 }
 0x9bd   : > { %6006 = vst [vmem:[%s540_s26] sm:$0x1] %v6001_v32 }
 0x9be   : > { %7745 = shalt.err (!%p7742_p3)
}
 0x9bf   : > { %s7746_s18 = scalar_lea.hbm %s11976_s2, 16  ;;  %s7750_s29 = scalar_lea.hbm %s12035_s17, 32 }
 0x9c0   : > { %p7747_p4 = scmp.ne.s32.totalorder %s11976_s2, %s7746_s18  ;;  %p7751_p9 = scmp.lt.u32.totalorder %s11976_s2, %s12035_s17 }
 0x9c1   : > { %p7752_p10 = scmp.lt.u32.totalorder %s7750_s29, %s7746_s18  ;;  %p7754_p12 = scmp.lt.u32.totalorder %s7746_s18, %s11976_s2 }
 0x9c2   : > { %p7748_p7 = pnand %p7747_p4, %p7929_p5 }
 0x9c3   : > { %p7753_p11 = por %p7752_p10, %p7751_p9 }
 0x9c4   : > { %p7749_p8 = pneg %p7748_p7 }
 0x9c5   : > { %p7755_p13 = por %p7754_p12, %p7753_p11 }
 0x9c7   : > { %p7756_p0 = pnand %p7755_p13, %p7749_p8 }
 0x9c9   : > { %7759 = shalt.err (!%p7756_p0)
}
 0x9ca   : > { %6938 = dma.vmem_to_hbm [thread:$0]  (%p7929_p5), %s11978_s19, 16, %s11976_s2, %s6008_s21  }
 0x9cb PF: > { %p6944_p1 = scmp.ge.s32.totalorder %s7794_s27, 2  ;;  %s6032_s4 = sand.u32 1, %s7782_s24  }
 0x9cc   : > { %s6033_s0 = scalar_lea.sflag [#allocation3], %s6032_s4 }
 0x9cd   : > { %p6941_p2 = pnand %p6944_p1, %p7933_p6 }
 0x9cf   : > { %7777 = dma.done.wait (!%p6941_p2), %s6033_s0, 16  }
 0x9d0   : > { %7779 = vsyncadd (!%p6941_p2), %s6033_s0, 4294967280  ;;  %s12793_s27 = sld [smem:[#allocation6_spill]]  ;;  %s12794_s28 = sld [smem:[#allocation5_spill]] }
 0x9d1   : > { %s12795_s26 = sld [smem:[#allocation7_spill]]  ;;  %s12796_s24 = smov %s7786_s25 }
 0x9d6   : > { %p27_p3 = scmp.ge.s32.totalorder %s12793_s27, 4   ;;  %s12797_s25 = smov %s12794_s28 }
 0x9d8   :  { %29 = sbr.rel (!%p27_p3) target bundleno = 9 (0x9), region = 126 }
 0x9df   :  { %6037 = vsyncpa [#allocation3], 1 }
 0x9e0   :  { %6039 = vsyncpa [#allocation3 + $0x1], 1 }

</bundles_post_ra>
